<compile_context>
chip_gen: v7x
topology: tpu7x:2x2x1
jax: 0.10.0
libtpu: 0.0.40
codegen_flags: <defaults>
</compile_context>

<pallas_src>
import functools

import jax
import jax.numpy as jnp
from jax import lax
from jax.experimental import pallas as pl
from jax.experimental.pallas import tpu as pltpu


# ----------------------------------------------------------------------------
# Pallas kernels
# ----------------------------------------------------------------------------
def _conv_im2col_kernel(x_ref, w_ref, b_ref, o_ref, patch_ref,
                        *, kh, kw, dh, dw, Wp, L):
    # x_ref    : (1, Cin, N)        flattened zero-padded image (+ lane tail), bf16
    # w_ref    : (Cout, kh*kw*Cin)  tap-major weights, bf16
    # b_ref    : (Cout, 1)          f32 bias
    # o_ref    : (1, Cout, L)       L = H*Wp (flattened, incl. pad columns)
    # patch_ref: (kh*kw*Cin, L)     VMEM im2col staging buffer, bf16
    cin = x_ref.shape[1]

    if kh * kw == 1:
        patch = x_ref[0]                                # 1x1 conv: no staging
    else:
        for ky in range(kh):
            for kx in range(kw):
                off = (ky * dh) * Wp + kx * dw          # contiguous lane slice
                r0 = (ky * kw + kx) * cin
                patch_ref[r0:r0 + cin, :] = x_ref[0, :, off:off + L]
        patch = patch_ref[...]

    acc = jnp.dot(w_ref[...], patch, preferred_element_type=jnp.float32)
    acc = acc + b_ref[...]                              # (Cout, 1) lane-broadcast
    o_ref[...] = acc[None].astype(o_ref.dtype)


def _rfb_tail_kernel(x0_ref, x1_ref, x2_ref, x3_ref, res_ref, w_ref, b_ref,
                     o_ref, patch_ref, *, Wp, L):
    # conv_cat over the (virtual) channel concat of the 4 branch outputs,
    # fused with the conv_res residual add and the ReLU.
    # xi_ref : (1, C, N)   flattened 1-padded branch outputs, bf16
    # res_ref: (1, Cout, L) conv_res(x) (bias already added), bf16
    # w_ref  : (Cout, 9*4*C); b_ref: (Cout, 1); o_ref: (1, Cout, L)
    C = x0_ref.shape[1]
    branch_refs = (x0_ref, x1_ref, x2_ref, x3_ref)
    for ky in range(3):
        for kx in range(3):
            off = ky * Wp + kx
            for bi, xr in enumerate(branch_refs):
                r0 = (ky * 3 + kx) * 4 * C + bi * C
                patch_ref[r0:r0 + C, :] = xr[0, :, off:off + L]

    acc = jnp.dot(w_ref[...], patch_ref[...], preferred_element_type=jnp.float32)
    acc = acc + b_ref[...] + res_ref[0].astype(jnp.float32)
    o_ref[...] = jnp.maximum(acc, 0.0)[None].astype(o_ref.dtype)


# ----------------------------------------------------------------------------
# Wrappers
# ----------------------------------------------------------------------------
def _flatten_pad(x, ph, pw, extra):
    """(B,C,H,W) -> (B, C, Hp*Wp + extra) flattened zero-padded bf16 image."""
    B, C, H, W = x.shape
    xp = jnp.pad(x.astype(jnp.bfloat16), ((0, 0), (0, 0), (ph, ph), (pw, pw)))
    xp = xp.reshape(B, C, (H + 2 * ph) * (W + 2 * pw))
    if extra:
        xp = jnp.pad(xp, ((0, 0), (0, 0), (0, extra)))
    return xp


def conv2d_pallas(x, w, b, *, kh, kw, dh=1, dw=1, out_dtype=jnp.bfloat16):
    """'same' stride-1 (optionally dilated) conv, NCHW in / NCHW out."""
    B, C, H, W = x.shape
    Cout = w.shape[0]
    ph = (kh - 1) * dh // 2
    pw = (kw - 1) * dw // 2
    Hp, Wp = H + 2 * ph, W + 2 * pw
    extra = (kw - 1) * dw                   # lane tail so the last tap slice fits
    L = H * Wp                              # flattened output length (incl. pad cols)
    N = Hp * Wp + extra
    K = kh * kw * C

    xf = _flatten_pad(x, ph, pw, extra)
    w_r = jnp.transpose(w, (0, 2, 3, 1)).reshape(Cout, K).astype(jnp.bfloat16)
    b_r = b.reshape(Cout, 1).astype(jnp.float32)

    kernel = functools.partial(_conv_im2col_kernel,
                               kh=kh, kw=kw, dh=dh, dw=dw, Wp=Wp, L=L)
    out = pl.pallas_call(
        kernel,
        out_shape=jax.ShapeDtypeStruct((B, Cout, L), out_dtype),
        grid=(B,),
        in_specs=[pl.BlockSpec((1, C, N), lambda i: (i, 0, 0)),
                  pl.BlockSpec((Cout, K), lambda i: (0, 0)),
                  pl.BlockSpec((Cout, 1), lambda i: (0, 0))],
        out_specs=pl.BlockSpec((1, Cout, L), lambda i: (i, 0, 0)),
        scratch_shapes=[pltpu.VMEM((K, L), jnp.bfloat16)],
        compiler_params=pltpu.CompilerParams(dimension_semantics=("parallel",)),
    )(xf, w_r, b_r)

    out = out.reshape(B, Cout, H, Wp)
    if pw:
        out = out[:, :, :, :W]              # drop the padded garbage columns
    return out


def rfb_tail_pallas(branches, res, w_cat, b_cat, out_dtype=jnp.float32):
    """relu(conv_cat(concat(branches)) + res), concat done virtually in VMEM."""
    B, C, H, W = branches[0].shape
    Cout = w_cat.shape[0]
    Hp, Wp = H + 2, W + 2
    extra = 2
    L = H * Wp
    N = Hp * Wp + extra
    K = 9 * 4 * C

    xs = [_flatten_pad(xb, 1, 1, extra) for xb in branches]
    # res in the same flattened (h*Wp + w) indexing as the conv output.
    res_f = jnp.pad(res.astype(jnp.bfloat16),
                    ((0, 0), (0, 0), (0, 0), (0, Wp - W))).reshape(B, Cout, L)

    w_r = jnp.transpose(w_cat, (0, 2, 3, 1)).reshape(Cout, K).astype(jnp.bfloat16)
    b_r = b_cat.reshape(Cout, 1).astype(jnp.float32)

    kernel = functools.partial(_rfb_tail_kernel, Wp=Wp, L=L)
    out = pl.pallas_call(
        kernel,
        out_shape=jax.ShapeDtypeStruct((B, Cout, L), out_dtype),
        grid=(B,),
        in_specs=[pl.BlockSpec((1, C, N), lambda i: (i, 0, 0))] * 4
                 + [pl.BlockSpec((1, Cout, L), lambda i: (i, 0, 0)),
                    pl.BlockSpec((Cout, K), lambda i: (0, 0)),
                    pl.BlockSpec((Cout, 1), lambda i: (0, 0))],
        out_specs=pl.BlockSpec((1, Cout, L), lambda i: (i, 0, 0)),
        scratch_shapes=[pltpu.VMEM((K, L), jnp.bfloat16)],
        compiler_params=pltpu.CompilerParams(dimension_semantics=("parallel",)),
    )(*xs, res_f, w_r, b_r)

    return out.reshape(B, Cout, H, Wp)[:, :, :, :W]


# ----------------------------------------------------------------------------
# Parameter init (matches __init__: weight std=0.01, bias=0)
# ----------------------------------------------------------------------------
def init_params(key, in_channel, out_channel):
    C = out_channel
    shapes = {
        "b0_0": (C, in_channel, 1, 1),
        "b1_0": (C, in_channel, 1, 1), "b1_1": (C, C, 1, 3),
        "b1_2": (C, C, 3, 1), "b1_3": (C, C, 3, 3),
        "b2_0": (C, in_channel, 1, 1), "b2_1": (C, C, 1, 5),
        "b2_2": (C, C, 5, 1), "b2_3": (C, C, 3, 3),
        "b3_0": (C, in_channel, 1, 1), "b3_1": (C, C, 1, 7),
        "b3_2": (C, C, 7, 1), "b3_3": (C, C, 3, 3),
        "conv_cat": (C, 4 * C, 3, 3),
        "conv_res": (C, in_channel, 1, 1),
    }
    params = {}
    for name, shp in shapes.items():
        key, sub = jax.random.split(key)
        w = 0.01 * jax.random.normal(sub, shp, dtype=jnp.float32)
        b = jnp.zeros((shp[0],), dtype=jnp.float32)
        params[name] = (w, b)
    return params


# ----------------------------------------------------------------------------
# Forward pass (NCHW in / NCHW out)
# ----------------------------------------------------------------------------
def rfb_forward(params, x):
    C = params["conv_res"][0].shape[0]

    # Fused first layer: the five 1x1 convs that all read x (branch heads +
    # conv_res) as one stacked matmul -> x read from HBM once.
    names = ("b0_0", "b1_0", "b2_0", "b3_0", "conv_res")
    w_stack = jnp.concatenate([params[n][0] for n in names], axis=0)
    b_stack = jnp.concatenate([params[n][1] for n in names], axis=0)
    y = conv2d_pallas(x, w_stack, b_stack, kh=1, kw=1)
    y0, y1, y2, y3, res = (y[:, i * C:(i + 1) * C] for i in range(5))

    # Branch tails.
    y1 = conv2d_pallas(y1, *params["b1_1"], kh=1, kw=3)
    y1 = conv2d_pallas(y1, *params["b1_2"], kh=3, kw=1)
    y1 = conv2d_pallas(y1, *params["b1_3"], kh=3, kw=3, dh=3, dw=3)

    y2 = conv2d_pallas(y2, *params["b2_1"], kh=1, kw=5)
    y2 = conv2d_pallas(y2, *params["b2_2"], kh=5, kw=1)
    y2 = conv2d_pallas(y2, *params["b2_3"], kh=3, kw=3, dh=5, dw=5)

    y3 = conv2d_pallas(y3, *params["b3_1"], kh=1, kw=7)
    y3 = conv2d_pallas(y3, *params["b3_2"], kh=7, kw=1)
    y3 = conv2d_pallas(y3, *params["b3_3"], kh=3, kw=3, dh=7, dw=7)

    # Fused tail: conv_cat (virtual concat) + residual + ReLU.
    return rfb_tail_pallas((y0, y1, y2, y3), res, *params["conv_cat"])


# ----------------------------------------------------------------------------
# Pure-JAX reference (lax.conv) mirroring the bf16 intermediates
# ----------------------------------------------------------------------------
def _conv_ref(params, name, x, dil=(1, 1)):
    w, b = params[name]
    kh, kw = int(w.shape[2]), int(w.shape[3])
    ph = (kh - 1) * dil[0] // 2
    pw = (kw - 1) * dil[1] // 2
    y = lax.conv_general_dilated(
        x.astype(jnp.bfloat16), w.astype(jnp.bfloat16), (1, 1),
        [(ph, ph), (pw, pw)], rhs_dilation=dil,
        dimension_numbers=("NCHW", "OIHW", "NCHW"),
        preferred_element_type=jnp.float32)
    return y + b[None, :, None, None]


def rfb_forward_ref(params, x):
    cb = lambda name, xx, dil=(1, 1): _conv_ref(params, name, xx, dil).astype(jnp.bfloat16)

    x0 = cb("b0_0", x)
    x1 = cb("b1_3", cb("b1_2", cb("b1_1", cb("b1_0", x))), dil=(3, 3))
    x2 = cb("b2_3", cb("b2_2", cb("b2_1", cb("b2_0", x))), dil=(5, 5))
    x3 = cb("b3_3", cb("b3_2", cb("b3_1", cb("b3_0", x))), dil=(7, 7))
    res = cb("conv_res", x)

    xcat = _conv_ref(params, "conv_cat", jnp.concatenate([x0, x1, x2, x3], axis=1))
    return jnp.maximum(xcat + res.astype(jnp.float32), 0.0)


if __name__ == "__main__":
    key = jax.random.PRNGKey(0)
    B, Cin, Cout, H, W = 2, 8, 4, 16, 16

    kx, kp = jax.random.split(key)
    x = jax.random.normal(kx, (B, Cin, H, W), dtype=jnp.float32)
    params = init_params(kp, Cin, Cout)

    out = jax.jit(rfb_forward)(params, x)
    out = jax.block_until_ready(out)
    assert out.shape == (B, Cout, H, W), out.shape

    ref = jax.jit(rfb_forward_ref)(params, x)
    ref = jax.block_until_ready(ref)
    max_err = float(jnp.max(jnp.abs(out - ref)))
    assert jnp.allclose(out, ref, atol=1e-3, rtol=2e-2), max_err

    print("KERNEL_OK")
</pallas_src>

<mosaic_0001>
module attributes {stable_mosaic.version = 11 : i64} {
  func.func @_conv_im2col_kernel(%arg0: i32, %arg1: memref<1x8x256xbf16, #tpu.memory_space<vmem>>, %arg2: memref<20x8xbf16, #tpu.memory_space<vmem>>, %arg3: memref<20x1xf32, #tpu.memory_space<vmem>>, %arg4: memref<1x20x256xbf16, #tpu.memory_space<vmem>>, %arg5: memref<8x256xbf16, #tpu.memory_space<vmem>>) attributes {dimension_semantics = [#tpu.dimension_semantics<parallel>], iteration_bounds = array<i64: 2>, scalar_prefetch = 0 : i64, scratch_operands = 1 : i64, tpu.core_type = #tpu.core_type<tc>, window_params = [{transform_indices = @transform_0, window_bounds = array<i64: 1, 8, 256>}, {pipeline_mode = #tpu.pipeline_mode<synchronous>, transform_indices = @transform_1, window_bounds = array<i64: 20, 8>}, {pipeline_mode = #tpu.pipeline_mode<synchronous>, transform_indices = @transform_2, window_bounds = array<i64: 20, 1>}, {transform_indices = @transform_3, window_bounds = array<i64: 1, 20, 256>}]} {
    %c0 = arith.constant 0 : index
    %c0_0 = arith.constant 0 : index
    %c0_1 = arith.constant 0 : index
    %0 = vector.load %arg1[%c0, %c0_0, %c0_1] : memref<1x8x256xbf16, #tpu.memory_space<vmem>>, vector<1x8x256xbf16>
    %1 = vector.shape_cast %0 : vector<1x8x256xbf16> to vector<8x256xbf16>
    %c0_2 = arith.constant 0 : index
    %c0_3 = arith.constant 0 : index
    %2 = vector.load %arg2[%c0_2, %c0_3] : memref<20x8xbf16, #tpu.memory_space<vmem>>, vector<20x8xbf16>
    %cst = arith.constant dense<0.000000e+00> : vector<20x256xf32>
    %3 = tpu.matmul %2, %1, %cst {dimension_numbers = #tpu.dot_dimension_numbers<[1], [0], [0], [1], [0, 0, 1, 1], [], []>} : vector<20x8xbf16>, vector<8x256xbf16>, vector<20x256xf32> -> vector<20x256xf32>
    %c0_4 = arith.constant 0 : index
    %c0_5 = arith.constant 0 : index
    %4 = vector.load %arg3[%c0_4, %c0_5] : memref<20x1xf32, #tpu.memory_space<vmem>>, vector<20x1xf32>
    %5 = vector.broadcast %4 : vector<20x1xf32> to vector<20x256xf32>
    %6 = arith.addf %3, %5 : vector<20x256xf32>
    %7 = vector.shape_cast %6 : vector<20x256xf32> to vector<1x20x256xf32>
    %8 = arith.truncf %7 : vector<1x20x256xf32> to vector<1x20x256xbf16>
    %c0_6 = arith.constant 0 : index
    %c0_7 = arith.constant 0 : index
    %c0_8 = arith.constant 0 : index
    %9 = vector.load %arg4[%c0_6, %c0_7, %c0_8] : memref<1x20x256xbf16, #tpu.memory_space<vmem>>, vector<1x20x256xbf16>
    tpu.vector_store %arg4[%c0_6, %c0_7, %c0_8], %8 {strides = array<i32>} : memref<1x20x256xbf16, #tpu.memory_space<vmem>>, vector<1x20x256xbf16>,
    return
  }
  func.func @transform_0(%arg0: i32) -> (i32, i32, i32) {
    %c0_i32 = arith.constant 0 : i32
    %c0_i32_0 = arith.constant 0 : i32
    %c0_i32_1 = arith.constant 0 : i32
    return %arg0, %c0_i32, %c0_i32_0 : i32, i32, i32
  }
  func.func @transform_1(%arg0: i32) -> (i32, i32) {
    %c0_i32 = arith.constant 0 : i32
    %c0_i32_0 = arith.constant 0 : i32
    %c0_i32_1 = arith.constant 0 : i32
    return %c0_i32, %c0_i32_0 : i32, i32
  }
  func.func @transform_2(%arg0: i32) -> (i32, i32) {
    %c0_i32 = arith.constant 0 : i32
    %c0_i32_0 = arith.constant 0 : i32
    %c0_i32_1 = arith.constant 0 : i32
    return %c0_i32, %c0_i32_0 : i32, i32
  }
  func.func @transform_3(%arg0: i32) -> (i32, i32, i32) {
    %c0_i32 = arith.constant 0 : i32
    %c0_i32_0 = arith.constant 0 : i32
    %c0_i32_1 = arith.constant 0 : i32
    return %arg0, %c0_i32, %c0_i32_0 : i32, i32, i32
  }
}

module attributes {stable_mosaic.version = 11 : i64} {
  func.func @_conv_im2col_kernel(%arg0: i32, %arg1: memref<1x4x358xbf16, #tpu.memory_space<vmem>>, %arg2: memref<4x28xbf16, #tpu.memory_space<vmem>>, %arg3: memref<4x1xf32, #tpu.memory_space<vmem>>, %arg4: memref<1x4x352xbf16, #tpu.memory_space<vmem>>, %arg5: memref<28x352xbf16, #tpu.memory_space<vmem>>) attributes {dimension_semantics = [#tpu.dimension_semantics<parallel>], iteration_bounds = array<i64: 2>, scalar_prefetch = 0 : i64, scratch_operands = 1 : i64, tpu.core_type = #tpu.core_type<tc>, window_params = [{transform_indices = @transform_0, window_bounds = array<i64: 1, 4, 358>}, {pipeline_mode = #tpu.pipeline_mode<synchronous>, transform_indices = @transform_1, window_bounds = array<i64: 4, 28>}, {pipeline_mode = #tpu.pipeline_mode<synchronous>, transform_indices = @transform_2, window_bounds = array<i64: 4, 1>}, {transform_indices = @transform_3, window_bounds = array<i64: 1, 4, 352>}]} {
    %c0 = arith.constant 0 : index
    %c0_0 = arith.constant 0 : index
    %c0_1 = arith.constant 0 : index
    %0 = vector.load %arg1[%c0, %c0_0, %c0_1] : memref<1x4x358xbf16, #tpu.memory_space<vmem>>, vector<1x4x352xbf16>
    %1 = vector.shape_cast %0 : vector<1x4x352xbf16> to vector<4x352xbf16>
    %c0_2 = arith.constant 0 : index
    %c0_3 = arith.constant 0 : index
    %2 = vector.load %arg5[%c0_2, %c0_3] : memref<28x352xbf16, #tpu.memory_space<vmem>>, vector<4x352xbf16>
    tpu.vector_store %arg5[%c0_2, %c0_3], %1 {strides = array<i32>} : memref<28x352xbf16, #tpu.memory_space<vmem>>, vector<4x352xbf16>,
    %c0_4 = arith.constant 0 : index
    %c0_5 = arith.constant 0 : index
    %c1 = arith.constant 1 : index
    %3 = vector.load %arg1[%c0_4, %c0_5, %c1] : memref<1x4x358xbf16, #tpu.memory_space<vmem>>, vector<1x4x352xbf16>
    %4 = vector.shape_cast %3 : vector<1x4x352xbf16> to vector<4x352xbf16>
    %c4 = arith.constant 4 : index
    %c0_6 = arith.constant 0 : index
    %5 = vector.load %arg5[%c4, %c0_6] : memref<28x352xbf16, #tpu.memory_space<vmem>>, vector<4x352xbf16>
    tpu.vector_store %arg5[%c4, %c0_6], %4 {strides = array<i32>} : memref<28x352xbf16, #tpu.memory_space<vmem>>, vector<4x352xbf16>,
    %c0_7 = arith.constant 0 : index
    %c0_8 = arith.constant 0 : index
    %c2 = arith.constant 2 : index
    %6 = vector.load %arg1[%c0_7, %c0_8, %c2] : memref<1x4x358xbf16, #tpu.memory_space<vmem>>, vector<1x4x352xbf16>
    %7 = vector.shape_cast %6 : vector<1x4x352xbf16> to vector<4x352xbf16>
    %c8 = arith.constant 8 : index
    %c0_9 = arith.constant 0 : index
    %8 = vector.load %arg5[%c8, %c0_9] : memref<28x352xbf16, #tpu.memory_space<vmem>>, vector<4x352xbf16>
    tpu.vector_store %arg5[%c8, %c0_9], %7 {strides = array<i32>} : memref<28x352xbf16, #tpu.memory_space<vmem>>, vector<4x352xbf16>,
    %c0_10 = arith.constant 0 : index
    %c0_11 = arith.constant 0 : index
    %c3 = arith.constant 3 : index
    %9 = vector.load %arg1[%c0_10, %c0_11, %c3] : memref<1x4x358xbf16, #tpu.memory_space<vmem>>, vector<1x4x352xbf16>
    %10 = vector.shape_cast %9 : vector<1x4x352xbf16> to vector<4x352xbf16>
    %c12 = arith.constant 12 : index
    %c0_12 = arith.constant 0 : index
    %11 = vector.load %arg5[%c12, %c0_12] : memref<28x352xbf16, #tpu.memory_space<vmem>>, vector<4x352xbf16>
    tpu.vector_store %arg5[%c12, %c0_12], %10 {strides = array<i32>} : memref<28x352xbf16, #tpu.memory_space<vmem>>, vector<4x352xbf16>,
    %c0_13 = arith.constant 0 : index
    %c0_14 = arith.constant 0 : index
    %c4_15 = arith.constant 4 : index
    %12 = vector.load %arg1[%c0_13, %c0_14, %c4_15] : memref<1x4x358xbf16, #tpu.memory_space<vmem>>, vector<1x4x352xbf16>
    %13 = vector.shape_cast %12 : vector<1x4x352xbf16> to vector<4x352xbf16>
    %c16 = arith.constant 16 : index
    %c0_16 = arith.constant 0 : index
    %14 = vector.load %arg5[%c16, %c0_16] : memref<28x352xbf16, #tpu.memory_space<vmem>>, vector<4x352xbf16>
    tpu.vector_store %arg5[%c16, %c0_16], %13 {strides = array<i32>} : memref<28x352xbf16, #tpu.memory_space<vmem>>, vector<4x352xbf16>,
    %c0_17 = arith.constant 0 : index
    %c0_18 = arith.constant 0 : index
    %c5 = arith.constant 5 : index
    %15 = vector.load %arg1[%c0_17, %c0_18, %c5] : memref<1x4x358xbf16, #tpu.memory_space<vmem>>, vector<1x4x352xbf16>
    %16 = vector.shape_cast %15 : vector<1x4x352xbf16> to vector<4x352xbf16>
    %c20 = arith.constant 20 : index
    %c0_19 = arith.constant 0 : index
    %17 = vector.load %arg5[%c20, %c0_19] : memref<28x352xbf16, #tpu.memory_space<vmem>>, vector<4x352xbf16>
    tpu.vector_store %arg5[%c20, %c0_19], %16 {strides = array<i32>} : memref<28x352xbf16, #tpu.memory_space<vmem>>, vector<4x352xbf16>,
    %c0_20 = arith.constant 0 : index
    %c0_21 = arith.constant 0 : index
    %c6 = arith.constant 6 : index
    %18 = vector.load %arg1[%c0_20, %c0_21, %c6] : memref<1x4x358xbf16, #tpu.memory_space<vmem>>, vector<1x4x352xbf16>
    %19 = vector.shape_cast %18 : vector<1x4x352xbf16> to vector<4x352xbf16>
    %c24 = arith.constant 24 : index
    %c0_22 = arith.constant 0 : index
    %20 = vector.load %arg5[%c24, %c0_22] : memref<28x352xbf16, #tpu.memory_space<vmem>>, vector<4x352xbf16>
    tpu.vector_store %arg5[%c24, %c0_22], %19 {strides = array<i32>} : memref<28x352xbf16, #tpu.memory_space<vmem>>, vector<4x352xbf16>,
    %c0_23 = arith.constant 0 : index
    %c0_24 = arith.constant 0 : index
    %21 = vector.load %arg5[%c0_23, %c0_24] : memref<28x352xbf16, #tpu.memory_space<vmem>>, vector<28x352xbf16>
    %c0_25 = arith.constant 0 : index
    %c0_26 = arith.constant 0 : index
    %22 = vector.load %arg2[%c0_25, %c0_26] : memref<4x28xbf16, #tpu.memory_space<vmem>>, vector<4x28xbf16>
    %cst = arith.constant dense<0.000000e+00> : vector<4x352xf32>
    %23 = tpu.matmul %22, %21, %cst {dimension_numbers = #tpu.dot_dimension_numbers<[1], [0], [0], [1], [0, 0, 1, 1], [], []>} : vector<4x28xbf16>, vector<28x352xbf16>, vector<4x352xf32> -> vector<4x352xf32>
    %c0_27 = arith.constant 0 : index
    %c0_28 = arith.constant 0 : index
    %24 = vector.load %arg3[%c0_27, %c0_28] : memref<4x1xf32, #tpu.memory_space<vmem>>, vector<4x1xf32>
    %25 = vector.broadcast %24 : vector<4x1xf32> to vector<4x352xf32>
    %26 = arith.addf %23, %25 : vector<4x352xf32>
    %27 = vector.shape_cast %26 : vector<4x352xf32> to vector<1x4x352xf32>
    %28 = arith.truncf %27 : vector<1x4x352xf32> to vector<1x4x352xbf16>
    %c0_29 = arith.constant 0 : index
    %c0_30 = arith.constant 0 : index
    %c0_31 = arith.constant 0 : index
    %29 = vector.load %arg4[%c0_29, %c0_30, %c0_31] : memref<1x4x352xbf16, #tpu.memory_space<vmem>>, vector<1x4x352xbf16>
    tpu.vector_store %arg4[%c0_29, %c0_30, %c0_31], %28 {strides = array<i32>} : memref<1x4x352xbf16, #tpu.memory_space<vmem>>, vector<1x4x352xbf16>,
    return
  }
  func.func @transform_0(%arg0: i32) -> (i32, i32, i32) {
    %c0_i32 = arith.constant 0 : i32
    %c0_i32_0 = arith.constant 0 : i32
    %c0_i32_1 = arith.constant 0 : i32
    return %arg0, %c0_i32, %c0_i32_0 : i32, i32, i32
  }
  func.func @transform_1(%arg0: i32) -> (i32, i32) {
    %c0_i32 = arith.constant 0 : i32
    %c0_i32_0 = arith.constant 0 : i32
    %c0_i32_1 = arith.constant 0 : i32
    return %c0_i32, %c0_i32_0 : i32, i32
  }
  func.func @transform_2(%arg0: i32) -> (i32, i32) {
    %c0_i32 = arith.constant 0 : i32
    %c0_i32_0 = arith.constant 0 : i32
    %c0_i32_1 = arith.constant 0 : i32
    return %c0_i32, %c0_i32_0 : i32, i32
  }
  func.func @transform_3(%arg0: i32) -> (i32, i32, i32) {
    %c0_i32 = arith.constant 0 : i32
    %c0_i32_0 = arith.constant 0 : i32
    %c0_i32_1 = arith.constant 0 : i32
    return %arg0, %c0_i32, %c0_i32_0 : i32, i32, i32
  }
}

module attributes {stable_mosaic.version = 11 : i64} {
  func.func @_conv_im2col_kernel(%arg0: i32, %arg1: memref<1x4x352xbf16, #tpu.memory_space<vmem>>, %arg2: memref<4x28xbf16, #tpu.memory_space<vmem>>, %arg3: memref<4x1xf32, #tpu.memory_space<vmem>>, %arg4: memref<1x4x256xbf16, #tpu.memory_space<vmem>>, %arg5: memref<28x256xbf16, #tpu.memory_space<vmem>>) attributes {dimension_semantics = [#tpu.dimension_semantics<parallel>], iteration_bounds = array<i64: 2>, scalar_prefetch = 0 : i64, scratch_operands = 1 : i64, tpu.core_type = #tpu.core_type<tc>, window_params = [{transform_indices = @transform_0, window_bounds = array<i64: 1, 4, 352>}, {pipeline_mode = #tpu.pipeline_mode<synchronous>, transform_indices = @transform_1, window_bounds = array<i64: 4, 28>}, {pipeline_mode = #tpu.pipeline_mode<synchronous>, transform_indices = @transform_2, window_bounds = array<i64: 4, 1>}, {transform_indices = @transform_3, window_bounds = array<i64: 1, 4, 256>}]} {
    %c0 = arith.constant 0 : index
    %c0_0 = arith.constant 0 : index
    %c0_1 = arith.constant 0 : index
    %0 = vector.load %arg1[%c0, %c0_0, %c0_1] : memref<1x4x352xbf16, #tpu.memory_space<vmem>>, vector<1x4x256xbf16>
    %1 = vector.shape_cast %0 : vector<1x4x256xbf16> to vector<4x256xbf16>
    %c0_2 = arith.constant 0 : index
    %c0_3 = arith.constant 0 : index
    %2 = vector.load %arg5[%c0_2, %c0_3] : memref<28x256xbf16, #tpu.memory_space<vmem>>, vector<4x256xbf16>
    tpu.vector_store %arg5[%c0_2, %c0_3], %1 {strides = array<i32>} : memref<28x256xbf16, #tpu.memory_space<vmem>>, vector<4x256xbf16>,
    %c0_4 = arith.constant 0 : index
    %c0_5 = arith.constant 0 : index
    %c16 = arith.constant 16 : index
    %3 = vector.load %arg1[%c0_4, %c0_5, %c16] : memref<1x4x352xbf16, #tpu.memory_space<vmem>>, vector<1x4x256xbf16>
    %4 = vector.shape_cast %3 : vector<1x4x256xbf16> to vector<4x256xbf16>
    %c4 = arith.constant 4 : index
    %c0_6 = arith.constant 0 : index
    %5 = vector.load %arg5[%c4, %c0_6] : memref<28x256xbf16, #tpu.memory_space<vmem>>, vector<4x256xbf16>
    tpu.vector_store %arg5[%c4, %c0_6], %4 {strides = array<i32>} : memref<28x256xbf16, #tpu.memory_space<vmem>>, vector<4x256xbf16>,
    %c0_7 = arith.constant 0 : index
    %c0_8 = arith.constant 0 : index
    %c32 = arith.constant 32 : index
    %6 = vector.load %arg1[%c0_7, %c0_8, %c32] : memref<1x4x352xbf16, #tpu.memory_space<vmem>>, vector<1x4x256xbf16>
    %7 = vector.shape_cast %6 : vector<1x4x256xbf16> to vector<4x256xbf16>
    %c8 = arith.constant 8 : index
    %c0_9 = arith.constant 0 : index
    %8 = vector.load %arg5[%c8, %c0_9] : memref<28x256xbf16, #tpu.memory_space<vmem>>, vector<4x256xbf16>
    tpu.vector_store %arg5[%c8, %c0_9], %7 {strides = array<i32>} : memref<28x256xbf16, #tpu.memory_space<vmem>>, vector<4x256xbf16>,
    %c0_10 = arith.constant 0 : index
    %c0_11 = arith.constant 0 : index
    %c48 = arith.constant 48 : index
    %9 = vector.load %arg1[%c0_10, %c0_11, %c48] : memref<1x4x352xbf16, #tpu.memory_space<vmem>>, vector<1x4x256xbf16>
    %10 = vector.shape_cast %9 : vector<1x4x256xbf16> to vector<4x256xbf16>
    %c12 = arith.constant 12 : index
    %c0_12 = arith.constant 0 : index
    %11 = vector.load %arg5[%c12, %c0_12] : memref<28x256xbf16, #tpu.memory_space<vmem>>, vector<4x256xbf16>
    tpu.vector_store %arg5[%c12, %c0_12], %10 {strides = array<i32>} : memref<28x256xbf16, #tpu.memory_space<vmem>>, vector<4x256xbf16>,
    %c0_13 = arith.constant 0 : index
    %c0_14 = arith.constant 0 : index
    %c64 = arith.constant 64 : index
    %12 = vector.load %arg1[%c0_13, %c0_14, %c64] : memref<1x4x352xbf16, #tpu.memory_space<vmem>>, vector<1x4x256xbf16>
    %13 = vector.shape_cast %12 : vector<1x4x256xbf16> to vector<4x256xbf16>
    %c16_15 = arith.constant 16 : index
    %c0_16 = arith.constant 0 : index
    %14 = vector.load %arg5[%c16_15, %c0_16] : memref<28x256xbf16, #tpu.memory_space<vmem>>, vector<4x256xbf16>
    tpu.vector_store %arg5[%c16_15, %c0_16], %13 {strides = array<i32>} : memref<28x256xbf16, #tpu.memory_space<vmem>>, vector<4x256xbf16>,
    %c0_17 = arith.constant 0 : index
    %c0_18 = arith.constant 0 : index
    %c80 = arith.constant 80 : index
    %15 = vector.load %arg1[%c0_17, %c0_18, %c80] : memref<1x4x352xbf16, #tpu.memory_space<vmem>>, vector<1x4x256xbf16>
    %16 = vector.shape_cast %15 : vector<1x4x256xbf16> to vector<4x256xbf16>
    %c20 = arith.constant 20 : index
    %c0_19 = arith.constant 0 : index
    %17 = vector.load %arg5[%c20, %c0_19] : memref<28x256xbf16, #tpu.memory_space<vmem>>, vector<4x256xbf16>
    tpu.vector_store %arg5[%c20, %c0_19], %16 {strides = array<i32>} : memref<28x256xbf16, #tpu.memory_space<vmem>>, vector<4x256xbf16>,
    %c0_20 = arith.constant 0 : index
    %c0_21 = arith.constant 0 : index
    %c96 = arith.constant 96 : index
    %18 = vector.load %arg1[%c0_20, %c0_21, %c96] : memref<1x4x352xbf16, #tpu.memory_space<vmem>>, vector<1x4x256xbf16>
    %19 = vector.shape_cast %18 : vector<1x4x256xbf16> to vector<4x256xbf16>
    %c24 = arith.constant 24 : index
    %c0_22 = arith.constant 0 : index
    %20 = vector.load %arg5[%c24, %c0_22] : memref<28x256xbf16, #tpu.memory_space<vmem>>, vector<4x256xbf16>
    tpu.vector_store %arg5[%c24, %c0_22], %19 {strides = array<i32>} : memref<28x256xbf16, #tpu.memory_space<vmem>>, vector<4x256xbf16>,
    %c0_23 = arith.constant 0 : index
    %c0_24 = arith.constant 0 : index
    %21 = vector.load %arg5[%c0_23, %c0_24] : memref<28x256xbf16, #tpu.memory_space<vmem>>, vector<28x256xbf16>
    %c0_25 = arith.constant 0 : index
    %c0_26 = arith.constant 0 : index
    %22 = vector.load %arg2[%c0_25, %c0_26] : memref<4x28xbf16, #tpu.memory_space<vmem>>, vector<4x28xbf16>
    %cst = arith.constant dense<0.000000e+00> : vector<4x256xf32>
    %23 = tpu.matmul %22, %21, %cst {dimension_numbers = #tpu.dot_dimension_numbers<[1], [0], [0], [1], [0, 0, 1, 1], [], []>} : vector<4x28xbf16>, vector<28x256xbf16>, vector<4x256xf32> -> vector<4x256xf32>
    %c0_27 = arith.constant 0 : index
    %c0_28 = arith.constant 0 : index
    %24 = vector.load %arg3[%c0_27, %c0_28] : memref<4x1xf32, #tpu.memory_space<vmem>>, vector<4x1xf32>
    %25 = vector.broadcast %24 : vector<4x1xf32> to vector<4x256xf32>
    %26 = arith.addf %23, %25 : vector<4x256xf32>
    %27 = vector.shape_cast %26 : vector<4x256xf32> to vector<1x4x256xf32>
    %28 = arith.truncf %27 : vector<1x4x256xf32> to vector<1x4x256xbf16>
    %c0_29 = arith.constant 0 : index
    %c0_30 = arith.constant 0 : index
    %c0_31 = arith.constant 0 : index
    %29 = vector.load %arg4[%c0_29, %c0_30, %c0_31] : memref<1x4x256xbf16, #tpu.memory_space<vmem>>, vector<1x4x256xbf16>
    tpu.vector_store %arg4[%c0_29, %c0_30, %c0_31], %28 {strides = array<i32>} : memref<1x4x256xbf16, #tpu.memory_space<vmem>>, vector<1x4x256xbf16>,
    return
  }
  func.func @transform_0(%arg0: i32) -> (i32, i32, i32) {
    %c0_i32 = arith.constant 0 : i32
    %c0_i32_0 = arith.constant 0 : i32
    %c0_i32_1 = arith.constant 0 : i32
    return %arg0, %c0_i32, %c0_i32_0 : i32, i32, i32
  }
  func.func @transform_1(%arg0: i32) -> (i32, i32) {
    %c0_i32 = arith.constant 0 : i32
    %c0_i32_0 = arith.constant 0 : i32
    %c0_i32_1 = arith.constant 0 : i32
    return %c0_i32, %c0_i32_0 : i32, i32
  }
  func.func @transform_2(%arg0: i32) -> (i32, i32) {
    %c0_i32 = arith.constant 0 : i32
    %c0_i32_0 = arith.constant 0 : i32
    %c0_i32_1 = arith.constant 0 : i32
    return %c0_i32, %c0_i32_0 : i32, i32
  }
  func.func @transform_3(%arg0: i32) -> (i32, i32, i32) {
    %c0_i32 = arith.constant 0 : i32
    %c0_i32_0 = arith.constant 0 : i32
    %c0_i32_1 = arith.constant 0 : i32
    return %arg0, %c0_i32, %c0_i32_0 : i32, i32, i32
  }
}

module attributes {stable_mosaic.version = 11 : i64} {
  func.func @_conv_im2col_kernel(%arg0: i32, %arg1: memref<1x4x914xbf16, #tpu.memory_space<vmem>>, %arg2: memref<4x36xbf16, #tpu.memory_space<vmem>>, %arg3: memref<4x1xf32, #tpu.memory_space<vmem>>, %arg4: memref<1x4x480xbf16, #tpu.memory_space<vmem>>, %arg5: memref<36x480xbf16, #tpu.memory_space<vmem>>) attributes {dimension_semantics = [#tpu.dimension_semantics<parallel>], iteration_bounds = array<i64: 2>, scalar_prefetch = 0 : i64, scratch_operands = 1 : i64, tpu.core_type = #tpu.core_type<tc>, window_params = [{transform_indices = @transform_0, window_bounds = array<i64: 1, 4, 914>}, {pipeline_mode = #tpu.pipeline_mode<synchronous>, transform_indices = @transform_1, window_bounds = array<i64: 4, 36>}, {pipeline_mode = #tpu.pipeline_mode<synchronous>, transform_indices = @transform_2, window_bounds = array<i64: 4, 1>}, {transform_indices = @transform_3, window_bounds = array<i64: 1, 4, 480>}]} {
    %c0 = arith.constant 0 : index
    %c0_0 = arith.constant 0 : index
    %c0_1 = arith.constant 0 : index
    %0 = vector.load %arg1[%c0, %c0_0, %c0_1] : memref<1x4x914xbf16, #tpu.memory_space<vmem>>, vector<1x4x480xbf16>
    %1 = vector.shape_cast %0 : vector<1x4x480xbf16> to vector<4x480xbf16>
    %c0_2 = arith.constant 0 : index
    %c0_3 = arith.constant 0 : index
    %2 = vector.load %arg5[%c0_2, %c0_3] : memref<36x480xbf16, #tpu.memory_space<vmem>>, vector<4x480xbf16>
    tpu.vector_store %arg5[%c0_2, %c0_3], %1 {strides = array<i32>} : memref<36x480xbf16, #tpu.memory_space<vmem>>, vector<4x480xbf16>,
    %c0_4 = arith.constant 0 : index
    %c0_5 = arith.constant 0 : index
    %c7 = arith.constant 7 : index
    %3 = vector.load %arg1[%c0_4, %c0_5, %c7] : memref<1x4x914xbf16, #tpu.memory_space<vmem>>, vector<1x4x480xbf16>
    %4 = vector.shape_cast %3 : vector<1x4x480xbf16> to vector<4x480xbf16>
    %c4 = arith.constant 4 : index
    %c0_6 = arith.constant 0 : index
    %5 = vector.load %arg5[%c4, %c0_6] : memref<36x480xbf16, #tpu.memory_space<vmem>>, vector<4x480xbf16>
    tpu.vector_store %arg5[%c4, %c0_6], %4 {strides = array<i32>} : memref<36x480xbf16, #tpu.memory_space<vmem>>, vector<4x480xbf16>,
    %c0_7 = arith.constant 0 : index
    %c0_8 = arith.constant 0 : index
    %c14 = arith.constant 14 : index
    %6 = vector.load %arg1[%c0_7, %c0_8, %c14] : memref<1x4x914xbf16, #tpu.memory_space<vmem>>, vector<1x4x480xbf16>
    %7 = vector.shape_cast %6 : vector<1x4x480xbf16> to vector<4x480xbf16>
    %c8 = arith.constant 8 : index
    %c0_9 = arith.constant 0 : index
    %8 = vector.load %arg5[%c8, %c0_9] : memref<36x480xbf16, #tpu.memory_space<vmem>>, vector<4x480xbf16>
    tpu.vector_store %arg5[%c8, %c0_9], %7 {strides = array<i32>} : memref<36x480xbf16, #tpu.memory_space<vmem>>, vector<4x480xbf16>,
    %c0_10 = arith.constant 0 : index
    %c0_11 = arith.constant 0 : index
    %c210 = arith.constant 210 : index
    %9 = vector.load %arg1[%c0_10, %c0_11, %c210] : memref<1x4x914xbf16, #tpu.memory_space<vmem>>, vector<1x4x480xbf16>
    %10 = vector.shape_cast %9 : vector<1x4x480xbf16> to vector<4x480xbf16>
    %c12 = arith.constant 12 : index
    %c0_12 = arith.constant 0 : index
    %11 = vector.load %arg5[%c12, %c0_12] : memref<36x480xbf16, #tpu.memory_space<vmem>>, vector<4x480xbf16>
    tpu.vector_store %arg5[%c12, %c0_12], %10 {strides = array<i32>} : memref<36x480xbf16, #tpu.memory_space<vmem>>, vector<4x480xbf16>,
    %c0_13 = arith.constant 0 : index
    %c0_14 = arith.constant 0 : index
    %c217 = arith.constant 217 : index
    %12 = vector.load %arg1[%c0_13, %c0_14, %c217] : memref<1x4x914xbf16, #tpu.memory_space<vmem>>, vector<1x4x480xbf16>
    %13 = vector.shape_cast %12 : vector<1x4x480xbf16> to vector<4x480xbf16>
    %c16 = arith.constant 16 : index
    %c0_15 = arith.constant 0 : index
    %14 = vector.load %arg5[%c16, %c0_15] : memref<36x480xbf16, #tpu.memory_space<vmem>>, vector<4x480xbf16>
    tpu.vector_store %arg5[%c16, %c0_15], %13 {strides = array<i32>} : memref<36x480xbf16, #tpu.memory_space<vmem>>, vector<4x480xbf16>,
    %c0_16 = arith.constant 0 : index
    %c0_17 = arith.constant 0 : index
    %c224 = arith.constant 224 : index
    %15 = vector.load %arg1[%c0_16, %c0_17, %c224] : memref<1x4x914xbf16, #tpu.memory_space<vmem>>, vector<1x4x480xbf16>
    %16 = vector.shape_cast %15 : vector<1x4x480xbf16> to vector<4x480xbf16>
    %c20 = arith.constant 20 : index
    %c0_18 = arith.constant 0 : index
    %17 = vector.load %arg5[%c20, %c0_18] : memref<36x480xbf16, #tpu.memory_space<vmem>>, vector<4x480xbf16>
    tpu.vector_store %arg5[%c20, %c0_18], %16 {strides = array<i32>} : memref<36x480xbf16, #tpu.memory_space<vmem>>, vector<4x480xbf16>,
    %c0_19 = arith.constant 0 : index
    %c0_20 = arith.constant 0 : index
    %c420 = arith.constant 420 : index
    %18 = vector.load %arg1[%c0_19, %c0_20, %c420] : memref<1x4x914xbf16, #tpu.memory_space<vmem>>, vector<1x4x480xbf16>
    %19 = vector.shape_cast %18 : vector<1x4x480xbf16> to vector<4x480xbf16>
    %c24 = arith.constant 24 : index
    %c0_21 = arith.constant 0 : index
    %20 = vector.load %arg5[%c24, %c0_21] : memref<36x480xbf16, #tpu.memory_space<vmem>>, vector<4x480xbf16>
    tpu.vector_store %arg5[%c24, %c0_21], %19 {strides = array<i32>} : memref<36x480xbf16, #tpu.memory_space<vmem>>, vector<4x480xbf16>,
    %c0_22 = arith.constant 0 : index
    %c0_23 = arith.constant 0 : index
    %c427 = arith.constant 427 : index
    %21 = vector.load %arg1[%c0_22, %c0_23, %c427] : memref<1x4x914xbf16, #tpu.memory_space<vmem>>, vector<1x4x480xbf16>
    %22 = vector.shape_cast %21 : vector<1x4x480xbf16> to vector<4x480xbf16>
    %c28 = arith.constant 28 : index
    %c0_24 = arith.constant 0 : index
    %23 = vector.load %arg5[%c28, %c0_24] : memref<36x480xbf16, #tpu.memory_space<vmem>>, vector<4x480xbf16>
    tpu.vector_store %arg5[%c28, %c0_24], %22 {strides = array<i32>} : memref<36x480xbf16, #tpu.memory_space<vmem>>, vector<4x480xbf16>,
    %c0_25 = arith.constant 0 : index
    %c0_26 = arith.constant 0 : index
    %c434 = arith.constant 434 : index
    %24 = vector.load %arg1[%c0_25, %c0_26, %c434] : memref<1x4x914xbf16, #tpu.memory_space<vmem>>, vector<1x4x480xbf16>
    %25 = vector.shape_cast %24 : vector<1x4x480xbf16> to vector<4x480xbf16>
    %c32 = arith.constant 32 : index
    %c0_27 = arith.constant 0 : index
    %26 = vector.load %arg5[%c32, %c0_27] : memref<36x480xbf16, #tpu.memory_space<vmem>>, vector<4x480xbf16>
    tpu.vector_store %arg5[%c32, %c0_27], %25 {strides = array<i32>} : memref<36x480xbf16, #tpu.memory_space<vmem>>, vector<4x480xbf16>,
    %c0_28 = arith.constant 0 : index
    %c0_29 = arith.constant 0 : index
    %27 = vector.load %arg5[%c0_28, %c0_29] : memref<36x480xbf16, #tpu.memory_space<vmem>>, vector<36x480xbf16>
    %c0_30 = arith.constant 0 : index
    %c0_31 = arith.constant 0 : index
    %28 = vector.load %arg2[%c0_30, %c0_31] : memref<4x36xbf16, #tpu.memory_space<vmem>>, vector<4x36xbf16>
    %cst = arith.constant dense<0.000000e+00> : vector<4x480xf32>
    %29 = tpu.matmul %28, %27, %cst {dimension_numbers = #tpu.dot_dimension_numbers<[1], [0], [0], [1], [0, 0, 1, 1], [], []>} : vector<4x36xbf16>, vector<36x480xbf16>, vector<4x480xf32> -> vector<4x480xf32>
    %c0_32 = arith.constant 0 : index
    %c0_33 = arith.constant 0 : index
    %30 = vector.load %arg3[%c0_32, %c0_33] : memref<4x1xf32, #tpu.memory_space<vmem>>, vector<4x1xf32>
    %31 = vector.broadcast %30 : vector<4x1xf32> to vector<4x480xf32>
    %32 = arith.addf %29, %31 : vector<4x480xf32>
    %33 = vector.shape_cast %32 : vector<4x480xf32> to vector<1x4x480xf32>
    %34 = arith.truncf %33 : vector<1x4x480xf32> to vector<1x4x480xbf16>
    %c0_34 = arith.constant 0 : index
    %c0_35 = arith.constant 0 : index
    %c0_36 = arith.constant 0 : index
    %35 = vector.load %arg4[%c0_34, %c0_35, %c0_36] : memref<1x4x480xbf16, #tpu.memory_space<vmem>>, vector<1x4x480xbf16>
    tpu.vector_store %arg4[%c0_34, %c0_35, %c0_36], %34 {strides = array<i32>} : memref<1x4x480xbf16, #tpu.memory_space<vmem>>, vector<1x4x480xbf16>,
    return
  }
  func.func @transform_0(%arg0: i32) -> (i32, i32, i32) {
    %c0_i32 = arith.constant 0 : i32
    %c0_i32_0 = arith.constant 0 : i32
    %c0_i32_1 = arith.constant 0 : i32
    return %arg0, %c0_i32, %c0_i32_0 : i32, i32, i32
  }
  func.func @transform_1(%arg0: i32) -> (i32, i32) {
    %c0_i32 = arith.constant 0 : i32
    %c0_i32_0 = arith.constant 0 : i32
    %c0_i32_1 = arith.constant 0 : i32
    return %c0_i32, %c0_i32_0 : i32, i32
  }
  func.func @transform_2(%arg0: i32) -> (i32, i32) {
    %c0_i32 = arith.constant 0 : i32
    %c0_i32_0 = arith.constant 0 : i32
    %c0_i32_1 = arith.constant 0 : i32
    return %c0_i32, %c0_i32_0 : i32, i32
  }
  func.func @transform_3(%arg0: i32) -> (i32, i32, i32) {
    %c0_i32 = arith.constant 0 : i32
    %c0_i32_0 = arith.constant 0 : i32
    %c0_i32_1 = arith.constant 0 : i32
    return %arg0, %c0_i32, %c0_i32_0 : i32, i32, i32
  }
}

module attributes {stable_mosaic.version = 11 : i64} {
  func.func @_conv_im2col_kernel(%arg0: i32, %arg1: memref<1x4x324xbf16, #tpu.memory_space<vmem>>, %arg2: memref<4x20xbf16, #tpu.memory_space<vmem>>, %arg3: memref<4x1xf32, #tpu.memory_space<vmem>>, %arg4: memref<1x4x320xbf16, #tpu.memory_space<vmem>>, %arg5: memref<20x320xbf16, #tpu.memory_space<vmem>>) attributes {dimension_semantics = [#tpu.dimension_semantics<parallel>], iteration_bounds = array<i64: 2>, scalar_prefetch = 0 : i64, scratch_operands = 1 : i64, tpu.core_type = #tpu.core_type<tc>, window_params = [{transform_indices = @transform_0, window_bounds = array<i64: 1, 4, 324>}, {pipeline_mode = #tpu.pipeline_mode<synchronous>, transform_indices = @transform_1, window_bounds = array<i64: 4, 20>}, {pipeline_mode = #tpu.pipeline_mode<synchronous>, transform_indices = @transform_2, window_bounds = array<i64: 4, 1>}, {transform_indices = @transform_3, window_bounds = array<i64: 1, 4, 320>}]} {
    %c0 = arith.constant 0 : index
    %c0_0 = arith.constant 0 : index
    %c0_1 = arith.constant 0 : index
    %0 = vector.load %arg1[%c0, %c0_0, %c0_1] : memref<1x4x324xbf16, #tpu.memory_space<vmem>>, vector<1x4x320xbf16>
    %1 = vector.shape_cast %0 : vector<1x4x320xbf16> to vector<4x320xbf16>
    %c0_2 = arith.constant 0 : index
    %c0_3 = arith.constant 0 : index
    %2 = vector.load %arg5[%c0_2, %c0_3] : memref<20x320xbf16, #tpu.memory_space<vmem>>, vector<4x320xbf16>
    tpu.vector_store %arg5[%c0_2, %c0_3], %1 {strides = array<i32>} : memref<20x320xbf16, #tpu.memory_space<vmem>>, vector<4x320xbf16>,
    %c0_4 = arith.constant 0 : index
    %c0_5 = arith.constant 0 : index
    %c1 = arith.constant 1 : index
    %3 = vector.load %arg1[%c0_4, %c0_5, %c1] : memref<1x4x324xbf16, #tpu.memory_space<vmem>>, vector<1x4x320xbf16>
    %4 = vector.shape_cast %3 : vector<1x4x320xbf16> to vector<4x320xbf16>
    %c4 = arith.constant 4 : index
    %c0_6 = arith.constant 0 : index
    %5 = vector.load %arg5[%c4, %c0_6] : memref<20x320xbf16, #tpu.memory_space<vmem>>, vector<4x320xbf16>
    tpu.vector_store %arg5[%c4, %c0_6], %4 {strides = array<i32>} : memref<20x320xbf16, #tpu.memory_space<vmem>>, vector<4x320xbf16>,
    %c0_7 = arith.constant 0 : index
    %c0_8 = arith.constant 0 : index
    %c2 = arith.constant 2 : index
    %6 = vector.load %arg1[%c0_7, %c0_8, %c2] : memref<1x4x324xbf16, #tpu.memory_space<vmem>>, vector<1x4x320xbf16>
    %7 = vector.shape_cast %6 : vector<1x4x320xbf16> to vector<4x320xbf16>
    %c8 = arith.constant 8 : index
    %c0_9 = arith.constant 0 : index
    %8 = vector.load %arg5[%c8, %c0_9] : memref<20x320xbf16, #tpu.memory_space<vmem>>, vector<4x320xbf16>
    tpu.vector_store %arg5[%c8, %c0_9], %7 {strides = array<i32>} : memref<20x320xbf16, #tpu.memory_space<vmem>>, vector<4x320xbf16>,
    %c0_10 = arith.constant 0 : index
    %c0_11 = arith.constant 0 : index
    %c3 = arith.constant 3 : index
    %9 = vector.load %arg1[%c0_10, %c0_11, %c3] : memref<1x4x324xbf16, #tpu.memory_space<vmem>>, vector<1x4x320xbf16>
    %10 = vector.shape_cast %9 : vector<1x4x320xbf16> to vector<4x320xbf16>
    %c12 = arith.constant 12 : index
    %c0_12 = arith.constant 0 : index
    %11 = vector.load %arg5[%c12, %c0_12] : memref<20x320xbf16, #tpu.memory_space<vmem>>, vector<4x320xbf16>
    tpu.vector_store %arg5[%c12, %c0_12], %10 {strides = array<i32>} : memref<20x320xbf16, #tpu.memory_space<vmem>>, vector<4x320xbf16>,
    %c0_13 = arith.constant 0 : index
    %c0_14 = arith.constant 0 : index
    %c4_15 = arith.constant 4 : index
    %12 = vector.load %arg1[%c0_13, %c0_14, %c4_15] : memref<1x4x324xbf16, #tpu.memory_space<vmem>>, vector<1x4x320xbf16>
    %13 = vector.shape_cast %12 : vector<1x4x320xbf16> to vector<4x320xbf16>
    %c16 = arith.constant 16 : index
    %c0_16 = arith.constant 0 : index
    %14 = vector.load %arg5[%c16, %c0_16] : memref<20x320xbf16, #tpu.memory_space<vmem>>, vector<4x320xbf16>
    tpu.vector_store %arg5[%c16, %c0_16], %13 {strides = array<i32>} : memref<20x320xbf16, #tpu.memory_space<vmem>>, vector<4x320xbf16>,
    %c0_17 = arith.constant 0 : index
    %c0_18 = arith.constant 0 : index
    %15 = vector.load %arg5[%c0_17, %c0_18] : memref<20x320xbf16, #tpu.memory_space<vmem>>, vector<20x320xbf16>
    %c0_19 = arith.constant 0 : index
    %c0_20 = arith.constant 0 : index
    %16 = vector.load %arg2[%c0_19, %c0_20] : memref<4x20xbf16, #tpu.memory_space<vmem>>, vector<4x20xbf16>
    %cst = arith.constant dense<0.000000e+00> : vector<4x320xf32>
    %17 = tpu.matmul %16, %15, %cst {dimension_numbers = #tpu.dot_dimension_numbers<[1], [0], [0], [1], [0, 0, 1, 1], [], []>} : vector<4x20xbf16>, vector<20x320xbf16>, vector<4x320xf32> -> vector<4x320xf32>
    %c0_21 = arith.constant 0 : index
    %c0_22 = arith.constant 0 : index
    %18 = vector.load %arg3[%c0_21, %c0_22] : memref<4x1xf32, #tpu.memory_space<vmem>>, vector<4x1xf32>
    %19 = vector.broadcast %18 : vector<4x1xf32> to vector<4x320xf32>
    %20 = arith.addf %17, %19 : vector<4x320xf32>
    %21 = vector.shape_cast %20 : vector<4x320xf32> to vector<1x4x320xf32>
    %22 = arith.truncf %21 : vector<1x4x320xf32> to vector<1x4x320xbf16>
    %c0_23 = arith.constant 0 : index
    %c0_24 = arith.constant 0 : index
    %c0_25 = arith.constant 0 : index
    %23 = vector.load %arg4[%c0_23, %c0_24, %c0_25] : memref<1x4x320xbf16, #tpu.memory_space<vmem>>, vector<1x4x320xbf16>
    tpu.vector_store %arg4[%c0_23, %c0_24, %c0_25], %22 {strides = array<i32>} : memref<1x4x320xbf16, #tpu.memory_space<vmem>>, vector<1x4x320xbf16>,
    return
  }
  func.func @transform_0(%arg0: i32) -> (i32, i32, i32) {
    %c0_i32 = arith.constant 0 : i32
    %c0_i32_0 = arith.constant 0 : i32
    %c0_i32_1 = arith.constant 0 : i32
    return %arg0, %c0_i32, %c0_i32_0 : i32, i32, i32
  }
  func.func @transform_1(%arg0: i32) -> (i32, i32) {
    %c0_i32 = arith.constant 0 : i32
    %c0_i32_0 = arith.constant 0 : i32
    %c0_i32_1 = arith.constant 0 : i32
    return %c0_i32, %c0_i32_0 : i32, i32
  }
  func.func @transform_2(%arg0: i32) -> (i32, i32) {
    %c0_i32 = arith.constant 0 : i32
    %c0_i32_0 = arith.constant 0 : i32
    %c0_i32_1 = arith.constant 0 : i32
    return %c0_i32, %c0_i32_0 : i32, i32
  }
  func.func @transform_3(%arg0: i32) -> (i32, i32, i32) {
    %c0_i32 = arith.constant 0 : i32
    %c0_i32_0 = arith.constant 0 : i32
    %c0_i32_1 = arith.constant 0 : i32
    return %arg0, %c0_i32, %c0_i32_0 : i32, i32, i32
  }
}

module attributes {stable_mosaic.version = 11 : i64} {
  func.func @_conv_im2col_kernel(%arg0: i32, %arg1: memref<1x4x320xbf16, #tpu.memory_space<vmem>>, %arg2: memref<4x20xbf16, #tpu.memory_space<vmem>>, %arg3: memref<4x1xf32, #tpu.memory_space<vmem>>, %arg4: memref<1x4x256xbf16, #tpu.memory_space<vmem>>, %arg5: memref<20x256xbf16, #tpu.memory_space<vmem>>) attributes {dimension_semantics = [#tpu.dimension_semantics<parallel>], iteration_bounds = array<i64: 2>, scalar_prefetch = 0 : i64, scratch_operands = 1 : i64, tpu.core_type = #tpu.core_type<tc>, window_params = [{transform_indices = @transform_0, window_bounds = array<i64: 1, 4, 320>}, {pipeline_mode = #tpu.pipeline_mode<synchronous>, transform_indices = @transform_1, window_bounds = array<i64: 4, 20>}, {pipeline_mode = #tpu.pipeline_mode<synchronous>, transform_indices = @transform_2, window_bounds = array<i64: 4, 1>}, {transform_indices = @transform_3, window_bounds = array<i64: 1, 4, 256>}]} {
    %c0 = arith.constant 0 : index
    %c0_0 = arith.constant 0 : index
    %c0_1 = arith.constant 0 : index
    %0 = vector.load %arg1[%c0, %c0_0, %c0_1] : memref<1x4x320xbf16, #tpu.memory_space<vmem>>, vector<1x4x256xbf16>
    %1 = vector.shape_cast %0 : vector<1x4x256xbf16> to vector<4x256xbf16>
    %c0_2 = arith.constant 0 : index
    %c0_3 = arith.constant 0 : index
    %2 = vector.load %arg5[%c0_2, %c0_3] : memref<20x256xbf16, #tpu.memory_space<vmem>>, vector<4x256xbf16>
    tpu.vector_store %arg5[%c0_2, %c0_3], %1 {strides = array<i32>} : memref<20x256xbf16, #tpu.memory_space<vmem>>, vector<4x256xbf16>,
    %c0_4 = arith.constant 0 : index
    %c0_5 = arith.constant 0 : index
    %c16 = arith.constant 16 : index
    %3 = vector.load %arg1[%c0_4, %c0_5, %c16] : memref<1x4x320xbf16, #tpu.memory_space<vmem>>, vector<1x4x256xbf16>
    %4 = vector.shape_cast %3 : vector<1x4x256xbf16> to vector<4x256xbf16>
    %c4 = arith.constant 4 : index
    %c0_6 = arith.constant 0 : index
    %5 = vector.load %arg5[%c4, %c0_6] : memref<20x256xbf16, #tpu.memory_space<vmem>>, vector<4x256xbf16>
    tpu.vector_store %arg5[%c4, %c0_6], %4 {strides = array<i32>} : memref<20x256xbf16, #tpu.memory_space<vmem>>, vector<4x256xbf16>,
    %c0_7 = arith.constant 0 : index
    %c0_8 = arith.constant 0 : index
    %c32 = arith.constant 32 : index
    %6 = vector.load %arg1[%c0_7, %c0_8, %c32] : memref<1x4x320xbf16, #tpu.memory_space<vmem>>, vector<1x4x256xbf16>
    %7 = vector.shape_cast %6 : vector<1x4x256xbf16> to vector<4x256xbf16>
    %c8 = arith.constant 8 : index
    %c0_9 = arith.constant 0 : index
    %8 = vector.load %arg5[%c8, %c0_9] : memref<20x256xbf16, #tpu.memory_space<vmem>>, vector<4x256xbf16>
    tpu.vector_store %arg5[%c8, %c0_9], %7 {strides = array<i32>} : memref<20x256xbf16, #tpu.memory_space<vmem>>, vector<4x256xbf16>,
    %c0_10 = arith.constant 0 : index
    %c0_11 = arith.constant 0 : index
    %c48 = arith.constant 48 : index
    %9 = vector.load %arg1[%c0_10, %c0_11, %c48] : memref<1x4x320xbf16, #tpu.memory_space<vmem>>, vector<1x4x256xbf16>
    %10 = vector.shape_cast %9 : vector<1x4x256xbf16> to vector<4x256xbf16>
    %c12 = arith.constant 12 : index
    %c0_12 = arith.constant 0 : index
    %11 = vector.load %arg5[%c12, %c0_12] : memref<20x256xbf16, #tpu.memory_space<vmem>>, vector<4x256xbf16>
    tpu.vector_store %arg5[%c12, %c0_12], %10 {strides = array<i32>} : memref<20x256xbf16, #tpu.memory_space<vmem>>, vector<4x256xbf16>,
    %c0_13 = arith.constant 0 : index
    %c0_14 = arith.constant 0 : index
    %c64 = arith.constant 64 : index
    %12 = vector.load %arg1[%c0_13, %c0_14, %c64] : memref<1x4x320xbf16, #tpu.memory_space<vmem>>, vector<1x4x256xbf16>
    %13 = vector.shape_cast %12 : vector<1x4x256xbf16> to vector<4x256xbf16>
    %c16_15 = arith.constant 16 : index
    %c0_16 = arith.constant 0 : index
    %14 = vector.load %arg5[%c16_15, %c0_16] : memref<20x256xbf16, #tpu.memory_space<vmem>>, vector<4x256xbf16>
    tpu.vector_store %arg5[%c16_15, %c0_16], %13 {strides = array<i32>} : memref<20x256xbf16, #tpu.memory_space<vmem>>, vector<4x256xbf16>,
    %c0_17 = arith.constant 0 : index
    %c0_18 = arith.constant 0 : index
    %15 = vector.load %arg5[%c0_17, %c0_18] : memref<20x256xbf16, #tpu.memory_space<vmem>>, vector<20x256xbf16>
    %c0_19 = arith.constant 0 : index
    %c0_20 = arith.constant 0 : index
    %16 = vector.load %arg2[%c0_19, %c0_20] : memref<4x20xbf16, #tpu.memory_space<vmem>>, vector<4x20xbf16>
    %cst = arith.constant dense<0.000000e+00> : vector<4x256xf32>
    %17 = tpu.matmul %16, %15, %cst {dimension_numbers = #tpu.dot_dimension_numbers<[1], [0], [0], [1], [0, 0, 1, 1], [], []>} : vector<4x20xbf16>, vector<20x256xbf16>, vector<4x256xf32> -> vector<4x256xf32>
    %c0_21 = arith.constant 0 : index
    %c0_22 = arith.constant 0 : index
    %18 = vector.load %arg3[%c0_21, %c0_22] : memref<4x1xf32, #tpu.memory_space<vmem>>, vector<4x1xf32>
    %19 = vector.broadcast %18 : vector<4x1xf32> to vector<4x256xf32>
    %20 = arith.addf %17, %19 : vector<4x256xf32>
    %21 = vector.shape_cast %20 : vector<4x256xf32> to vector<1x4x256xf32>
    %22 = arith.truncf %21 : vector<1x4x256xf32> to vector<1x4x256xbf16>
    %c0_23 = arith.constant 0 : index
    %c0_24 = arith.constant 0 : index
    %c0_25 = arith.constant 0 : index
    %23 = vector.load %arg4[%c0_23, %c0_24, %c0_25] : memref<1x4x256xbf16, #tpu.memory_space<vmem>>, vector<1x4x256xbf16>
    tpu.vector_store %arg4[%c0_23, %c0_24, %c0_25], %22 {strides = array<i32>} : memref<1x4x256xbf16, #tpu.memory_space<vmem>>, vector<1x4x256xbf16>,
    return
  }
  func.func @transform_0(%arg0: i32) -> (i32, i32, i32) {
    %c0_i32 = arith.constant 0 : i32
    %c0_i32_0 = arith.constant 0 : i32
    %c0_i32_1 = arith.constant 0 : i32
    return %arg0, %c0_i32, %c0_i32_0 : i32, i32, i32
  }
  func.func @transform_1(%arg0: i32) -> (i32, i32) {
    %c0_i32 = arith.constant 0 : i32
    %c0_i32_0 = arith.constant 0 : i32
    %c0_i32_1 = arith.constant 0 : i32
    return %c0_i32, %c0_i32_0 : i32, i32
  }
  func.func @transform_2(%arg0: i32) -> (i32, i32) {
    %c0_i32 = arith.constant 0 : i32
    %c0_i32_0 = arith.constant 0 : i32
    %c0_i32_1 = arith.constant 0 : i32
    return %c0_i32, %c0_i32_0 : i32, i32
  }
  func.func @transform_3(%arg0: i32) -> (i32, i32, i32) {
    %c0_i32 = arith.constant 0 : i32
    %c0_i32_0 = arith.constant 0 : i32
    %c0_i32_1 = arith.constant 0 : i32
    return %arg0, %c0_i32, %c0_i32_0 : i32, i32, i32
  }
}

module attributes {stable_mosaic.version = 11 : i64} {
  func.func @_conv_im2col_kernel(%arg0: i32, %arg1: memref<1x4x686xbf16, #tpu.memory_space<vmem>>, %arg2: memref<4x36xbf16, #tpu.memory_space<vmem>>, %arg3: memref<4x1xf32, #tpu.memory_space<vmem>>, %arg4: memref<1x4x416xbf16, #tpu.memory_space<vmem>>, %arg5: memref<36x416xbf16, #tpu.memory_space<vmem>>) attributes {dimension_semantics = [#tpu.dimension_semantics<parallel>], iteration_bounds = array<i64: 2>, scalar_prefetch = 0 : i64, scratch_operands = 1 : i64, tpu.core_type = #tpu.core_type<tc>, window_params = [{transform_indices = @transform_0, window_bounds = array<i64: 1, 4, 686>}, {pipeline_mode = #tpu.pipeline_mode<synchronous>, transform_indices = @transform_1, window_bounds = array<i64: 4, 36>}, {pipeline_mode = #tpu.pipeline_mode<synchronous>, transform_indices = @transform_2, window_bounds = array<i64: 4, 1>}, {transform_indices = @transform_3, window_bounds = array<i64: 1, 4, 416>}]} {
    %c0 = arith.constant 0 : index
    %c0_0 = arith.constant 0 : index
    %c0_1 = arith.constant 0 : index
    %0 = vector.load %arg1[%c0, %c0_0, %c0_1] : memref<1x4x686xbf16, #tpu.memory_space<vmem>>, vector<1x4x416xbf16>
    %1 = vector.shape_cast %0 : vector<1x4x416xbf16> to vector<4x416xbf16>
    %c0_2 = arith.constant 0 : index
    %c0_3 = arith.constant 0 : index
    %2 = vector.load %arg5[%c0_2, %c0_3] : memref<36x416xbf16, #tpu.memory_space<vmem>>, vector<4x416xbf16>
    tpu.vector_store %arg5[%c0_2, %c0_3], %1 {strides = array<i32>} : memref<36x416xbf16, #tpu.memory_space<vmem>>, vector<4x416xbf16>,
    %c0_4 = arith.constant 0 : index
    %c0_5 = arith.constant 0 : index
    %c5 = arith.constant 5 : index
    %3 = vector.load %arg1[%c0_4, %c0_5, %c5] : memref<1x4x686xbf16, #tpu.memory_space<vmem>>, vector<1x4x416xbf16>
    %4 = vector.shape_cast %3 : vector<1x4x416xbf16> to vector<4x416xbf16>
    %c4 = arith.constant 4 : index
    %c0_6 = arith.constant 0 : index
    %5 = vector.load %arg5[%c4, %c0_6] : memref<36x416xbf16, #tpu.memory_space<vmem>>, vector<4x416xbf16>
    tpu.vector_store %arg5[%c4, %c0_6], %4 {strides = array<i32>} : memref<36x416xbf16, #tpu.memory_space<vmem>>, vector<4x416xbf16>,
    %c0_7 = arith.constant 0 : index
    %c0_8 = arith.constant 0 : index
    %c10 = arith.constant 10 : index
    %6 = vector.load %arg1[%c0_7, %c0_8, %c10] : memref<1x4x686xbf16, #tpu.memory_space<vmem>>, vector<1x4x416xbf16>
    %7 = vector.shape_cast %6 : vector<1x4x416xbf16> to vector<4x416xbf16>
    %c8 = arith.constant 8 : index
    %c0_9 = arith.constant 0 : index
    %8 = vector.load %arg5[%c8, %c0_9] : memref<36x416xbf16, #tpu.memory_space<vmem>>, vector<4x416xbf16>
    tpu.vector_store %arg5[%c8, %c0_9], %7 {strides = array<i32>} : memref<36x416xbf16, #tpu.memory_space<vmem>>, vector<4x416xbf16>,
    %c0_10 = arith.constant 0 : index
    %c0_11 = arith.constant 0 : index
    %c130 = arith.constant 130 : index
    %9 = vector.load %arg1[%c0_10, %c0_11, %c130] : memref<1x4x686xbf16, #tpu.memory_space<vmem>>, vector<1x4x416xbf16>
    %10 = vector.shape_cast %9 : vector<1x4x416xbf16> to vector<4x416xbf16>
    %c12 = arith.constant 12 : index
    %c0_12 = arith.constant 0 : index
    %11 = vector.load %arg5[%c12, %c0_12] : memref<36x416xbf16, #tpu.memory_space<vmem>>, vector<4x416xbf16>
    tpu.vector_store %arg5[%c12, %c0_12], %10 {strides = array<i32>} : memref<36x416xbf16, #tpu.memory_space<vmem>>, vector<4x416xbf16>,
    %c0_13 = arith.constant 0 : index
    %c0_14 = arith.constant 0 : index
    %c135 = arith.constant 135 : index
    %12 = vector.load %arg1[%c0_13, %c0_14, %c135] : memref<1x4x686xbf16, #tpu.memory_space<vmem>>, vector<1x4x416xbf16>
    %13 = vector.shape_cast %12 : vector<1x4x416xbf16> to vector<4x416xbf16>
    %c16 = arith.constant 16 : index
    %c0_15 = arith.constant 0 : index
    %14 = vector.load %arg5[%c16, %c0_15] : memref<36x416xbf16, #tpu.memory_space<vmem>>, vector<4x416xbf16>
    tpu.vector_store %arg5[%c16, %c0_15], %13 {strides = array<i32>} : memref<36x416xbf16, #tpu.memory_space<vmem>>, vector<4x416xbf16>,
    %c0_16 = arith.constant 0 : index
    %c0_17 = arith.constant 0 : index
    %c140 = arith.constant 140 : index
    %15 = vector.load %arg1[%c0_16, %c0_17, %c140] : memref<1x4x686xbf16, #tpu.memory_space<vmem>>, vector<1x4x416xbf16>
    %16 = vector.shape_cast %15 : vector<1x4x416xbf16> to vector<4x416xbf16>
    %c20 = arith.constant 20 : index
    %c0_18 = arith.constant 0 : index
    %17 = vector.load %arg5[%c20, %c0_18] : memref<36x416xbf16, #tpu.memory_space<vmem>>, vector<4x416xbf16>
    tpu.vector_store %arg5[%c20, %c0_18], %16 {strides = array<i32>} : memref<36x416xbf16, #tpu.memory_space<vmem>>, vector<4x416xbf16>,
    %c0_19 = arith.constant 0 : index
    %c0_20 = arith.constant 0 : index
    %c260 = arith.constant 260 : index
    %18 = vector.load %arg1[%c0_19, %c0_20, %c260] : memref<1x4x686xbf16, #tpu.memory_space<vmem>>, vector<1x4x416xbf16>
    %19 = vector.shape_cast %18 : vector<1x4x416xbf16> to vector<4x416xbf16>
    %c24 = arith.constant 24 : index
    %c0_21 = arith.constant 0 : index
    %20 = vector.load %arg5[%c24, %c0_21] : memref<36x416xbf16, #tpu.memory_space<vmem>>, vector<4x416xbf16>
    tpu.vector_store %arg5[%c24, %c0_21], %19 {strides = array<i32>} : memref<36x416xbf16, #tpu.memory_space<vmem>>, vector<4x416xbf16>,
    %c0_22 = arith.constant 0 : index
    %c0_23 = arith.constant 0 : index
    %c265 = arith.constant 265 : index
    %21 = vector.load %arg1[%c0_22, %c0_23, %c265] : memref<1x4x686xbf16, #tpu.memory_space<vmem>>, vector<1x4x416xbf16>
    %22 = vector.shape_cast %21 : vector<1x4x416xbf16> to vector<4x416xbf16>
    %c28 = arith.constant 28 : index
    %c0_24 = arith.constant 0 : index
    %23 = vector.load %arg5[%c28, %c0_24] : memref<36x416xbf16, #tpu.memory_space<vmem>>, vector<4x416xbf16>
    tpu.vector_store %arg5[%c28, %c0_24], %22 {strides = array<i32>} : memref<36x416xbf16, #tpu.memory_space<vmem>>, vector<4x416xbf16>,
    %c0_25 = arith.constant 0 : index
    %c0_26 = arith.constant 0 : index
    %c270 = arith.constant 270 : index
    %24 = vector.load %arg1[%c0_25, %c0_26, %c270] : memref<1x4x686xbf16, #tpu.memory_space<vmem>>, vector<1x4x416xbf16>
    %25 = vector.shape_cast %24 : vector<1x4x416xbf16> to vector<4x416xbf16>
    %c32 = arith.constant 32 : index
    %c0_27 = arith.constant 0 : index
    %26 = vector.load %arg5[%c32, %c0_27] : memref<36x416xbf16, #tpu.memory_space<vmem>>, vector<4x416xbf16>
    tpu.vector_store %arg5[%c32, %c0_27], %25 {strides = array<i32>} : memref<36x416xbf16, #tpu.memory_space<vmem>>, vector<4x416xbf16>,
    %c0_28 = arith.constant 0 : index
    %c0_29 = arith.constant 0 : index
    %27 = vector.load %arg5[%c0_28, %c0_29] : memref<36x416xbf16, #tpu.memory_space<vmem>>, vector<36x416xbf16>
    %c0_30 = arith.constant 0 : index
    %c0_31 = arith.constant 0 : index
    %28 = vector.load %arg2[%c0_30, %c0_31] : memref<4x36xbf16, #tpu.memory_space<vmem>>, vector<4x36xbf16>
    %cst = arith.constant dense<0.000000e+00> : vector<4x416xf32>
    %29 = tpu.matmul %28, %27, %cst {dimension_numbers = #tpu.dot_dimension_numbers<[1], [0], [0], [1], [0, 0, 1, 1], [], []>} : vector<4x36xbf16>, vector<36x416xbf16>, vector<4x416xf32> -> vector<4x416xf32>
    %c0_32 = arith.constant 0 : index
    %c0_33 = arith.constant 0 : index
    %30 = vector.load %arg3[%c0_32, %c0_33] : memref<4x1xf32, #tpu.memory_space<vmem>>, vector<4x1xf32>
    %31 = vector.broadcast %30 : vector<4x1xf32> to vector<4x416xf32>
    %32 = arith.addf %29, %31 : vector<4x416xf32>
    %33 = vector.shape_cast %32 : vector<4x416xf32> to vector<1x4x416xf32>
    %34 = arith.truncf %33 : vector<1x4x416xf32> to vector<1x4x416xbf16>
    %c0_34 = arith.constant 0 : index
    %c0_35 = arith.constant 0 : index
    %c0_36 = arith.constant 0 : index
    %35 = vector.load %arg4[%c0_34, %c0_35, %c0_36] : memref<1x4x416xbf16, #tpu.memory_space<vmem>>, vector<1x4x416xbf16>
    tpu.vector_store %arg4[%c0_34, %c0_35, %c0_36], %34 {strides = array<i32>} : memref<1x4x416xbf16, #tpu.memory_space<vmem>>, vector<1x4x416xbf16>,
    return
  }
  func.func @transform_0(%arg0: i32) -> (i32, i32, i32) {
    %c0_i32 = arith.constant 0 : i32
    %c0_i32_0 = arith.constant 0 : i32
    %c0_i32_1 = arith.constant 0 : i32
    return %arg0, %c0_i32, %c0_i32_0 : i32, i32, i32
  }
  func.func @transform_1(%arg0: i32) -> (i32, i32) {
    %c0_i32 = arith.constant 0 : i32
    %c0_i32_0 = arith.constant 0 : i32
    %c0_i32_1 = arith.constant 0 : i32
    return %c0_i32, %c0_i32_0 : i32, i32
  }
  func.func @transform_2(%arg0: i32) -> (i32, i32) {
    %c0_i32 = arith.constant 0 : i32
    %c0_i32_0 = arith.constant 0 : i32
    %c0_i32_1 = arith.constant 0 : i32
    return %c0_i32, %c0_i32_0 : i32, i32
  }
  func.func @transform_3(%arg0: i32) -> (i32, i32, i32) {
    %c0_i32 = arith.constant 0 : i32
    %c0_i32_0 = arith.constant 0 : i32
    %c0_i32_1 = arith.constant 0 : i32
    return %arg0, %c0_i32, %c0_i32_0 : i32, i32, i32
  }
}

module attributes {stable_mosaic.version = 11 : i64} {
  func.func @_conv_im2col_kernel(%arg0: i32, %arg1: memref<1x4x290xbf16, #tpu.memory_space<vmem>>, %arg2: memref<4x12xbf16, #tpu.memory_space<vmem>>, %arg3: memref<4x1xf32, #tpu.memory_space<vmem>>, %arg4: memref<1x4x288xbf16, #tpu.memory_space<vmem>>, %arg5: memref<12x288xbf16, #tpu.memory_space<vmem>>) attributes {dimension_semantics = [#tpu.dimension_semantics<parallel>], iteration_bounds = array<i64: 2>, scalar_prefetch = 0 : i64, scratch_operands = 1 : i64, tpu.core_type = #tpu.core_type<tc>, window_params = [{transform_indices = @transform_0, window_bounds = array<i64: 1, 4, 290>}, {pipeline_mode = #tpu.pipeline_mode<synchronous>, transform_indices = @transform_1, window_bounds = array<i64: 4, 12>}, {pipeline_mode = #tpu.pipeline_mode<synchronous>, transform_indices = @transform_2, window_bounds = array<i64: 4, 1>}, {transform_indices = @transform_3, window_bounds = array<i64: 1, 4, 288>}]} {
    %c0 = arith.constant 0 : index
    %c0_0 = arith.constant 0 : index
    %c0_1 = arith.constant 0 : index
    %0 = vector.load %arg1[%c0, %c0_0, %c0_1] : memref<1x4x290xbf16, #tpu.memory_space<vmem>>, vector<1x4x288xbf16>
    %1 = vector.shape_cast %0 : vector<1x4x288xbf16> to vector<4x288xbf16>
    %c0_2 = arith.constant 0 : index
    %c0_3 = arith.constant 0 : index
    %2 = vector.load %arg5[%c0_2, %c0_3] : memref<12x288xbf16, #tpu.memory_space<vmem>>, vector<4x288xbf16>
    tpu.vector_store %arg5[%c0_2, %c0_3], %1 {strides = array<i32>} : memref<12x288xbf16, #tpu.memory_space<vmem>>, vector<4x288xbf16>,
    %c0_4 = arith.constant 0 : index
    %c0_5 = arith.constant 0 : index
    %c1 = arith.constant 1 : index
    %3 = vector.load %arg1[%c0_4, %c0_5, %c1] : memref<1x4x290xbf16, #tpu.memory_space<vmem>>, vector<1x4x288xbf16>
    %4 = vector.shape_cast %3 : vector<1x4x288xbf16> to vector<4x288xbf16>
    %c4 = arith.constant 4 : index
    %c0_6 = arith.constant 0 : index
    %5 = vector.load %arg5[%c4, %c0_6] : memref<12x288xbf16, #tpu.memory_space<vmem>>, vector<4x288xbf16>
    tpu.vector_store %arg5[%c4, %c0_6], %4 {strides = array<i32>} : memref<12x288xbf16, #tpu.memory_space<vmem>>, vector<4x288xbf16>,
    %c0_7 = arith.constant 0 : index
    %c0_8 = arith.constant 0 : index
    %c2 = arith.constant 2 : index
    %6 = vector.load %arg1[%c0_7, %c0_8, %c2] : memref<1x4x290xbf16, #tpu.memory_space<vmem>>, vector<1x4x288xbf16>
    %7 = vector.shape_cast %6 : vector<1x4x288xbf16> to vector<4x288xbf16>
    %c8 = arith.constant 8 : index
    %c0_9 = arith.constant 0 : index
    %8 = vector.load %arg5[%c8, %c0_9] : memref<12x288xbf16, #tpu.memory_space<vmem>>, vector<4x288xbf16>
    tpu.vector_store %arg5[%c8, %c0_9], %7 {strides = array<i32>} : memref<12x288xbf16, #tpu.memory_space<vmem>>, vector<4x288xbf16>,
    %c0_10 = arith.constant 0 : index
    %c0_11 = arith.constant 0 : index
    %9 = vector.load %arg5[%c0_10, %c0_11] : memref<12x288xbf16, #tpu.memory_space<vmem>>, vector<12x288xbf16>
    %c0_12 = arith.constant 0 : index
    %c0_13 = arith.constant 0 : index
    %10 = vector.load %arg2[%c0_12, %c0_13] : memref<4x12xbf16, #tpu.memory_space<vmem>>, vector<4x12xbf16>
    %cst = arith.constant dense<0.000000e+00> : vector<4x288xf32>
    %11 = tpu.matmul %10, %9, %cst {dimension_numbers = #tpu.dot_dimension_numbers<[1], [0], [0], [1], [0, 0, 1, 1], [], []>} : vector<4x12xbf16>, vector<12x288xbf16>, vector<4x288xf32> -> vector<4x288xf32>
    %c0_14 = arith.constant 0 : index
    %c0_15 = arith.constant 0 : index
    %12 = vector.load %arg3[%c0_14, %c0_15] : memref<4x1xf32, #tpu.memory_space<vmem>>, vector<4x1xf32>
    %13 = vector.broadcast %12 : vector<4x1xf32> to vector<4x288xf32>
    %14 = arith.addf %11, %13 : vector<4x288xf32>
    %15 = vector.shape_cast %14 : vector<4x288xf32> to vector<1x4x288xf32>
    %16 = arith.truncf %15 : vector<1x4x288xf32> to vector<1x4x288xbf16>
    %c0_16 = arith.constant 0 : index
    %c0_17 = arith.constant 0 : index
    %c0_18 = arith.constant 0 : index
    %17 = vector.load %arg4[%c0_16, %c0_17, %c0_18] : memref<1x4x288xbf16, #tpu.memory_space<vmem>>, vector<1x4x288xbf16>
    tpu.vector_store %arg4[%c0_16, %c0_17, %c0_18], %16 {strides = array<i32>} : memref<1x4x288xbf16, #tpu.memory_space<vmem>>, vector<1x4x288xbf16>,
    return
  }
  func.func @transform_0(%arg0: i32) -> (i32, i32, i32) {
    %c0_i32 = arith.constant 0 : i32
    %c0_i32_0 = arith.constant 0 : i32
    %c0_i32_1 = arith.constant 0 : i32
    return %arg0, %c0_i32, %c0_i32_0 : i32, i32, i32
  }
  func.func @transform_1(%arg0: i32) -> (i32, i32) {
    %c0_i32 = arith.constant 0 : i32
    %c0_i32_0 = arith.constant 0 : i32
    %c0_i32_1 = arith.constant 0 : i32
    return %c0_i32, %c0_i32_0 : i32, i32
  }
  func.func @transform_2(%arg0: i32) -> (i32, i32) {
    %c0_i32 = arith.constant 0 : i32
    %c0_i32_0 = arith.constant 0 : i32
    %c0_i32_1 = arith.constant 0 : i32
    return %c0_i32, %c0_i32_0 : i32, i32
  }
  func.func @transform_3(%arg0: i32) -> (i32, i32, i32) {
    %c0_i32 = arith.constant 0 : i32
    %c0_i32_0 = arith.constant 0 : i32
    %c0_i32_1 = arith.constant 0 : i32
    return %arg0, %c0_i32, %c0_i32_0 : i32, i32, i32
  }
}

module attributes {stable_mosaic.version = 11 : i64} {
  func.func @_conv_im2col_kernel(%arg0: i32, %arg1: memref<1x4x288xbf16, #tpu.memory_space<vmem>>, %arg2: memref<4x12xbf16, #tpu.memory_space<vmem>>, %arg3: memref<4x1xf32, #tpu.memory_space<vmem>>, %arg4: memref<1x4x256xbf16, #tpu.memory_space<vmem>>, %arg5: memref<12x256xbf16, #tpu.memory_space<vmem>>) attributes {dimension_semantics = [#tpu.dimension_semantics<parallel>], iteration_bounds = array<i64: 2>, scalar_prefetch = 0 : i64, scratch_operands = 1 : i64, tpu.core_type = #tpu.core_type<tc>, window_params = [{transform_indices = @transform_0, window_bounds = array<i64: 1, 4, 288>}, {pipeline_mode = #tpu.pipeline_mode<synchronous>, transform_indices = @transform_1, window_bounds = array<i64: 4, 12>}, {pipeline_mode = #tpu.pipeline_mode<synchronous>, transform_indices = @transform_2, window_bounds = array<i64: 4, 1>}, {transform_indices = @transform_3, window_bounds = array<i64: 1, 4, 256>}]} {
    %c0 = arith.constant 0 : index
    %c0_0 = arith.constant 0 : index
    %c0_1 = arith.constant 0 : index
    %0 = vector.load %arg1[%c0, %c0_0, %c0_1] : memref<1x4x288xbf16, #tpu.memory_space<vmem>>, vector<1x4x256xbf16>
    %1 = vector.shape_cast %0 : vector<1x4x256xbf16> to vector<4x256xbf16>
    %c0_2 = arith.constant 0 : index
    %c0_3 = arith.constant 0 : index
    %2 = vector.load %arg5[%c0_2, %c0_3] : memref<12x256xbf16, #tpu.memory_space<vmem>>, vector<4x256xbf16>
    tpu.vector_store %arg5[%c0_2, %c0_3], %1 {strides = array<i32>} : memref<12x256xbf16, #tpu.memory_space<vmem>>, vector<4x256xbf16>,
    %c0_4 = arith.constant 0 : index
    %c0_5 = arith.constant 0 : index
    %c16 = arith.constant 16 : index
    %3 = vector.load %arg1[%c0_4, %c0_5, %c16] : memref<1x4x288xbf16, #tpu.memory_space<vmem>>, vector<1x4x256xbf16>
    %4 = vector.shape_cast %3 : vector<1x4x256xbf16> to vector<4x256xbf16>
    %c4 = arith.constant 4 : index
    %c0_6 = arith.constant 0 : index
    %5 = vector.load %arg5[%c4, %c0_6] : memref<12x256xbf16, #tpu.memory_space<vmem>>, vector<4x256xbf16>
    tpu.vector_store %arg5[%c4, %c0_6], %4 {strides = array<i32>} : memref<12x256xbf16, #tpu.memory_space<vmem>>, vector<4x256xbf16>,
    %c0_7 = arith.constant 0 : index
    %c0_8 = arith.constant 0 : index
    %c32 = arith.constant 32 : index
    %6 = vector.load %arg1[%c0_7, %c0_8, %c32] : memref<1x4x288xbf16, #tpu.memory_space<vmem>>, vector<1x4x256xbf16>
    %7 = vector.shape_cast %6 : vector<1x4x256xbf16> to vector<4x256xbf16>
    %c8 = arith.constant 8 : index
    %c0_9 = arith.constant 0 : index
    %8 = vector.load %arg5[%c8, %c0_9] : memref<12x256xbf16, #tpu.memory_space<vmem>>, vector<4x256xbf16>
    tpu.vector_store %arg5[%c8, %c0_9], %7 {strides = array<i32>} : memref<12x256xbf16, #tpu.memory_space<vmem>>, vector<4x256xbf16>,
    %c0_10 = arith.constant 0 : index
    %c0_11 = arith.constant 0 : index
    %9 = vector.load %arg5[%c0_10, %c0_11] : memref<12x256xbf16, #tpu.memory_space<vmem>>, vector<12x256xbf16>
    %c0_12 = arith.constant 0 : index
    %c0_13 = arith.constant 0 : index
    %10 = vector.load %arg2[%c0_12, %c0_13] : memref<4x12xbf16, #tpu.memory_space<vmem>>, vector<4x12xbf16>
    %cst = arith.constant dense<0.000000e+00> : vector<4x256xf32>
    %11 = tpu.matmul %10, %9, %cst {dimension_numbers = #tpu.dot_dimension_numbers<[1], [0], [0], [1], [0, 0, 1, 1], [], []>} : vector<4x12xbf16>, vector<12x256xbf16>, vector<4x256xf32> -> vector<4x256xf32>
    %c0_14 = arith.constant 0 : index
    %c0_15 = arith.constant 0 : index
    %12 = vector.load %arg3[%c0_14, %c0_15] : memref<4x1xf32, #tpu.memory_space<vmem>>, vector<4x1xf32>
    %13 = vector.broadcast %12 : vector<4x1xf32> to vector<4x256xf32>
    %14 = arith.addf %11, %13 : vector<4x256xf32>
    %15 = vector.shape_cast %14 : vector<4x256xf32> to vector<1x4x256xf32>
    %16 = arith.truncf %15 : vector<1x4x256xf32> to vector<1x4x256xbf16>
    %c0_16 = arith.constant 0 : index
    %c0_17 = arith.constant 0 : index
    %c0_18 = arith.constant 0 : index
    %17 = vector.load %arg4[%c0_16, %c0_17, %c0_18] : memref<1x4x256xbf16, #tpu.memory_space<vmem>>, vector<1x4x256xbf16>
    tpu.vector_store %arg4[%c0_16, %c0_17, %c0_18], %16 {strides = array<i32>} : memref<1x4x256xbf16, #tpu.memory_space<vmem>>, vector<1x4x256xbf16>,
    return
  }
  func.func @transform_0(%arg0: i32) -> (i32, i32, i32) {
    %c0_i32 = arith.constant 0 : i32
    %c0_i32_0 = arith.constant 0 : i32
    %c0_i32_1 = arith.constant 0 : i32
    return %arg0, %c0_i32, %c0_i32_0 : i32, i32, i32
  }
  func.func @transform_1(%arg0: i32) -> (i32, i32) {
    %c0_i32 = arith.constant 0 : i32
    %c0_i32_0 = arith.constant 0 : i32
    %c0_i32_1 = arith.constant 0 : i32
    return %c0_i32, %c0_i32_0 : i32, i32
  }
  func.func @transform_2(%arg0: i32) -> (i32, i32) {
    %c0_i32 = arith.constant 0 : i32
    %c0_i32_0 = arith.constant 0 : i32
    %c0_i32_1 = arith.constant 0 : i32
    return %c0_i32, %c0_i32_0 : i32, i32
  }
  func.func @transform_3(%arg0: i32) -> (i32, i32, i32) {
    %c0_i32 = arith.constant 0 : i32
    %c0_i32_0 = arith.constant 0 : i32
    %c0_i32_1 = arith.constant 0 : i32
    return %arg0, %c0_i32, %c0_i32_0 : i32, i32, i32
  }
}

module attributes {stable_mosaic.version = 11 : i64} {
  func.func @_conv_im2col_kernel(%arg0: i32, %arg1: memref<1x4x490xbf16, #tpu.memory_space<vmem>>, %arg2: memref<4x36xbf16, #tpu.memory_space<vmem>>, %arg3: memref<4x1xf32, #tpu.memory_space<vmem>>, %arg4: memref<1x4x352xbf16, #tpu.memory_space<vmem>>, %arg5: memref<36x352xbf16, #tpu.memory_space<vmem>>) attributes {dimension_semantics = [#tpu.dimension_semantics<parallel>], iteration_bounds = array<i64: 2>, scalar_prefetch = 0 : i64, scratch_operands = 1 : i64, tpu.core_type = #tpu.core_type<tc>, window_params = [{transform_indices = @transform_0, window_bounds = array<i64: 1, 4, 490>}, {pipeline_mode = #tpu.pipeline_mode<synchronous>, transform_indices = @transform_1, window_bounds = array<i64: 4, 36>}, {pipeline_mode = #tpu.pipeline_mode<synchronous>, transform_indices = @transform_2, window_bounds = array<i64: 4, 1>}, {transform_indices = @transform_3, window_bounds = array<i64: 1, 4, 352>}]} {
    %c0 = arith.constant 0 : index
    %c0_0 = arith.constant 0 : index
    %c0_1 = arith.constant 0 : index
    %0 = vector.load %arg1[%c0, %c0_0, %c0_1] : memref<1x4x490xbf16, #tpu.memory_space<vmem>>, vector<1x4x352xbf16>
    %1 = vector.shape_cast %0 : vector<1x4x352xbf16> to vector<4x352xbf16>
    %c0_2 = arith.constant 0 : index
    %c0_3 = arith.constant 0 : index
    %2 = vector.load %arg5[%c0_2, %c0_3] : memref<36x352xbf16, #tpu.memory_space<vmem>>, vector<4x352xbf16>
    tpu.vector_store %arg5[%c0_2, %c0_3], %1 {strides = array<i32>} : memref<36x352xbf16, #tpu.memory_space<vmem>>, vector<4x352xbf16>,
    %c0_4 = arith.constant 0 : index
    %c0_5 = arith.constant 0 : index
    %c3 = arith.constant 3 : index
    %3 = vector.load %arg1[%c0_4, %c0_5, %c3] : memref<1x4x490xbf16, #tpu.memory_space<vmem>>, vector<1x4x352xbf16>
    %4 = vector.shape_cast %3 : vector<1x4x352xbf16> to vector<4x352xbf16>
    %c4 = arith.constant 4 : index
    %c0_6 = arith.constant 0 : index
    %5 = vector.load %arg5[%c4, %c0_6] : memref<36x352xbf16, #tpu.memory_space<vmem>>, vector<4x352xbf16>
    tpu.vector_store %arg5[%c4, %c0_6], %4 {strides = array<i32>} : memref<36x352xbf16, #tpu.memory_space<vmem>>, vector<4x352xbf16>,
    %c0_7 = arith.constant 0 : index
    %c0_8 = arith.constant 0 : index
    %c6 = arith.constant 6 : index
    %6 = vector.load %arg1[%c0_7, %c0_8, %c6] : memref<1x4x490xbf16, #tpu.memory_space<vmem>>, vector<1x4x352xbf16>
    %7 = vector.shape_cast %6 : vector<1x4x352xbf16> to vector<4x352xbf16>
    %c8 = arith.constant 8 : index
    %c0_9 = arith.constant 0 : index
    %8 = vector.load %arg5[%c8, %c0_9] : memref<36x352xbf16, #tpu.memory_space<vmem>>, vector<4x352xbf16>
    tpu.vector_store %arg5[%c8, %c0_9], %7 {strides = array<i32>} : memref<36x352xbf16, #tpu.memory_space<vmem>>, vector<4x352xbf16>,
    %c0_10 = arith.constant 0 : index
    %c0_11 = arith.constant 0 : index
    %c66 = arith.constant 66 : index
    %9 = vector.load %arg1[%c0_10, %c0_11, %c66] : memref<1x4x490xbf16, #tpu.memory_space<vmem>>, vector<1x4x352xbf16>
    %10 = vector.shape_cast %9 : vector<1x4x352xbf16> to vector<4x352xbf16>
    %c12 = arith.constant 12 : index
    %c0_12 = arith.constant 0 : index
    %11 = vector.load %arg5[%c12, %c0_12] : memref<36x352xbf16, #tpu.memory_space<vmem>>, vector<4x352xbf16>
    tpu.vector_store %arg5[%c12, %c0_12], %10 {strides = array<i32>} : memref<36x352xbf16, #tpu.memory_space<vmem>>, vector<4x352xbf16>,
    %c0_13 = arith.constant 0 : index
    %c0_14 = arith.constant 0 : index
    %c69 = arith.constant 69 : index
    %12 = vector.load %arg1[%c0_13, %c0_14, %c69] : memref<1x4x490xbf16, #tpu.memory_space<vmem>>, vector<1x4x352xbf16>
    %13 = vector.shape_cast %12 : vector<1x4x352xbf16> to vector<4x352xbf16>
    %c16 = arith.constant 16 : index
    %c0_15 = arith.constant 0 : index
    %14 = vector.load %arg5[%c16, %c0_15] : memref<36x352xbf16, #tpu.memory_space<vmem>>, vector<4x352xbf16>
    tpu.vector_store %arg5[%c16, %c0_15], %13 {strides = array<i32>} : memref<36x352xbf16, #tpu.memory_space<vmem>>, vector<4x352xbf16>,
    %c0_16 = arith.constant 0 : index
    %c0_17 = arith.constant 0 : index
    %c72 = arith.constant 72 : index
    %15 = vector.load %arg1[%c0_16, %c0_17, %c72] : memref<1x4x490xbf16, #tpu.memory_space<vmem>>, vector<1x4x352xbf16>
    %16 = vector.shape_cast %15 : vector<1x4x352xbf16> to vector<4x352xbf16>
    %c20 = arith.constant 20 : index
    %c0_18 = arith.constant 0 : index
    %17 = vector.load %arg5[%c20, %c0_18] : memref<36x352xbf16, #tpu.memory_space<vmem>>, vector<4x352xbf16>
    tpu.vector_store %arg5[%c20, %c0_18], %16 {strides = array<i32>} : memref<36x352xbf16, #tpu.memory_space<vmem>>, vector<4x352xbf16>,
    %c0_19 = arith.constant 0 : index
    %c0_20 = arith.constant 0 : index
    %c132 = arith.constant 132 : index
    %18 = vector.load %arg1[%c0_19, %c0_20, %c132] : memref<1x4x490xbf16, #tpu.memory_space<vmem>>, vector<1x4x352xbf16>
    %19 = vector.shape_cast %18 : vector<1x4x352xbf16> to vector<4x352xbf16>
    %c24 = arith.constant 24 : index
    %c0_21 = arith.constant 0 : index
    %20 = vector.load %arg5[%c24, %c0_21] : memref<36x352xbf16, #tpu.memory_space<vmem>>, vector<4x352xbf16>
    tpu.vector_store %arg5[%c24, %c0_21], %19 {strides = array<i32>} : memref<36x352xbf16, #tpu.memory_space<vmem>>, vector<4x352xbf16>,
    %c0_22 = arith.constant 0 : index
    %c0_23 = arith.constant 0 : index
    %c135 = arith.constant 135 : index
    %21 = vector.load %arg1[%c0_22, %c0_23, %c135] : memref<1x4x490xbf16, #tpu.memory_space<vmem>>, vector<1x4x352xbf16>
    %22 = vector.shape_cast %21 : vector<1x4x352xbf16> to vector<4x352xbf16>
    %c28 = arith.constant 28 : index
    %c0_24 = arith.constant 0 : index
    %23 = vector.load %arg5[%c28, %c0_24] : memref<36x352xbf16, #tpu.memory_space<vmem>>, vector<4x352xbf16>
    tpu.vector_store %arg5[%c28, %c0_24], %22 {strides = array<i32>} : memref<36x352xbf16, #tpu.memory_space<vmem>>, vector<4x352xbf16>,
    %c0_25 = arith.constant 0 : index
    %c0_26 = arith.constant 0 : index
    %c138 = arith.constant 138 : index
    %24 = vector.load %arg1[%c0_25, %c0_26, %c138] : memref<1x4x490xbf16, #tpu.memory_space<vmem>>, vector<1x4x352xbf16>
    %25 = vector.shape_cast %24 : vector<1x4x352xbf16> to vector<4x352xbf16>
    %c32 = arith.constant 32 : index
    %c0_27 = arith.constant 0 : index
    %26 = vector.load %arg5[%c32, %c0_27] : memref<36x352xbf16, #tpu.memory_space<vmem>>, vector<4x352xbf16>
    tpu.vector_store %arg5[%c32, %c0_27], %25 {strides = array<i32>} : memref<36x352xbf16, #tpu.memory_space<vmem>>, vector<4x352xbf16>,
    %c0_28 = arith.constant 0 : index
    %c0_29 = arith.constant 0 : index
    %27 = vector.load %arg5[%c0_28, %c0_29] : memref<36x352xbf16, #tpu.memory_space<vmem>>, vector<36x352xbf16>
    %c0_30 = arith.constant 0 : index
    %c0_31 = arith.constant 0 : index
    %28 = vector.load %arg2[%c0_30, %c0_31] : memref<4x36xbf16, #tpu.memory_space<vmem>>, vector<4x36xbf16>
    %cst = arith.constant dense<0.000000e+00> : vector<4x352xf32>
    %29 = tpu.matmul %28, %27, %cst {dimension_numbers = #tpu.dot_dimension_numbers<[1], [0], [0], [1], [0, 0, 1, 1], [], []>} : vector<4x36xbf16>, vector<36x352xbf16>, vector<4x352xf32> -> vector<4x352xf32>
    %c0_32 = arith.constant 0 : index
    %c0_33 = arith.constant 0 : index
    %30 = vector.load %arg3[%c0_32, %c0_33] : memref<4x1xf32, #tpu.memory_space<vmem>>, vector<4x1xf32>
    %31 = vector.broadcast %30 : vector<4x1xf32> to vector<4x352xf32>
    %32 = arith.addf %29, %31 : vector<4x352xf32>
    %33 = vector.shape_cast %32 : vector<4x352xf32> to vector<1x4x352xf32>
    %34 = arith.truncf %33 : vector<1x4x352xf32> to vector<1x4x352xbf16>
    %c0_34 = arith.constant 0 : index
    %c0_35 = arith.constant 0 : index
    %c0_36 = arith.constant 0 : index
    %35 = vector.load %arg4[%c0_34, %c0_35, %c0_36] : memref<1x4x352xbf16, #tpu.memory_space<vmem>>, vector<1x4x352xbf16>
    tpu.vector_store %arg4[%c0_34, %c0_35, %c0_36], %34 {strides = array<i32>} : memref<1x4x352xbf16, #tpu.memory_space<vmem>>, vector<1x4x352xbf16>,
    return
  }
  func.func @transform_0(%arg0: i32) -> (i32, i32, i32) {
    %c0_i32 = arith.constant 0 : i32
    %c0_i32_0 = arith.constant 0 : i32
    %c0_i32_1 = arith.constant 0 : i32
    return %arg0, %c0_i32, %c0_i32_0 : i32, i32, i32
  }
  func.func @transform_1(%arg0: i32) -> (i32, i32) {
    %c0_i32 = arith.constant 0 : i32
    %c0_i32_0 = arith.constant 0 : i32
    %c0_i32_1 = arith.constant 0 : i32
    return %c0_i32, %c0_i32_0 : i32, i32
  }
  func.func @transform_2(%arg0: i32) -> (i32, i32) {
    %c0_i32 = arith.constant 0 : i32
    %c0_i32_0 = arith.constant 0 : i32
    %c0_i32_1 = arith.constant 0 : i32
    return %c0_i32, %c0_i32_0 : i32, i32
  }
  func.func @transform_3(%arg0: i32) -> (i32, i32, i32) {
    %c0_i32 = arith.constant 0 : i32
    %c0_i32_0 = arith.constant 0 : i32
    %c0_i32_1 = arith.constant 0 : i32
    return %arg0, %c0_i32, %c0_i32_0 : i32, i32, i32
  }
}

module attributes {stable_mosaic.version = 11 : i64} {
  func.func @_rfb_tail_kernel(%arg0: i32, %arg1: memref<1x4x326xbf16, #tpu.memory_space<vmem>>, %arg2: memref<1x4x326xbf16, #tpu.memory_space<vmem>>, %arg3: memref<1x4x326xbf16, #tpu.memory_space<vmem>>, %arg4: memref<1x4x326xbf16, #tpu.memory_space<vmem>>, %arg5: memref<1x4x288xbf16, #tpu.memory_space<vmem>>, %arg6: memref<4x144xbf16, #tpu.memory_space<vmem>>, %arg7: memref<4x1xf32, #tpu.memory_space<vmem>>, %arg8: memref<1x4x288xf32, #tpu.memory_space<vmem>>, %arg9: memref<144x288xbf16, #tpu.memory_space<vmem>>) attributes {dimension_semantics = [#tpu.dimension_semantics<parallel>], iteration_bounds = array<i64: 2>, scalar_prefetch = 0 : i64, scratch_operands = 1 : i64, tpu.core_type = #tpu.core_type<tc>, window_params = [{transform_indices = @transform_0, window_bounds = array<i64: 1, 4, 326>}, {transform_indices = @transform_1, window_bounds = array<i64: 1, 4, 326>}, {transform_indices = @transform_2, window_bounds = array<i64: 1, 4, 326>}, {transform_indices = @transform_3, window_bounds = array<i64: 1, 4, 326>}, {transform_indices = @transform_4, window_bounds = array<i64: 1, 4, 288>}, {pipeline_mode = #tpu.pipeline_mode<synchronous>, transform_indices = @transform_5, window_bounds = array<i64: 4, 144>}, {pipeline_mode = #tpu.pipeline_mode<synchronous>, transform_indices = @transform_6, window_bounds = array<i64: 4, 1>}, {transform_indices = @transform_7, window_bounds = array<i64: 1, 4, 288>}]} {
    %c0 = arith.constant 0 : index
    %c0_0 = arith.constant 0 : index
    %c0_1 = arith.constant 0 : index
    %0 = vector.load %arg1[%c0, %c0_0, %c0_1] : memref<1x4x326xbf16, #tpu.memory_space<vmem>>, vector<1x4x288xbf16>
    %1 = vector.shape_cast %0 : vector<1x4x288xbf16> to vector<4x288xbf16>
    %c0_2 = arith.constant 0 : index
    %c0_3 = arith.constant 0 : index
    %2 = vector.load %arg9[%c0_2, %c0_3] : memref<144x288xbf16, #tpu.memory_space<vmem>>, vector<4x288xbf16>
    tpu.vector_store %arg9[%c0_2, %c0_3], %1 {strides = array<i32>} : memref<144x288xbf16, #tpu.memory_space<vmem>>, vector<4x288xbf16>,
    %c0_4 = arith.constant 0 : index
    %c0_5 = arith.constant 0 : index
    %c0_6 = arith.constant 0 : index
    %3 = vector.load %arg2[%c0_4, %c0_5, %c0_6] : memref<1x4x326xbf16, #tpu.memory_space<vmem>>, vector<1x4x288xbf16>
    %4 = vector.shape_cast %3 : vector<1x4x288xbf16> to vector<4x288xbf16>
    %c4 = arith.constant 4 : index
    %c0_7 = arith.constant 0 : index
    %5 = vector.load %arg9[%c4, %c0_7] : memref<144x288xbf16, #tpu.memory_space<vmem>>, vector<4x288xbf16>
    tpu.vector_store %arg9[%c4, %c0_7], %4 {strides = array<i32>} : memref<144x288xbf16, #tpu.memory_space<vmem>>, vector<4x288xbf16>,
    %c0_8 = arith.constant 0 : index
    %c0_9 = arith.constant 0 : index
    %c0_10 = arith.constant 0 : index
    %6 = vector.load %arg3[%c0_8, %c0_9, %c0_10] : memref<1x4x326xbf16, #tpu.memory_space<vmem>>, vector<1x4x288xbf16>
    %7 = vector.shape_cast %6 : vector<1x4x288xbf16> to vector<4x288xbf16>
    %c8 = arith.constant 8 : index
    %c0_11 = arith.constant 0 : index
    %8 = vector.load %arg9[%c8, %c0_11] : memref<144x288xbf16, #tpu.memory_space<vmem>>, vector<4x288xbf16>
    tpu.vector_store %arg9[%c8, %c0_11], %7 {strides = array<i32>} : memref<144x288xbf16, #tpu.memory_space<vmem>>, vector<4x288xbf16>,
    %c0_12 = arith.constant 0 : index
    %c0_13 = arith.constant 0 : index
    %c0_14 = arith.constant 0 : index
    %9 = vector.load %arg4[%c0_12, %c0_13, %c0_14] : memref<1x4x326xbf16, #tpu.memory_space<vmem>>, vector<1x4x288xbf16>
    %10 = vector.shape_cast %9 : vector<1x4x288xbf16> to vector<4x288xbf16>
    %c12 = arith.constant 12 : index
    %c0_15 = arith.constant 0 : index
    %11 = vector.load %arg9[%c12, %c0_15] : memref<144x288xbf16, #tpu.memory_space<vmem>>, vector<4x288xbf16>
    tpu.vector_store %arg9[%c12, %c0_15], %10 {strides = array<i32>} : memref<144x288xbf16, #tpu.memory_space<vmem>>, vector<4x288xbf16>,
    %c0_16 = arith.constant 0 : index
    %c0_17 = arith.constant 0 : index
    %c1 = arith.constant 1 : index
    %12 = vector.load %arg1[%c0_16, %c0_17, %c1] : memref<1x4x326xbf16, #tpu.memory_space<vmem>>, vector<1x4x288xbf16>
    %13 = vector.shape_cast %12 : vector<1x4x288xbf16> to vector<4x288xbf16>
    %c16 = arith.constant 16 : index
    %c0_18 = arith.constant 0 : index
    %14 = vector.load %arg9[%c16, %c0_18] : memref<144x288xbf16, #tpu.memory_space<vmem>>, vector<4x288xbf16>
    tpu.vector_store %arg9[%c16, %c0_18], %13 {strides = array<i32>} : memref<144x288xbf16, #tpu.memory_space<vmem>>, vector<4x288xbf16>,
    %c0_19 = arith.constant 0 : index
    %c0_20 = arith.constant 0 : index
    %c1_21 = arith.constant 1 : index
    %15 = vector.load %arg2[%c0_19, %c0_20, %c1_21] : memref<1x4x326xbf16, #tpu.memory_space<vmem>>, vector<1x4x288xbf16>
    %16 = vector.shape_cast %15 : vector<1x4x288xbf16> to vector<4x288xbf16>
    %c20 = arith.constant 20 : index
    %c0_22 = arith.constant 0 : index
    %17 = vector.load %arg9[%c20, %c0_22] : memref<144x288xbf16, #tpu.memory_space<vmem>>, vector<4x288xbf16>
    tpu.vector_store %arg9[%c20, %c0_22], %16 {strides = array<i32>} : memref<144x288xbf16, #tpu.memory_space<vmem>>, vector<4x288xbf16>,
    %c0_23 = arith.constant 0 : index
    %c0_24 = arith.constant 0 : index
    %c1_25 = arith.constant 1 : index
    %18 = vector.load %arg3[%c0_23, %c0_24, %c1_25] : memref<1x4x326xbf16, #tpu.memory_space<vmem>>, vector<1x4x288xbf16>
    %19 = vector.shape_cast %18 : vector<1x4x288xbf16> to vector<4x288xbf16>
    %c24 = arith.constant 24 : index
    %c0_26 = arith.constant 0 : index
    %20 = vector.load %arg9[%c24, %c0_26] : memref<144x288xbf16, #tpu.memory_space<vmem>>, vector<4x288xbf16>
    tpu.vector_store %arg9[%c24, %c0_26], %19 {strides = array<i32>} : memref<144x288xbf16, #tpu.memory_space<vmem>>, vector<4x288xbf16>,
    %c0_27 = arith.constant 0 : index
    %c0_28 = arith.constant 0 : index
    %c1_29 = arith.constant 1 : index
    %21 = vector.load %arg4[%c0_27, %c0_28, %c1_29] : memref<1x4x326xbf16, #tpu.memory_space<vmem>>, vector<1x4x288xbf16>
    %22 = vector.shape_cast %21 : vector<1x4x288xbf16> to vector<4x288xbf16>
    %c28 = arith.constant 28 : index
    %c0_30 = arith.constant 0 : index
    %23 = vector.load %arg9[%c28, %c0_30] : memref<144x288xbf16, #tpu.memory_space<vmem>>, vector<4x288xbf16>
    tpu.vector_store %arg9[%c28, %c0_30], %22 {strides = array<i32>} : memref<144x288xbf16, #tpu.memory_space<vmem>>, vector<4x288xbf16>,
    %c0_31 = arith.constant 0 : index
    %c0_32 = arith.constant 0 : index
    %c2 = arith.constant 2 : index
    %24 = vector.load %arg1[%c0_31, %c0_32, %c2] : memref<1x4x326xbf16, #tpu.memory_space<vmem>>, vector<1x4x288xbf16>
    %25 = vector.shape_cast %24 : vector<1x4x288xbf16> to vector<4x288xbf16>
    %c32 = arith.constant 32 : index
    %c0_33 = arith.constant 0 : index
    %26 = vector.load %arg9[%c32, %c0_33] : memref<144x288xbf16, #tpu.memory_space<vmem>>, vector<4x288xbf16>
    tpu.vector_store %arg9[%c32, %c0_33], %25 {strides = array<i32>} : memref<144x288xbf16, #tpu.memory_space<vmem>>, vector<4x288xbf16>,
    %c0_34 = arith.constant 0 : index
    %c0_35 = arith.constant 0 : index
    %c2_36 = arith.constant 2 : index
    %27 = vector.load %arg2[%c0_34, %c0_35, %c2_36] : memref<1x4x326xbf16, #tpu.memory_space<vmem>>, vector<1x4x288xbf16>
    %28 = vector.shape_cast %27 : vector<1x4x288xbf16> to vector<4x288xbf16>
    %c36 = arith.constant 36 : index
    %c0_37 = arith.constant 0 : index
    %29 = vector.load %arg9[%c36, %c0_37] : memref<144x288xbf16, #tpu.memory_space<vmem>>, vector<4x288xbf16>
    tpu.vector_store %arg9[%c36, %c0_37], %28 {strides = array<i32>} : memref<144x288xbf16, #tpu.memory_space<vmem>>, vector<4x288xbf16>,
    %c0_38 = arith.constant 0 : index
    %c0_39 = arith.constant 0 : index
    %c2_40 = arith.constant 2 : index
    %30 = vector.load %arg3[%c0_38, %c0_39, %c2_40] : memref<1x4x326xbf16, #tpu.memory_space<vmem>>, vector<1x4x288xbf16>
    %31 = vector.shape_cast %30 : vector<1x4x288xbf16> to vector<4x288xbf16>
    %c40 = arith.constant 40 : index
    %c0_41 = arith.constant 0 : index
    %32 = vector.load %arg9[%c40, %c0_41] : memref<144x288xbf16, #tpu.memory_space<vmem>>, vector<4x288xbf16>
    tpu.vector_store %arg9[%c40, %c0_41], %31 {strides = array<i32>} : memref<144x288xbf16, #tpu.memory_space<vmem>>, vector<4x288xbf16>,
    %c0_42 = arith.constant 0 : index
    %c0_43 = arith.constant 0 : index
    %c2_44 = arith.constant 2 : index
    %33 = vector.load %arg4[%c0_42, %c0_43, %c2_44] : memref<1x4x326xbf16, #tpu.memory_space<vmem>>, vector<1x4x288xbf16>
    %34 = vector.shape_cast %33 : vector<1x4x288xbf16> to vector<4x288xbf16>
    %c44 = arith.constant 44 : index
    %c0_45 = arith.constant 0 : index
    %35 = vector.load %arg9[%c44, %c0_45] : memref<144x288xbf16, #tpu.memory_space<vmem>>, vector<4x288xbf16>
    tpu.vector_store %arg9[%c44, %c0_45], %34 {strides = array<i32>} : memref<144x288xbf16, #tpu.memory_space<vmem>>, vector<4x288xbf16>,
    %c0_46 = arith.constant 0 : index
    %c0_47 = arith.constant 0 : index
    %c18 = arith.constant 18 : index
    %36 = vector.load %arg1[%c0_46, %c0_47, %c18] : memref<1x4x326xbf16, #tpu.memory_space<vmem>>, vector<1x4x288xbf16>
    %37 = vector.shape_cast %36 : vector<1x4x288xbf16> to vector<4x288xbf16>
    %c48 = arith.constant 48 : index
    %c0_48 = arith.constant 0 : index
    %38 = vector.load %arg9[%c48, %c0_48] : memref<144x288xbf16, #tpu.memory_space<vmem>>, vector<4x288xbf16>
    tpu.vector_store %arg9[%c48, %c0_48], %37 {strides = array<i32>} : memref<144x288xbf16, #tpu.memory_space<vmem>>, vector<4x288xbf16>,
    %c0_49 = arith.constant 0 : index
    %c0_50 = arith.constant 0 : index
    %c18_51 = arith.constant 18 : index
    %39 = vector.load %arg2[%c0_49, %c0_50, %c18_51] : memref<1x4x326xbf16, #tpu.memory_space<vmem>>, vector<1x4x288xbf16>
    %40 = vector.shape_cast %39 : vector<1x4x288xbf16> to vector<4x288xbf16>
    %c52 = arith.constant 52 : index
    %c0_52 = arith.constant 0 : index
    %41 = vector.load %arg9[%c52, %c0_52] : memref<144x288xbf16, #tpu.memory_space<vmem>>, vector<4x288xbf16>
    tpu.vector_store %arg9[%c52, %c0_52], %40 {strides = array<i32>} : memref<144x288xbf16, #tpu.memory_space<vmem>>, vector<4x288xbf16>,
    %c0_53 = arith.constant 0 : index
    %c0_54 = arith.constant 0 : index
    %c18_55 = arith.constant 18 : index
    %42 = vector.load %arg3[%c0_53, %c0_54, %c18_55] : memref<1x4x326xbf16, #tpu.memory_space<vmem>>, vector<1x4x288xbf16>
    %43 = vector.shape_cast %42 : vector<1x4x288xbf16> to vector<4x288xbf16>
    %c56 = arith.constant 56 : index
    %c0_56 = arith.constant 0 : index
    %44 = vector.load %arg9[%c56, %c0_56] : memref<144x288xbf16, #tpu.memory_space<vmem>>, vector<4x288xbf16>
    tpu.vector_store %arg9[%c56, %c0_56], %43 {strides = array<i32>} : memref<144x288xbf16, #tpu.memory_space<vmem>>, vector<4x288xbf16>,
    %c0_57 = arith.constant 0 : index
    %c0_58 = arith.constant 0 : index
    %c18_59 = arith.constant 18 : index
    %45 = vector.load %arg4[%c0_57, %c0_58, %c18_59] : memref<1x4x326xbf16, #tpu.memory_space<vmem>>, vector<1x4x288xbf16>
    %46 = vector.shape_cast %45 : vector<1x4x288xbf16> to vector<4x288xbf16>
    %c60 = arith.constant 60 : index
    %c0_60 = arith.constant 0 : index
    %47 = vector.load %arg9[%c60, %c0_60] : memref<144x288xbf16, #tpu.memory_space<vmem>>, vector<4x288xbf16>
    tpu.vector_store %arg9[%c60, %c0_60], %46 {strides = array<i32>} : memref<144x288xbf16, #tpu.memory_space<vmem>>, vector<4x288xbf16>,
    %c0_61 = arith.constant 0 : index
    %c0_62 = arith.constant 0 : index
    %c19 = arith.constant 19 : index
    %48 = vector.load %arg1[%c0_61, %c0_62, %c19] : memref<1x4x326xbf16, #tpu.memory_space<vmem>>, vector<1x4x288xbf16>
    %49 = vector.shape_cast %48 : vector<1x4x288xbf16> to vector<4x288xbf16>
    %c64 = arith.constant 64 : index
    %c0_63 = arith.constant 0 : index
    %50 = vector.load %arg9[%c64, %c0_63] : memref<144x288xbf16, #tpu.memory_space<vmem>>, vector<4x288xbf16>
    tpu.vector_store %arg9[%c64, %c0_63], %49 {strides = array<i32>} : memref<144x288xbf16, #tpu.memory_space<vmem>>, vector<4x288xbf16>,
    %c0_64 = arith.constant 0 : index
    %c0_65 = arith.constant 0 : index
    %c19_66 = arith.constant 19 : index
    %51 = vector.load %arg2[%c0_64, %c0_65, %c19_66] : memref<1x4x326xbf16, #tpu.memory_space<vmem>>, vector<1x4x288xbf16>
    %52 = vector.shape_cast %51 : vector<1x4x288xbf16> to vector<4x288xbf16>
    %c68 = arith.constant 68 : index
    %c0_67 = arith.constant 0 : index
    %53 = vector.load %arg9[%c68, %c0_67] : memref<144x288xbf16, #tpu.memory_space<vmem>>, vector<4x288xbf16>
    tpu.vector_store %arg9[%c68, %c0_67], %52 {strides = array<i32>} : memref<144x288xbf16, #tpu.memory_space<vmem>>, vector<4x288xbf16>,
    %c0_68 = arith.constant 0 : index
    %c0_69 = arith.constant 0 : index
    %c19_70 = arith.constant 19 : index
    %54 = vector.load %arg3[%c0_68, %c0_69, %c19_70] : memref<1x4x326xbf16, #tpu.memory_space<vmem>>, vector<1x4x288xbf16>
    %55 = vector.shape_cast %54 : vector<1x4x288xbf16> to vector<4x288xbf16>
    %c72 = arith.constant 72 : index
    %c0_71 = arith.constant 0 : index
    %56 = vector.load %arg9[%c72, %c0_71] : memref<144x288xbf16, #tpu.memory_space<vmem>>, vector<4x288xbf16>
    tpu.vector_store %arg9[%c72, %c0_71], %55 {strides = array<i32>} : memref<144x288xbf16, #tpu.memory_space<vmem>>, vector<4x288xbf16>,
    %c0_72 = arith.constant 0 : index
    %c0_73 = arith.constant 0 : index
    %c19_74 = arith.constant 19 : index
    %57 = vector.load %arg4[%c0_72, %c0_73, %c19_74] : memref<1x4x326xbf16, #tpu.memory_space<vmem>>, vector<1x4x288xbf16>
    %58 = vector.shape_cast %57 : vector<1x4x288xbf16> to vector<4x288xbf16>
    %c76 = arith.constant 76 : index
    %c0_75 = arith.constant 0 : index
    %59 = vector.load %arg9[%c76, %c0_75] : memref<144x288xbf16, #tpu.memory_space<vmem>>, vector<4x288xbf16>
    tpu.vector_store %arg9[%c76, %c0_75], %58 {strides = array<i32>} : memref<144x288xbf16, #tpu.memory_space<vmem>>, vector<4x288xbf16>,
    %c0_76 = arith.constant 0 : index
    %c0_77 = arith.constant 0 : index
    %c20_78 = arith.constant 20 : index
    %60 = vector.load %arg1[%c0_76, %c0_77, %c20_78] : memref<1x4x326xbf16, #tpu.memory_space<vmem>>, vector<1x4x288xbf16>
    %61 = vector.shape_cast %60 : vector<1x4x288xbf16> to vector<4x288xbf16>
    %c80 = arith.constant 80 : index
    %c0_79 = arith.constant 0 : index
    %62 = vector.load %arg9[%c80, %c0_79] : memref<144x288xbf16, #tpu.memory_space<vmem>>, vector<4x288xbf16>
    tpu.vector_store %arg9[%c80, %c0_79], %61 {strides = array<i32>} : memref<144x288xbf16, #tpu.memory_space<vmem>>, vector<4x288xbf16>,
    %c0_80 = arith.constant 0 : index
    %c0_81 = arith.constant 0 : index
    %c20_82 = arith.constant 20 : index
    %63 = vector.load %arg2[%c0_80, %c0_81, %c20_82] : memref<1x4x326xbf16, #tpu.memory_space<vmem>>, vector<1x4x288xbf16>
    %64 = vector.shape_cast %63 : vector<1x4x288xbf16> to vector<4x288xbf16>
    %c84 = arith.constant 84 : index
    %c0_83 = arith.constant 0 : index
    %65 = vector.load %arg9[%c84, %c0_83] : memref<144x288xbf16, #tpu.memory_space<vmem>>, vector<4x288xbf16>
    tpu.vector_store %arg9[%c84, %c0_83], %64 {strides = array<i32>} : memref<144x288xbf16, #tpu.memory_space<vmem>>, vector<4x288xbf16>,
    %c0_84 = arith.constant 0 : index
    %c0_85 = arith.constant 0 : index
    %c20_86 = arith.constant 20 : index
    %66 = vector.load %arg3[%c0_84, %c0_85, %c20_86] : memref<1x4x326xbf16, #tpu.memory_space<vmem>>, vector<1x4x288xbf16>
    %67 = vector.shape_cast %66 : vector<1x4x288xbf16> to vector<4x288xbf16>
    %c88 = arith.constant 88 : index
    %c0_87 = arith.constant 0 : index
    %68 = vector.load %arg9[%c88, %c0_87] : memref<144x288xbf16, #tpu.memory_space<vmem>>, vector<4x288xbf16>
    tpu.vector_store %arg9[%c88, %c0_87], %67 {strides = array<i32>} : memref<144x288xbf16, #tpu.memory_space<vmem>>, vector<4x288xbf16>,
    %c0_88 = arith.constant 0 : index
    %c0_89 = arith.constant 0 : index
    %c20_90 = arith.constant 20 : index
    %69 = vector.load %arg4[%c0_88, %c0_89, %c20_90] : memref<1x4x326xbf16, #tpu.memory_space<vmem>>, vector<1x4x288xbf16>
    %70 = vector.shape_cast %69 : vector<1x4x288xbf16> to vector<4x288xbf16>
    %c92 = arith.constant 92 : index
    %c0_91 = arith.constant 0 : index
    %71 = vector.load %arg9[%c92, %c0_91] : memref<144x288xbf16, #tpu.memory_space<vmem>>, vector<4x288xbf16>
    tpu.vector_store %arg9[%c92, %c0_91], %70 {strides = array<i32>} : memref<144x288xbf16, #tpu.memory_space<vmem>>, vector<4x288xbf16>,
    %c0_92 = arith.constant 0 : index
    %c0_93 = arith.constant 0 : index
    %c36_94 = arith.constant 36 : index
    %72 = vector.load %arg1[%c0_92, %c0_93, %c36_94] : memref<1x4x326xbf16, #tpu.memory_space<vmem>>, vector<1x4x288xbf16>
    %73 = vector.shape_cast %72 : vector<1x4x288xbf16> to vector<4x288xbf16>
    %c96 = arith.constant 96 : index
    %c0_95 = arith.constant 0 : index
    %74 = vector.load %arg9[%c96, %c0_95] : memref<144x288xbf16, #tpu.memory_space<vmem>>, vector<4x288xbf16>
    tpu.vector_store %arg9[%c96, %c0_95], %73 {strides = array<i32>} : memref<144x288xbf16, #tpu.memory_space<vmem>>, vector<4x288xbf16>,
    %c0_96 = arith.constant 0 : index
    %c0_97 = arith.constant 0 : index
    %c36_98 = arith.constant 36 : index
    %75 = vector.load %arg2[%c0_96, %c0_97, %c36_98] : memref<1x4x326xbf16, #tpu.memory_space<vmem>>, vector<1x4x288xbf16>
    %76 = vector.shape_cast %75 : vector<1x4x288xbf16> to vector<4x288xbf16>
    %c100 = arith.constant 100 : index
    %c0_99 = arith.constant 0 : index
    %77 = vector.load %arg9[%c100, %c0_99] : memref<144x288xbf16, #tpu.memory_space<vmem>>, vector<4x288xbf16>
    tpu.vector_store %arg9[%c100, %c0_99], %76 {strides = array<i32>} : memref<144x288xbf16, #tpu.memory_space<vmem>>, vector<4x288xbf16>,
    %c0_100 = arith.constant 0 : index
    %c0_101 = arith.constant 0 : index
    %c36_102 = arith.constant 36 : index
    %78 = vector.load %arg3[%c0_100, %c0_101, %c36_102] : memref<1x4x326xbf16, #tpu.memory_space<vmem>>, vector<1x4x288xbf16>
    %79 = vector.shape_cast %78 : vector<1x4x288xbf16> to vector<4x288xbf16>
    %c104 = arith.constant 104 : index
    %c0_103 = arith.constant 0 : index
    %80 = vector.load %arg9[%c104, %c0_103] : memref<144x288xbf16, #tpu.memory_space<vmem>>, vector<4x288xbf16>
    tpu.vector_store %arg9[%c104, %c0_103], %79 {strides = array<i32>} : memref<144x288xbf16, #tpu.memory_space<vmem>>, vector<4x288xbf16>,
    %c0_104 = arith.constant 0 : index
    %c0_105 = arith.constant 0 : index
    %c36_106 = arith.constant 36 : index
    %81 = vector.load %arg4[%c0_104, %c0_105, %c36_106] : memref<1x4x326xbf16, #tpu.memory_space<vmem>>, vector<1x4x288xbf16>
    %82 = vector.shape_cast %81 : vector<1x4x288xbf16> to vector<4x288xbf16>
    %c108 = arith.constant 108 : index
    %c0_107 = arith.constant 0 : index
    %83 = vector.load %arg9[%c108, %c0_107] : memref<144x288xbf16, #tpu.memory_space<vmem>>, vector<4x288xbf16>
    tpu.vector_store %arg9[%c108, %c0_107], %82 {strides = array<i32>} : memref<144x288xbf16, #tpu.memory_space<vmem>>, vector<4x288xbf16>,
    %c0_108 = arith.constant 0 : index
    %c0_109 = arith.constant 0 : index
    %c37 = arith.constant 37 : index
    %84 = vector.load %arg1[%c0_108, %c0_109, %c37] : memref<1x4x326xbf16, #tpu.memory_space<vmem>>, vector<1x4x288xbf16>
    %85 = vector.shape_cast %84 : vector<1x4x288xbf16> to vector<4x288xbf16>
    %c112 = arith.constant 112 : index
    %c0_110 = arith.constant 0 : index
    %86 = vector.load %arg9[%c112, %c0_110] : memref<144x288xbf16, #tpu.memory_space<vmem>>, vector<4x288xbf16>
    tpu.vector_store %arg9[%c112, %c0_110], %85 {strides = array<i32>} : memref<144x288xbf16, #tpu.memory_space<vmem>>, vector<4x288xbf16>,
    %c0_111 = arith.constant 0 : index
    %c0_112 = arith.constant 0 : index
    %c37_113 = arith.constant 37 : index
    %87 = vector.load %arg2[%c0_111, %c0_112, %c37_113] : memref<1x4x326xbf16, #tpu.memory_space<vmem>>, vector<1x4x288xbf16>
    %88 = vector.shape_cast %87 : vector<1x4x288xbf16> to vector<4x288xbf16>
    %c116 = arith.constant 116 : index
    %c0_114 = arith.constant 0 : index
    %89 = vector.load %arg9[%c116, %c0_114] : memref<144x288xbf16, #tpu.memory_space<vmem>>, vector<4x288xbf16>
    tpu.vector_store %arg9[%c116, %c0_114], %88 {strides = array<i32>} : memref<144x288xbf16, #tpu.memory_space<vmem>>, vector<4x288xbf16>,
    %c0_115 = arith.constant 0 : index
    %c0_116 = arith.constant 0 : index
    %c37_117 = arith.constant 37 : index
    %90 = vector.load %arg3[%c0_115, %c0_116, %c37_117] : memref<1x4x326xbf16, #tpu.memory_space<vmem>>, vector<1x4x288xbf16>
    %91 = vector.shape_cast %90 : vector<1x4x288xbf16> to vector<4x288xbf16>
    %c120 = arith.constant 120 : index
    %c0_118 = arith.constant 0 : index
    %92 = vector.load %arg9[%c120, %c0_118] : memref<144x288xbf16, #tpu.memory_space<vmem>>, vector<4x288xbf16>
    tpu.vector_store %arg9[%c120, %c0_118], %91 {strides = array<i32>} : memref<144x288xbf16, #tpu.memory_space<vmem>>, vector<4x288xbf16>,
    %c0_119 = arith.constant 0 : index
    %c0_120 = arith.constant 0 : index
    %c37_121 = arith.constant 37 : index
    %93 = vector.load %arg4[%c0_119, %c0_120, %c37_121] : memref<1x4x326xbf16, #tpu.memory_space<vmem>>, vector<1x4x288xbf16>
    %94 = vector.shape_cast %93 : vector<1x4x288xbf16> to vector<4x288xbf16>
    %c124 = arith.constant 124 : index
    %c0_122 = arith.constant 0 : index
    %95 = vector.load %arg9[%c124, %c0_122] : memref<144x288xbf16, #tpu.memory_space<vmem>>, vector<4x288xbf16>
    tpu.vector_store %arg9[%c124, %c0_122], %94 {strides = array<i32>} : memref<144x288xbf16, #tpu.memory_space<vmem>>, vector<4x288xbf16>,
    %c0_123 = arith.constant 0 : index
    %c0_124 = arith.constant 0 : index
    %c38 = arith.constant 38 : index
    %96 = vector.load %arg1[%c0_123, %c0_124, %c38] : memref<1x4x326xbf16, #tpu.memory_space<vmem>>, vector<1x4x288xbf16>
    %97 = vector.shape_cast %96 : vector<1x4x288xbf16> to vector<4x288xbf16>
    %c128 = arith.constant 128 : index
    %c0_125 = arith.constant 0 : index
    %98 = vector.load %arg9[%c128, %c0_125] : memref<144x288xbf16, #tpu.memory_space<vmem>>, vector<4x288xbf16>
    tpu.vector_store %arg9[%c128, %c0_125], %97 {strides = array<i32>} : memref<144x288xbf16, #tpu.memory_space<vmem>>, vector<4x288xbf16>,
    %c0_126 = arith.constant 0 : index
    %c0_127 = arith.constant 0 : index
    %c38_128 = arith.constant 38 : index
    %99 = vector.load %arg2[%c0_126, %c0_127, %c38_128] : memref<1x4x326xbf16, #tpu.memory_space<vmem>>, vector<1x4x288xbf16>
    %100 = vector.shape_cast %99 : vector<1x4x288xbf16> to vector<4x288xbf16>
    %c132 = arith.constant 132 : index
    %c0_129 = arith.constant 0 : index
    %101 = vector.load %arg9[%c132, %c0_129] : memref<144x288xbf16, #tpu.memory_space<vmem>>, vector<4x288xbf16>
    tpu.vector_store %arg9[%c132, %c0_129], %100 {strides = array<i32>} : memref<144x288xbf16, #tpu.memory_space<vmem>>, vector<4x288xbf16>,
    %c0_130 = arith.constant 0 : index
    %c0_131 = arith.constant 0 : index
    %c38_132 = arith.constant 38 : index
    %102 = vector.load %arg3[%c0_130, %c0_131, %c38_132] : memref<1x4x326xbf16, #tpu.memory_space<vmem>>, vector<1x4x288xbf16>
    %103 = vector.shape_cast %102 : vector<1x4x288xbf16> to vector<4x288xbf16>
    %c136 = arith.constant 136 : index
    %c0_133 = arith.constant 0 : index
    %104 = vector.load %arg9[%c136, %c0_133] : memref<144x288xbf16, #tpu.memory_space<vmem>>, vector<4x288xbf16>
    tpu.vector_store %arg9[%c136, %c0_133], %103 {strides = array<i32>} : memref<144x288xbf16, #tpu.memory_space<vmem>>, vector<4x288xbf16>,
    %c0_134 = arith.constant 0 : index
    %c0_135 = arith.constant 0 : index
    %c38_136 = arith.constant 38 : index
    %105 = vector.load %arg4[%c0_134, %c0_135, %c38_136] : memref<1x4x326xbf16, #tpu.memory_space<vmem>>, vector<1x4x288xbf16>
    %106 = vector.shape_cast %105 : vector<1x4x288xbf16> to vector<4x288xbf16>
    %c140 = arith.constant 140 : index
    %c0_137 = arith.constant 0 : index
    %107 = vector.load %arg9[%c140, %c0_137] : memref<144x288xbf16, #tpu.memory_space<vmem>>, vector<4x288xbf16>
    tpu.vector_store %arg9[%c140, %c0_137], %106 {strides = array<i32>} : memref<144x288xbf16, #tpu.memory_space<vmem>>, vector<4x288xbf16>,
    %c0_138 = arith.constant 0 : index
    %c0_139 = arith.constant 0 : index
    %108 = vector.load %arg6[%c0_138, %c0_139] : memref<4x144xbf16, #tpu.memory_space<vmem>>, vector<4x144xbf16>
    %c0_140 = arith.constant 0 : index
    %c0_141 = arith.constant 0 : index
    %109 = vector.load %arg9[%c0_140, %c0_141] : memref<144x288xbf16, #tpu.memory_space<vmem>>, vector<144x288xbf16>
    %cst = arith.constant dense<0.000000e+00> : vector<4x288xf32>
    %110 = tpu.matmul %108, %109, %cst {dimension_numbers = #tpu.dot_dimension_numbers<[1], [0], [0], [1], [0, 0, 1, 1], [], []>} : vector<4x144xbf16>, vector<144x288xbf16>, vector<4x288xf32> -> vector<4x288xf32>
    %c0_142 = arith.constant 0 : index
    %c0_143 = arith.constant 0 : index
    %111 = vector.load %arg7[%c0_142, %c0_143] : memref<4x1xf32, #tpu.memory_space<vmem>>, vector<4x1xf32>
    %112 = vector.broadcast %111 : vector<4x1xf32> to vector<4x288xf32>
    %113 = arith.addf %110, %112 : vector<4x288xf32>
    %c0_144 = arith.constant 0 : index
    %c0_145 = arith.constant 0 : index
    %c0_146 = arith.constant 0 : index
    %114 = vector.load %arg5[%c0_144, %c0_145, %c0_146] : memref<1x4x288xbf16, #tpu.memory_space<vmem>>, vector<1x4x288xbf16>
    %115 = vector.shape_cast %114 : vector<1x4x288xbf16> to vector<4x288xbf16>
    %116 = arith.extf %115 : vector<4x288xbf16> to vector<4x288xf32>
    %117 = arith.addf %113, %116 : vector<4x288xf32>
    %cst_147 = arith.constant 0.000000e+00 : f32
    %118 = vector.broadcast %cst_147 : f32 to vector<4x288xf32>
    %119 = arith.maximumf %117, %118 : vector<4x288xf32>
    %120 = vector.shape_cast %119 : vector<4x288xf32> to vector<1x4x288xf32>
    %c0_148 = arith.constant 0 : index
    %c0_149 = arith.constant 0 : index
    %c0_150 = arith.constant 0 : index
    %121 = vector.load %arg8[%c0_148, %c0_149, %c0_150] : memref<1x4x288xf32, #tpu.memory_space<vmem>>, vector<1x4x288xf32>
    tpu.vector_store %arg8[%c0_148, %c0_149, %c0_150], %120 {strides = array<i32>} : memref<1x4x288xf32, #tpu.memory_space<vmem>>, vector<1x4x288xf32>,
    return
  }
  func.func @transform_0(%arg0: i32) -> (i32, i32, i32) {
    %c0_i32 = arith.constant 0 : i32
    %c0_i32_0 = arith.constant 0 : i32
    %c0_i32_1 = arith.constant 0 : i32
    return %arg0, %c0_i32, %c0_i32_0 : i32, i32, i32
  }
  func.func @transform_1(%arg0: i32) -> (i32, i32, i32) {
    %c0_i32 = arith.constant 0 : i32
    %c0_i32_0 = arith.constant 0 : i32
    %c0_i32_1 = arith.constant 0 : i32
    return %arg0, %c0_i32, %c0_i32_0 : i32, i32, i32
  }
  func.func @transform_2(%arg0: i32) -> (i32, i32, i32) {
    %c0_i32 = arith.constant 0 : i32
    %c0_i32_0 = arith.constant 0 : i32
    %c0_i32_1 = arith.constant 0 : i32
    return %arg0, %c0_i32, %c0_i32_0 : i32, i32, i32
  }
  func.func @transform_3(%arg0: i32) -> (i32, i32, i32) {
    %c0_i32 = arith.constant 0 : i32
    %c0_i32_0 = arith.constant 0 : i32
    %c0_i32_1 = arith.constant 0 : i32
    return %arg0, %c0_i32, %c0_i32_0 : i32, i32, i32
  }
  func.func @transform_4(%arg0: i32) -> (i32, i32, i32) {
    %c0_i32 = arith.constant 0 : i32
    %c0_i32_0 = arith.constant 0 : i32
    %c0_i32_1 = arith.constant 0 : i32
    return %arg0, %c0_i32, %c0_i32_0 : i32, i32, i32
  }
  func.func @transform_5(%arg0: i32) -> (i32, i32) {
    %c0_i32 = arith.constant 0 : i32
    %c0_i32_0 = arith.constant 0 : i32
    %c0_i32_1 = arith.constant 0 : i32
    return %c0_i32, %c0_i32_0 : i32, i32
  }
  func.func @transform_6(%arg0: i32) -> (i32, i32) {
    %c0_i32 = arith.constant 0 : i32
    %c0_i32_0 = arith.constant 0 : i32
    %c0_i32_1 = arith.constant 0 : i32
    return %c0_i32, %c0_i32_0 : i32, i32
  }
  func.func @transform_7(%arg0: i32) -> (i32, i32, i32) {
    %c0_i32 = arith.constant 0 : i32
    %c0_i32_0 = arith.constant 0 : i32
    %c0_i32_1 = arith.constant 0 : i32
    return %arg0, %c0_i32, %c0_i32_0 : i32, i32, i32
  }
}

</mosaic_0001>

<bundles_post_ra>
// kernel: rfb_forward.11
= control target key start
LH: loop header
LB: loop body
LE: loop exit
PB: predicated region body
PF: predicated region fallthrough
CT: control target
= control target key end

     0   :  { %s421_s12 = smov 0   ;;  %s457_s0 = inlined_call_operand.vmem [shape: bf16[2,8,256], index: 0, kind: input, shape index: {}]   ;;  %s458_s1 = inlined_call_operand.vmem [shape: bf16[20,8], index: 1, kind: input, shape index: {}]   ;;  %s459_s2 = inlined_call_operand.vmem [shape: f32[20,1], index: 2, kind: input, shape index: {}]   ;;  %s460_s3 = inlined_call_operand.vmem [shape: bf16[2,20,256], index: 3, kind: output, shape index: {}]  }
   0x1 LB: > { %s350_s13 = sadd.s32 4294967295, %s398_s12   ;;  %p354_p0 = scmp.ge.s32.totalorder %s398_s12, 1  ;;  %s398_s12 = sphi %s421_s12, %s13_s12  }
   0x2   : > { %p137_p1 = scmp.lt.s32.totalorder %s398_s12, 3 }
   0x4   : > { %p138_p2 = pnand %p354_p0, %p137_p1 }
   0x5   : > { %p161_p3 = scmp.lt.s32.totalorder (!%p138_p2), %s350_s13, 1  ;;  %v400_v0 = vmov (!%p138_p2), 0   ;;  %v176_v1 = vld [vmem:[%s459_s2] sm:$0xff] (!%p138_p2)  ;;  %v178_v2 = vld [vmem:[%s459_s2 + $0x10] sm:$0xf] (!%p138_p2)  ;;  %v177_v3 = vld [vmem:[%s459_s2 + $0x8] sm:$0xff] (!%p138_p2) }
   0x6   : > { %141 = sbr.rel (%p138_p2) target bundleno = 243 (0xf3), region = 32  ;;  %253 = vmatprep.mubr.bf16.mxu0 (!%p138_p2), %v400_v0  ;;  %263 = vmatprep.mubr.bf16.mxu1 (!%p138_p2), %v400_v0  ;;  %vm214_vm0 = vcmask (!%p138_p2), 1043456   ;;  %v390_v8 = vld [vmem:[%s458_s1] sm:$0xff] (!%p138_p2)   ;;  %v391_v9 = vld [vmem:[%s458_s1 + $0x8] ss:$0 sps:$4 sm:$0x33] (!%p138_p2)  }
   0x7   : > { %386 = vset.pattern.permute.xlu0 (!%p138_p2), %v400_v0  ;;  %387 = vset.pattern.permute.xlu1 (!%p138_p2), %v400_v0  ;;  %vm207_vm1 = vcmask (!%p138_p2), 64512  }
   0x8   : > { %181 = vperm.xlu0 (!%p138_p2), %386, %v176_v1   ;;  %191 = vperm.xlu1 (!%p138_p2), %387, %v178_v2  }
   0xc   : > { %186 = vperm.xlu0 (!%p138_p2), %386, %v177_v3  }
   0xd   : > { %s462_s13 = smov (!%p161_p3, %s350_s13), 1 }
   0xe   : > { %s370_s18 = sshll.u32 %s462_s13, 3  ;;  %s376_s28 = smul.u32 24, %s462_s13 }
   0xf   : > { %s165_s23 = scalar_lea.vmem %s457_s0, %s370_s18 }
  0x10   : > { %v172_v4 = vld [vmem:[%s165_s23] sm:$0xff]  ;;  %s170_s4 = scalar_lea.vmem %s460_s3, %s376_s28 }
  0x11   : > { %v361_v5 = vcombine.high %v172_v4, %v172_v4  ;;  %v360_v6 = vcombine.low %v172_v4, %v172_v4 }
  0x13   : > { %362 = vmatprep.subr.msk.bf16.mxu0 %vm214_vm0, %v361_v5  ;;  %374 = vmatprep.subr.msk.bf16.mxu1 %vm214_vm0, %v361_v5  ;;  %v216_v7 = vsel %vm214_vm0, %v360_v6, 0 }
  0x14   : > { %222 = vmatpush1.bf16.msra.mxu0 %v216_v7  ;;  %375 = vmatpush1.bf16.msra.mxu1 %v216_v7 }
  0x17   : > { %363 = vmatmul.mubr.msk.bf16.vlgmr.msra.gmra.mrb[0].mxu0 %vm207_vm1, %v390_v8  ;;  %364 = vmatmul.mubr.msk.bf16.vlgmr.msra.gmra.mrb[0].mxu1 %vm207_vm1, %v391_v9 }
  0x87   : > { %v182_v10 = vpop.permute.xlu0 %181  ;;  %v192_v11 = vpop.permute.xlu1 %191 }
  0x8b   : > { %v187_v12 = vpop.permute.xlu0 %186 }
  0xea   : > { %v255_v13 = vpop.f32.mrb[0].mxu0  ;;  %v265_v14 = vpop.f32.mrb[0].mxu1 }
  0xeb   : > { %v256_v15 = vadd.f32 %v255_v13, %v182_v10  ;;  %v257_v16 = vpop.f32.mrb[1].mxu0  ;;  %v267_v17 = vpop.f32.mrb[1].mxu1  ;;  %v266_v18 = vadd.f32 %v265_v14, %v192_v11 }
  0xec   : > { %v258_v19 = vadd.f32 %v257_v16, %v182_v10  ;;  %v268_v20 = vadd.f32 %v267_v17, %v192_v11  ;;  %v259_v21 = vpop.f32.mrb[2].mxu0  ;;  %v269_v22 = vpop.f32.mrb[2].mxu1 }
  0xed   : > { %v260_v23 = vadd.f32 %v259_v21, %v187_v12  ;;  %v261_v24 = vpop.f32.mrb[3].mxu0  ;;  %v270_v25 = vpop.f32.mrb[3].mxu1 }
  0xee   : > { %v371_v26 = vpack.c.bf16 %v258_v19, %v256_v15  ;;  %v373_v27 = vpack.c.bf16 %v268_v20, %v266_v18  ;;  %v262_v28 = vadd.f32 %v261_v24, %v187_v12 }
  0xf0   : > { %292 = vst [vmem:[%s170_s4] sm:$0xff] %v371_v26  ;;  %294 = vst [vmem:[%s170_s4 + $0x10] sm:$0x33] %v373_v27  ;;  %v372_v29 = vpack.c.bf16 %v262_v28, %v260_v23 }
  0xf2   : > { %293 = vst [vmem:[%s170_s4 + $0x8] sm:$0xff] %v372_v29 }
  0xf3 PF: > { %s13_s12 = sadd.s32 1, %s398_s12  }
  0xf4   : > { %p10_p4 = scmp.ge.s32.totalorder %s13_s12, 4  }
  0xf6   :  { %12 = sbr.rel (!%p10_p4) target bundleno = 1 (0x1), region = 62 }

// kernel: rfb_forward.18
= control target key start
LH: loop header
LB: loop body
LE: loop exit
PB: predicated region body
PF: predicated region fallthrough
CT: control target
= control target key end

     0   :  { %s703_s12 = smov 0   ;;  %s775_s0 = inlined_call_operand.vmem [shape: bf16[2,4,358], index: 0, kind: input, shape index: {}]   ;;  %s776_s1 = inlined_call_operand.vmem [shape: bf16[4,28], index: 1, kind: input, shape index: {}]   ;;  %s777_s2 = inlined_call_operand.vmem [shape: f32[4,1], index: 2, kind: input, shape index: {}]   ;;  %s778_s3 = inlined_call_operand.vmem [shape: bf16[2,4,352], index: 3, kind: output, shape index: {}]  }
   0x1 LB: > { %s599_s13 = sadd.s32 4294967295, %s671_s12   ;;  %p603_p0 = scmp.ge.s32.totalorder %s671_s12, 1  ;;  %s671_s12 = sphi %s703_s12, %s13_s12  }
   0x2   : > { %p137_p1 = scmp.lt.s32.totalorder %s671_s12, 3 }
   0x4   : > { %p138_p2 = pnand %p603_p0, %p137_p1 }
   0x5   : > { %p161_p3 = scmp.lt.s32.totalorder (!%p138_p2), %s599_s13, 1  ;;  %v185_v0 = vlaneseq (!%p138_p2)  ;;  %v673_v1 = vmov (!%p138_p2), 1983009808   ;;  %s674_s18 = smov (!%p138_p2), 126   ;;  %vm192_vm0 = vcmask (!%p138_p2), 779264   ;;  %v678_v24 = vmov (!%p138_p2), 0.0  }
   0x6   : > { %141 = sbr.rel (%p138_p2) target bundleno = 394 (0x18a), region = 32  ;;  %v183_v2 = vunpack.c.l.s4 (!%p138_p2), %v673_v1  ;;  %s675_s19 = smov (!%p138_p2), 127   ;;  %622 = vmatprep.subr.bf16.mxu1 (!%p138_p2), %v678_v24  ;;  %vm681_vm1 = vmmov (!%p138_p2), 0   ;;  %v682_v34 = vmov (!%p138_p2), 0   ;;  %v385_v35 = vld [vmem:[%s777_s2] sm:$0xf] (!%p138_p2) }
   0x7   : > { %v186_v3 = vshrl.u32 (!%p138_p2), %v185_v0, 7  ;;  %s676_s20 = smov (!%p138_p2), 125   ;;  %s677_s21 = smov (!%p138_p2), 124   ;;  %626 = vmatprep.mubr.msk.bf16.mxu1 (!%p138_p2), %vm681_vm1, %v678_v24  ;;  %466 = vmatprep.mubr.bf16.mxu0 (!%p138_p2), %v682_v34  ;;  %vm224_vm2 = vcmask (!%p138_p2), 781314   ;;  %vm217_vm3 = vcmask (!%p138_p2), 1043456   ;;  %vm250_vm4 = vcmask (!%p138_p2), 1031168  }
   0x8   : > { %v184_v4 = vunpack.c.0.s8 (!%p138_p2), %v183_v2  ;;  %s679_s22 = smov (!%p138_p2), 123   ;;  %s680_s23 = smov (!%p138_p2), 122   ;;  %649 = vset.pattern.permute.xlu0 (!%p138_p2), %v682_v34  ;;  %vm219_vm5 = vcmask (!%p138_p2), 1039360   ;;  %vm310_vm6 = vcmask (!%p138_p2), 1014784   ;;  %vm280_vm7 = vcmask (!%p138_p2), 1022976  }
   0x9   : > { %vm340_vm8 = vcmask (!%p138_p2), 1006592   ;;  %vm370_vm9 = vcmask (!%p138_p2), 998400   ;;  %vm424_vm10 = vcmask (!%p138_p2), 1045504   ;;  %vm420_vm11 = vcmask (!%p138_p2), 228352  }
   0xa   : > { %v714_v5 = vsub.s32 (!%p138_p2), %v184_v4, %v186_v3  ;;  %vm538_vm12 = vcmask (!%p138_p2), 1041408   ;;  %vm539_vm13 = vcmask (!%p138_p2), 1043458   ;;  %vm541_vm15 = vcmask (!%p138_p2), 783364  }
   0xb   : > { %vm540_vm14 = vmor (!%p138_p2), %vm539_vm13, %vm538_vm12 }
   0xd   : > { %s780_s13 = smov (!%p161_p3, %s599_s13), 1 }
   0xe   : > { %s630_s14 = smul.u32 6, %s780_s13 }
  0x10   : > { %s721_s17 = scalar_lea.vmem %s775_s0, %s630_s14  ;;  %s170_s30 = scalar_lea.vmem %s778_s3, %s630_s14 }
  0x11   : > { %v226_v6 = vld [vmem:[%s721_s17] sm:$0x3f] }
  0x12   : > { %v194_v7 = vld [vmem:[%s721_s17] sm:$0x3f]  ;;  %v235_v9 = vrot.slane %v226_v6, %v714_v5  ;;  %v228_v12 = vcombine.high %v226_v6, %v226_v6 }
  0x13   : > { %v256_v8 = vld [vmem:[%s721_s17] sm:$0x3f]  ;;  %v210_v10 = vrot.slane %v194_v7, %v714_v5  ;;  %v196_v14 = vcombine.low %v194_v7, %v194_v7 }
  0x14   : > { %v286_v11 = vld [vmem:[%s721_s17] sm:$0x3f]  ;;  %243 = vrot.lane.b32.xlu1 %v235_v9, %s674_s18  ;;  %v272_v15 = vrot.slane %v256_v8, %v714_v5  ;;  %v258_v19 = vcombine.low %v256_v8, %v256_v8  ;;  %v242_v20 = vrot.slane %v228_v12, %v714_v5 }
  0x15   : > { %v172_v13 = vld [vmem:[%s721_s17] sm:$0x3f]  ;;  %213 = vrot.lane.b32.xlu0 %v210_v10, %s675_s19  ;;  %v295_v16 = vrot.slane %v286_v11, %v714_v5  ;;  %v288_v18 = vcombine.high %v286_v11, %v286_v11  ;;  %v203_v21 = vrot.slane %v196_v14, %v714_v5 }
  0x16   : > { %606 = vst.sshfl [vmem:[#allocation2] sm:$0xf pattern:$0x76325410] %v172_v13  ;;  %v174_v17 = vcombine.high %v172_v13, %v172_v13  ;;  %v316_v23 = vld [vmem:[%s721_s17] sm:$0x3f]  ;;  %v265_v26 = vrot.slane %v258_v19, %v714_v5 }
  0x17   : > { %v302_v25 = vrot.slane %v288_v18, %v714_v5  ;;  %v318_v27 = vcombine.low %v316_v23, %v316_v23  ;;  %v346_v28 = vld [vmem:[%s721_s17] sm:$0x3f]  ;;  %v332_v29 = vrot.slane %v316_v23, %v714_v5 }
  0x18   : > { %275 = vrot.lane.b32.xlu1 %v272_v15, %s676_s20  ;;  %v188_v22 = vrot.slane %v174_v17, %v714_v5  ;;  %v348_v31 = vcombine.high %v346_v28, %v346_v28  ;;  %v355_v33 = vrot.slane %v346_v28, %v714_v5  ;;  %v384_v14 = vld [vmem:[%s776_s1] sm:$0x3] }
  0x19   : > { %303 = vrot.lane.b32.xlu0 %v295_v16, %s677_s21  ;;  %v325_v30 = vrot.slane %v318_v27, %v714_v5 }
  0x1a   : > { %193 = vst.msk [vmem:[#allocation2 + $0x8] sm:$0x3] %vm192_vm0, %v188_v22  ;;  %v362_v32 = vrot.slane %v348_v31, %v714_v5 }
  0x1c   : > { %245 = vrot.lane.b32.xlu1 %v242_v20, %s674_s18 }
  0x1d   : > { %211 = vrot.lane.b32.xlu0 %v203_v21, %s675_s19 }
  0x20   : > { %305 = vrot.lane.b32.xlu1 %v302_v25, %s677_s21 }
  0x21   : > { %273 = vrot.lane.b32.xlu0 %v265_v26, %s676_s20 }
  0x24   : > { %335 = vrot.lane.b32.xlu1 %v332_v29, %s679_s22 }
  0x25   : > { %333 = vrot.lane.b32.xlu0 %v325_v30, %s679_s22 }
  0x28   : > { %365 = vrot.lane.b32.xlu1 %v362_v32, %s680_s23 }
  0x29   : > { %363 = vrot.lane.b32.xlu0 %v355_v33, %s680_s23 }
  0x2d   : > { %388 = vperm.xlu0 %649, %v385_v35  }
  0x86   : > { %v244_v36 = vpop.permute.xlu1 %243 }
  0x87   : > { %v214_v37 = vpop.permute.xlu0 %213  ;;  %v247_v42 = vrot.slane %v244_v36, 4 }
  0x88   : > { %225 = vst.msk [vmem:[#allocation2 + $0x8] sm:$0xc] %vm224_vm2, %v214_v37  ;;  %v216_v43 = vrot.slane %v214_v37, 4 }
  0x8a   : > { %v276_v38 = vpop.permute.xlu1 %275 }
  0x8b   : > { %v304_v39 = vpop.permute.xlu0 %303  ;;  %285 = vst.msk [vmem:[#allocation2 + $0x14] sm:$0xc] %vm224_vm2, %v276_v38  ;;  %v278_v52 = vrot.slane %v276_v38, 4 }
  0x8c   : > { %v307_v53 = vrot.slane %v304_v39, 4 }
  0x8e   : > { %v246_v40 = vpop.permute.xlu1 %245 }
  0x8f   : > { %v212_v41 = vpop.permute.xlu0 %211  ;;  %v248_v44 = vrot.slane %v246_v40, 4  ;;  %255 = vst.msk [vmem:[#allocation2 + $0x14] sm:$0x3] %vm192_vm0, %v246_v40 }
  0x90   : > { %v215_v45 = vrot.slane %v212_v41, 4 }
  0x91   : > { %v249_v46 = vsel %vm217_vm3, %v247_v42, %v248_v44 }
  0x92   : > { %v218_v47 = vsel %vm217_vm3, %v215_v45, %v216_v43  ;;  %v251_v48 = vsel %vm250_vm4, %v244_v36, %v249_v46  ;;  %v306_v50 = vpop.permute.xlu1 %305 }
  0x93   : > { %v220_v49 = vsel %vm219_vm5, %v212_v41, %v218_v47  ;;  %v274_v51 = vpop.permute.xlu0 %273  ;;  %254 = vst [vmem:[#allocation2 + $0xc] sm:$0x33] %v251_v48  ;;  %v308_v54 = vrot.slane %v306_v50, 4  ;;  %315 = vst.msk [vmem:[#allocation2 + $0x20] sm:$0x3] %vm192_vm0, %v306_v50 }
  0x94   : > { %223 = vst [vmem:[#allocation2] sm:$0xcc] %v220_v49  ;;  %v277_v55 = vrot.slane %v274_v51, 4 }
  0x95   : > { %v309_v56 = vsel %vm217_vm3, %v307_v53, %v308_v54 }
  0x96   : > { %v279_v57 = vsel %vm217_vm3, %v277_v55, %v278_v52  ;;  %v311_v58 = vsel %vm310_vm6, %v304_v39, %v309_v56  ;;  %v336_v60 = vpop.permute.xlu1 %335  ;;  %v657_v62 = vld [vmem:[#allocation2 + $0x8] ss:$12 sps:$4 sm:$0xff]  }
  0x97   : > { %v281_v59 = vsel %vm280_vm7, %v274_v51, %v279_v57  ;;  %v334_v61 = vpop.permute.xlu0 %333  ;;  %314 = vst [vmem:[#allocation2 + $0x18] sm:$0x33] %v311_v58  ;;  %v338_v63 = vrot.slane %v336_v60, 4  ;;  %345 = vst.msk [vmem:[#allocation2 + $0x20] sm:$0xc] %vm224_vm2, %v336_v60  ;;  %623 = vmatpush3.bf16.msra.mxu1 %v657_v62 }
  0x98   : > { %284 = vst [vmem:[#allocation2 + $0xc] sm:$0xcc] %v281_v59  ;;  %v337_v0 = vrot.slane %v334_v61, 4  ;;  %624 = vmatprep.subr.bf16.mxu1 %v678_v24 }
  0x9a   : > { %v339_v1 = vsel %vm217_vm3, %v337_v0, %v338_v63  ;;  %v366_v3 = vpop.permute.xlu1 %365 }
  0x9b   : > { %v341_v2 = vsel %vm340_vm8, %v334_v61, %v339_v1  ;;  %v364_v4 = vpop.permute.xlu0 %363  ;;  %v368_v6 = vrot.slane %v366_v3, 4  ;;  %375 = vst.msk [vmem:[#allocation2 + $0x2c] sm:$0x3] %vm192_vm0, %v366_v3  ;;  %vm542_vm0 = vmor %vm541_vm15, %vm540_vm14 }
  0x9c   : > { %344 = vst [vmem:[#allocation2 + $0x18] sm:$0xcc] %v341_v2  ;;  %v367_v7 = vrot.slane %v364_v4, 4 }
  0x9e   : > { %v369_v8 = vsel %vm217_vm3, %v367_v7, %v368_v6 }
  0x9f   : > { %v371_v9 = vsel %vm370_vm9, %v364_v4, %v369_v8  ;;  %v658_v10 = vld [vmem:[#allocation2 + $0x4] ss:$12 sps:$4 sm:$0xff]   ;;  %v660_v11 = vld [vmem:[#allocation2] ss:$12 sps:$4 sm:$0xff]  }
  0xa0   : > { %374 = vst [vmem:[#allocation2 + $0x24] sm:$0x33] %v371_v9  ;;  %434 = vmatprep.subr.bf16.mxu0 %v658_v10 }
  0xa1   : > { %435 = vmatpush1.bf16.msra.mxu0 %v660_v11 }
  0xa2   : > { %v661_v12 = vld [vmem:[#allocation2 + $0x20] ss:$12 sps:$4 sm:$0x3f]  }
  0xa3   : > { %v432_v13 = vsel %vm424_vm10, %v661_v12, 0 }
  0xa4   : > { %625 = vmatpush3.bf16.msra.mxu1 %v432_v13 }
  0xa7   : > { %v662_v15 = vld [vmem:[#allocation2 + $0x1c] ss:$12 sps:$4 sm:$0x3f]   ;;  %v664_v16 = vld [vmem:[#allocation2 + $0x18] ss:$12 sps:$4 sm:$0x3f]   ;;  %627 = vmatmul.mubr.msk.bf16.vlgmr.msra.gmra.mrb[0].mxu1 %vm420_vm11, %v384_v14 }
  0xa8   : > { %613 = vmatprep.subr.msk.bf16.mxu0 %vm424_vm10, %v662_v15  ;;  %v426_v17 = vsel %vm424_vm10, %v664_v16, 0 }
  0xa9   : > { %437 = vmatpush1.bf16.msra.mxu0 %v426_v17 }
  0xac   : > { %614 = vmatmul.mubr.msk.bf16.vlgmr.msra.gmra.mrb[0].mxu0 %vm420_vm11, %v384_v14  ;;  %v389_v18 = vpop.permute.xlu0 %388 }
 0x17a   : > { %v509_v19 = vpop.f32.mrb[0].mxu1 }
 0x17b   : > { %v628_v20 = vpop.f32.mrb[1].mxu1  ;;  %v510_v21 = vadd.f32 %v509_v19, %v389_v18 }
 0x17c   : > { %v512_v22 = vpop.f32.mrb[2].mxu1 }
 0x17d   : > { %v629_v23 = vpop.f32.mrb[3].mxu1  ;;  %v517_v24 = vpack.c.bf16 %v510_v21, %v510_v21 }
 0x17f   : > { %v468_v25 = vpop.f32.mrb[0].mxu0  ;;  %v535_v31 = vrot.slane %v517_v24, %v714_v5 }
 0x180   : > { %v469_v26 = vadd.f32 %v468_v25, %v389_v18  ;;  %v470_v27 = vpop.f32.mrb[1].mxu0 }
 0x181   : > { %v471_v28 = vadd.f32 %v470_v27, %v389_v18  ;;  %v472_v29 = vpop.f32.mrb[2].mxu0 }
 0x182   : > { %v473_v30 = vpop.f32.mrb[3].mxu0 }
 0x183   : > { %v616_v32 = vpack.c.bf16 %v471_v28, %v469_v26 }
 0x185   : > { %v528_v33 = vrot.slane %v616_v32, %v714_v5 }
 0x187   : > { %v536_v34 = vcombine.low %v528_v33, %v535_v31 }
 0x189   : > { %543 = vst.msk [vmem:[%s170_s30] sm:$0x3f] %vm542_vm0, %v536_v34 }
 0x18a PF: > { %s13_s12 = sadd.s32 1, %s671_s12  }
 0x18b   : > { %p10_p4 = scmp.ge.s32.totalorder %s13_s12, 4  }
 0x18d   :  { %12 = sbr.rel (!%p10_p4) target bundleno = 1 (0x1), region = 62 }

// kernel: rfb_forward.19
= control target key start
LH: loop header
LB: loop body
LE: loop exit
PB: predicated region body
PF: predicated region fallthrough
CT: control target
= control target key end

     0   :  { %s588_s12 = smov 0   ;;  %s630_s0 = inlined_call_operand.vmem [shape: bf16[2,4,352], index: 0, kind: input, shape index: {}]   ;;  %s631_s1 = inlined_call_operand.vmem [shape: bf16[4,28], index: 1, kind: input, shape index: {}]   ;;  %s632_s2 = inlined_call_operand.vmem [shape: f32[4,1], index: 2, kind: input, shape index: {}]   ;;  %s633_s3 = inlined_call_operand.vmem [shape: bf16[2,4,256], index: 3, kind: output, shape index: {}]  }
   0x1 LB: > { %s502_s13 = sadd.s32 4294967295, %s558_s12   ;;  %p506_p0 = scmp.ge.s32.totalorder %s558_s12, 1  ;;  %s558_s12 = sphi %s588_s12, %s13_s12  }
   0x2   : > { %p137_p1 = scmp.lt.s32.totalorder %s558_s12, 3 }
   0x4   : > { %p138_p2 = pnand %p506_p0, %p137_p1 }
   0x5   : > { %p161_p3 = scmp.lt.s32.totalorder (!%p138_p2), %s502_s13, 1  ;;  %v189_v0 = vlaneseq (!%p138_p2)  ;;  %v560_v1 = vmov (!%p138_p2), 1983009808   ;;  %s561_s18 = smov (!%p138_p2), 96   ;;  %v567_v31 = vmov (!%p138_p2), 0   ;;  %vm206_vm0 = vcmask (!%p138_p2), 1043456  }
   0x6   : > { %141 = sbr.rel (%p138_p2) target bundleno = 391 (0x187), region = 32  ;;  %v187_v2 = vunpack.c.l.s4 (!%p138_p2), %v560_v1  ;;  %s562_s19 = smov (!%p138_p2), 112   ;;  %424 = vmatprep.mubr.bf16.mxu0 (!%p138_p2), %v567_v31  ;;  %539 = vset.pattern.permute.xlu0 (!%p138_p2), %v567_v31  ;;  %v357_v32 = vld [vmem:[%s632_s2] sm:$0xf] (!%p138_p2)  ;;  %vm236_vm1 = vcmask (!%p138_p2), 785408   ;;  %vm208_vm2 = vcmask (!%p138_p2), 916480  }
   0x7   : > { %v190_v3 = vshrl.u32 (!%p138_p2), %v189_v0, 7  ;;  %s563_s20 = smov (!%p138_p2), 80   ;;  %s564_s21 = smov (!%p138_p2), 64   ;;  %vm292_vm3 = vcmask (!%p138_p2), 523264   ;;  %vm264_vm4 = vcmask (!%p138_p2), 654336   ;;  %vm320_vm5 = vcmask (!%p138_p2), 392192  }
   0x8   : > { %v188_v4 = vunpack.c.0.s8 (!%p138_p2), %v187_v2  ;;  %s565_s22 = smov (!%p138_p2), 48   ;;  %s566_s23 = smov (!%p138_p2), 32   ;;  %vm348_vm6 = vcmask (!%p138_p2), 261120   ;;  %vm385_vm7 = vcmask (!%p138_p2), 1045504   ;;  %vm381_vm8 = vcmask (!%p138_p2), 228352  }
   0xa   : > { %v191_v5 = vsub.s32 (!%p138_p2), %v188_v4, %v190_v3 }
   0xd   : > { %s635_s13 = smov (!%p161_p3, %s502_s13), 1 }
   0xe   : > { %s522_s14 = smul.u32 6, %s635_s13  ;;  %s521_s28 = sshll.u32 %s635_s13, 2 }
   0xf   : > { %s170_s4 = scalar_lea.vmem %s633_s3, %s521_s28 }
  0x10   : > { %s602_s17 = scalar_lea.vmem %s630_s0, %s522_s14 }
  0x11   : > { %v212_v6 = vld [vmem:[%s602_s17] sm:$0x3f] }
  0x12   : > { %v510_v7 = vld.sshfl [vmem:[%s602_s17] sm:$0x33 pattern:$0x76325410]  ;;  %v221_v8 = vrot.slane %v212_v6, %v191_v5  ;;  %v214_v13 = vcombine.high %v212_v6, %v212_v6 }
  0x13   : > { %182 = vst [vmem:[#allocation2] sm:$0x33] %v510_v7  ;;  %v183_v9 = vld [vmem:[%s602_s17] sm:$0x3f] }
  0x14   : > { %v240_v10 = vld [vmem:[%s602_s17] sm:$0x3f]  ;;  %v199_v12 = vrot.slane %v183_v9, %v191_v5  ;;  %229 = vrot.lane.b32.xlu1 %v221_v8, %s561_s18  ;;  %v185_v15 = vcombine.low %v183_v9, %v183_v9  ;;  %v228_v17 = vrot.slane %v214_v13, %v191_v5 }
  0x15   : > { %v268_v11 = vld [vmem:[%s602_s17] sm:$0x3f]  ;;  %v256_v14 = vrot.slane %v240_v10, %v191_v5  ;;  %v242_v20 = vcombine.low %v240_v10, %v240_v10 }
  0x16   : > { %202 = vrot.lane.b32.xlu0 %v199_v12, %s562_s19  ;;  %v277_v16 = vrot.slane %v268_v11, %v191_v5  ;;  %v270_v18 = vcombine.high %v268_v11, %v268_v11  ;;  %v192_v19 = vrot.slane %v185_v15, %v191_v5  ;;  %v296_v21 = vld [vmem:[%s602_s17] sm:$0x3f] }
  0x17   : > { %v249_v23 = vrot.slane %v242_v20, %v191_v5  ;;  %v298_v24 = vcombine.low %v296_v21, %v296_v21  ;;  %v324_v25 = vld [vmem:[%s602_s17] sm:$0x3f]  ;;  %v312_v26 = vrot.slane %v296_v21, %v191_v5 }
  0x18   : > { %259 = vrot.lane.b32.xlu1 %v256_v14, %s563_s20  ;;  %v284_v22 = vrot.slane %v270_v18, %v191_v5  ;;  %v326_v27 = vcombine.high %v324_v25, %v324_v25  ;;  %v333_v30 = vrot.slane %v324_v25, %v191_v5  ;;  %v356_v10 = vld [vmem:[%s631_s1] sm:$0x3] }
  0x19   : > { %v305_v28 = vrot.slane %v298_v24, %v191_v5 }
  0x1a   : > { %285 = vrot.lane.b32.xlu0 %v277_v16, %s564_s21  ;;  %v340_v29 = vrot.slane %v326_v27, %v191_v5 }
  0x1c   : > { %231 = vrot.lane.b32.xlu1 %v228_v17, %s561_s18 }
  0x1e   : > { %200 = vrot.lane.b32.xlu0 %v192_v19, %s562_s19 }
  0x20   : > { %287 = vrot.lane.b32.xlu1 %v284_v22, %s564_s21 }
  0x22   : > { %257 = vrot.lane.b32.xlu0 %v249_v23, %s563_s20 }
  0x24   : > { %315 = vrot.lane.b32.xlu1 %v312_v26, %s565_s22 }
  0x26   : > { %313 = vrot.lane.b32.xlu0 %v305_v28, %s565_s22 }
  0x28   : > { %343 = vrot.lane.b32.xlu1 %v340_v29, %s566_s23 }
  0x2a   : > { %341 = vrot.lane.b32.xlu0 %v333_v30, %s566_s23 }
  0x2e   : > { %360 = vperm.xlu0 %539, %v357_v32  }
  0x86   : > { %v230_v33 = vpop.permute.xlu1 %229 }
  0x87   : > { %v233_v38 = vrot.slane %v230_v33, 4 }
  0x88   : > { %v203_v34 = vpop.permute.xlu0 %202 }
  0x89   : > { %v205_v41 = vrot.slane %v203_v34, 4 }
  0x8a   : > { %v260_v35 = vpop.permute.xlu1 %259 }
  0x8b   : > { %v262_v51 = vrot.slane %v260_v35, 4 }
  0x8c   : > { %v286_v36 = vpop.permute.xlu0 %285 }
  0x8d   : > { %v289_v47 = vrot.slane %v286_v36, 4 }
  0x8e   : > { %v232_v37 = vpop.permute.xlu1 %231 }
  0x8f   : > { %v234_v39 = vrot.slane %v232_v37, 4 }
  0x90   : > { %v201_v40 = vpop.permute.xlu0 %200 }
  0x91   : > { %v204_v42 = vrot.slane %v201_v40, 4  ;;  %v235_v43 = vsel %vm206_vm0, %v233_v38, %v234_v39 }
  0x92   : > { %v237_v44 = vsel %vm236_vm1, %v230_v33, %v235_v43  ;;  %v288_v46 = vpop.permute.xlu1 %287 }
  0x93   : > { %v207_v45 = vsel %vm206_vm0, %v204_v42, %v205_v41  ;;  %239 = vst [vmem:[#allocation2 + $0x8] sm:$0x33] %v237_v44  ;;  %v290_v49 = vrot.slane %v288_v46, 4 }
  0x94   : > { %v209_v48 = vsel %vm208_vm2, %v201_v40, %v207_v45  ;;  %v258_v50 = vpop.permute.xlu0 %257 }
  0x95   : > { %211 = vst [vmem:[#allocation2] sm:$0xcc] %v209_v48  ;;  %v261_v52 = vrot.slane %v258_v50, 4  ;;  %v291_v53 = vsel %vm206_vm0, %v289_v47, %v290_v49 }
  0x96   : > { %v293_v54 = vsel %vm292_vm3, %v286_v36, %v291_v53  ;;  %v316_v56 = vpop.permute.xlu1 %315 }
  0x97   : > { %v263_v55 = vsel %vm206_vm0, %v261_v52, %v262_v51  ;;  %295 = vst [vmem:[#allocation2 + $0x10] sm:$0x33] %v293_v54  ;;  %v318_v58 = vrot.slane %v316_v56, 4 }
  0x98   : > { %v265_v57 = vsel %vm264_vm4, %v258_v50, %v263_v55  ;;  %v314_v59 = vpop.permute.xlu0 %313 }
  0x99   : > { %267 = vst [vmem:[#allocation2 + $0x8] sm:$0xcc] %v265_v57  ;;  %v317_v60 = vrot.slane %v314_v59, 4 }
  0x9a   : > { %v344_v62 = vpop.permute.xlu1 %343 }
  0x9b   : > { %v319_v61 = vsel %vm206_vm0, %v317_v60, %v318_v58  ;;  %v346_v0 = vrot.slane %v344_v62, 4 }
  0x9c   : > { %v321_v63 = vsel %vm320_vm5, %v314_v59, %v319_v61  ;;  %v342_v1 = vpop.permute.xlu0 %341 }
  0x9d   : > { %323 = vst [vmem:[#allocation2 + $0x10] sm:$0xcc] %v321_v63  ;;  %v345_v2 = vrot.slane %v342_v1, 4 }
  0x9f   : > { %v347_v3 = vsel %vm206_vm0, %v345_v2, %v346_v0 }
  0xa0   : > { %v349_v4 = vsel %vm348_vm6, %v342_v1, %v347_v3  ;;  %v546_v5 = vld [vmem:[#allocation2 + $0x4] ss:$8 sps:$4 sm:$0xff]   ;;  %v548_v6 = vld [vmem:[#allocation2] ss:$8 sps:$4 sm:$0xff]  }
  0xa1   : > { %351 = vst [vmem:[#allocation2 + $0x18] sm:$0x33] %v349_v4  ;;  %392 = vmatprep.subr.bf16.mxu0 %v546_v5 }
  0xa2   : > { %393 = vmatpush1.bf16.msra.mxu0 %v548_v6 }
  0xa8   : > { %v549_v7 = vld [vmem:[#allocation2 + $0x14] ss:$8 sps:$4 sm:$0x3f]   ;;  %v551_v8 = vld [vmem:[#allocation2 + $0x10] ss:$8 sps:$4 sm:$0x3f]  }
  0xa9   : > { %515 = vmatprep.subr.msk.bf16.mxu0 %vm385_vm7, %v549_v7  ;;  %v387_v9 = vsel %vm385_vm7, %v551_v8, 0 }
  0xaa   : > { %395 = vmatpush1.bf16.msra.mxu0 %v387_v9 }
  0xad   : > { %516 = vmatmul.mubr.msk.bf16.vlgmr.msra.gmra.mrb[0].mxu0 %vm381_vm8, %v356_v10  ;;  %v361_v11 = vpop.permute.xlu0 %360 }
 0x180   : > { %v426_v12 = vpop.f32.mrb[0].mxu0 }
 0x181   : > { %v427_v13 = vadd.f32 %v426_v12, %v361_v11  ;;  %v428_v14 = vpop.f32.mrb[1].mxu0 }
 0x182   : > { %v429_v15 = vadd.f32 %v428_v14, %v361_v11  ;;  %v430_v16 = vpop.f32.mrb[2].mxu0 }
 0x183   : > { %v431_v17 = vpop.f32.mrb[3].mxu0 }
 0x184   : > { %v517_v18 = vpack.c.bf16 %v429_v15, %v427_v13 }
 0x186   : > { %518 = vst.sshfl [vmem:[%s170_s4] sm:$0x33 pattern:$0x76325410] %v517_v18 }
 0x187 PF: > { %s13_s12 = sadd.s32 1, %s558_s12  }
 0x188   : > { %p10_p4 = scmp.ge.s32.totalorder %s13_s12, 4  }
 0x18a   :  { %12 = sbr.rel (!%p10_p4) target bundleno = 1 (0x1), region = 62 }

// kernel: rfb_forward.20
= control target key start
LH: loop header
LB: loop body
LE: loop exit
PB: predicated region body
PF: predicated region fallthrough
CT: control target
= control target key end

     0   :  { %s895_s12 = smov 0   ;;  %s1008_s0 = inlined_call_operand.vmem [shape: bf16[2,4,914], index: 0, kind: input, shape index: {}]   ;;  %s1009_s1 = inlined_call_operand.vmem [shape: bf16[4,36], index: 1, kind: input, shape index: {}]   ;;  %s1010_s2 = inlined_call_operand.vmem [shape: f32[4,1], index: 2, kind: input, shape index: {}]   ;;  %s1011_s3 = inlined_call_operand.vmem [shape: bf16[2,4,480], index: 3, kind: output, shape index: {}]  }
   0x1 LB: > { %s780_s13 = sadd.s32 4294967295, %s863_s12   ;;  %p784_p0 = scmp.ge.s32.totalorder %s863_s12, 1  ;;  %s863_s12 = sphi %s895_s12, %s13_s12  }
   0x2   : > { %p137_p1 = scmp.lt.s32.totalorder %s863_s12, 3 }
   0x4   : > { %p138_p2 = pnand %p784_p0, %p137_p1 }
   0x5   : > { %p161_p3 = scmp.lt.s32.totalorder (!%p138_p2), %s780_s13, 1  ;;  %v185_v0 = vlaneseq (!%p138_p2)  ;;  %v865_v1 = vmov (!%p138_p2), 1983009808   ;;  %vm721_vm0 = vcmask (!%p138_p2), 1045508   ;;  %vm192_vm1 = vcmask (!%p138_p2), 1041408   ;;  %s866_s18 = smov (!%p138_p2), 114  }
   0x6   : > { %141 = sbr.rel (%p138_p2) target bundleno = 414 (0x19e), region = 32  ;;  %v183_v2 = vunpack.c.l.s4 (!%p138_p2), %v865_v1  ;;  %vm227_vm2 = vcmask (!%p138_p2), 1043458   ;;  %vm228_vm4 = vcmask (!%p138_p2), 785414   ;;  %vm193_vm7 = vcmask (!%p138_p2), 783364   ;;  %s867_s19 = smov (!%p138_p2), 121  }
   0x7   : > { %v186_v3 = vshrl.u32 (!%p138_p2), %v185_v0, 7  ;;  %vm720_vm3 = vmor (!%p138_p2), %vm227_vm2, %vm192_vm1  ;;  %s868_s20 = smov (!%p138_p2), 46   ;;  %s869_s21 = smov (!%p138_p2), 39   ;;  %v874_v34 = vmov (!%p138_p2), 0   ;;  %v540_v35 = vld [vmem:[%s1010_s2] sm:$0xf] (!%p138_p2) }
   0x8   : > { %v184_v4 = vunpack.c.0.s8 (!%p138_p2), %v183_v2  ;;  %vm722_vm5 = vmor (!%p138_p2), %vm721_vm0, %vm720_vm3  ;;  %s870_s22 = smov (!%p138_p2), 32   ;;  %s871_s23 = smov (!%p138_p2), 92   ;;  %644 = vmatprep.mubr.bf16.mxu0 (!%p138_p2), %v874_v34  ;;  %685 = vmatprep.mubr.bf16.mxu1 (!%p138_p2), %v874_v34  ;;  %vm221_vm9 = vcmask (!%p138_p2), 990208   ;;  %vm219_vm11 = vcmask (!%p138_p2), 1043456   ;;  %vm255_vm12 = vcmask (!%p138_p2), 932864  }
   0x9   : > { %vm916_vm6 = vmor (!%p138_p2), %vm228_vm4, %vm722_vm5  ;;  %s872_s24 = smov (!%p138_p2), 85   ;;  %s873_s25 = smov (!%p138_p2), 78   ;;  %833 = vset.pattern.permute.xlu0 (!%p138_p2), %v874_v34  ;;  %vm299_vm13 = vcmask (!%p138_p2), 375808   ;;  %vm343_vm14 = vcmask (!%p138_p2), 318464   ;;  %vm388_vm15 = vcmask (!%p138_p2), 261120   ;;  %vm432_vm0 = vcmask (!%p138_p2), 752640  }
   0xa   : > { %v913_v5 = vsub.s32 (!%p138_p2), %v184_v4, %v186_v3  ;;  %vm925_vm8 = vmor (!%p138_p2), %vm193_vm7, %vm192_vm1  ;;  %vm521_vm3 = vcmask (!%p138_p2), 637952  }
   0xb   : > { %vm952_vm10 = vmor (!%p138_p2), %vm228_vm4, %vm227_vm2  ;;  %vm477_vm2 = vcmask (!%p138_p2), 695296   ;;  %vm596_vm4 = vcmask (!%p138_p2), 293888  }
   0xd   : > { %s1019_s13 = smov (!%p161_p3, %s780_s13), 1 }
   0xe   : > { %s813_s14 = sshll.u32 %s1019_s13, 4  ;;  %s814_s30 = sshll.u32 %s1019_s13, 3 }
   0xf   : > { %s911_s17 = scalar_lea.vmem %s1008_s0, %s813_s14  ;;  %s170_s6 = scalar_lea.vmem %s1011_s3, %s814_s30 }
  0x10   : > { %v231_v7 = vld [vmem:[%s911_s17] sm:$0xff]  ;;  %v837_v18 = vld [vmem:[%s911_s17 + $0xa] ss:$0 sps:$4 sm:$0x33]  }
  0x11   : > { %v262_v8 = vld [vmem:[%s911_s17 + $0x2] sm:$0xff]  ;;  %v240_v9 = vrot.slane %v231_v7, %v913_v5  ;;  %v233_v10 = vcombine.high %v231_v7, %v231_v7  ;;  %v198_v11 = vcombine.low %v231_v7, %v231_v7  ;;  %789 = vst.sshfl [vmem:[#allocation2] sm:$0xf pattern:$0x76325410] %v231_v7  ;;  %v288_v19 = vrot.slane %v837_v18, %v913_v5 }
  0x12   : > { %v280_v12 = vrot.slane %v262_v8, %v913_v5  ;;  %v266_v16 = vcombine.low %v262_v8, %v262_v8  ;;  %v311_v20 = vcombine.high %v262_v8, %v262_v8  ;;  %v790_v22 = vld.sshfl [vmem:[%s911_s17 + $0xa] sm:$0x3 pattern:$0x76325410] }
  0x13   : > { %248 = vrot.lane.b32.xlu1 %v240_v9, %s866_s18  ;;  %215 = vrot.lane.b32.xlu0 %v240_v9, %s867_s19  ;;  %v205_v14 = vrot.slane %v198_v11, %v913_v5  ;;  %v247_v15 = vrot.slane %v233_v10, %v913_v5  ;;  %v839_v23 = vld [vmem:[%s911_s17 + $0xa] ss:$0 sps:$4 sm:$0x33]   ;;  %v842_v32 = vld [vmem:[%s911_s17 + $0xe] ss:$0 sps:$4 sm:$0x33]  }
  0x14   : > { %v273_v17 = vrot.slane %v266_v16, %v913_v5  ;;  %v325_v21 = vrot.slane %v311_v20, %v913_v5  ;;  %v396_v24 = vld [vmem:[%s911_s17 + $0x6] sm:$0xff]  ;;  %v377_v26 = vrot.slane %v839_v23, %v913_v5  ;;  %v791_v30 = vld.sshfl [vmem:[%s911_s17 + $0xe] sm:$0x3 pattern:$0x76325410]  ;;  %v466_v33 = vrot.slane %v842_v32, %v913_v5 }
  0x15   : > { %195 = vst.msk [vmem:[#allocation2 + $0x8] sm:$0x33] %vm925_vm8, %v247_v15  ;;  %v407_v25 = vrot.slane %v396_v24, %v913_v5  ;;  %v400_v27 = vcombine.high %v396_v24, %v396_v24  ;;  %v444_v29 = vcombine.low %v396_v24, %v396_v24 }
  0x17   : > { %291 = vrot.lane.b32.xlu1 %v280_v12, %s868_s20  ;;  %213 = vrot.lane.b32.xlu0 %v205_v14, %s867_s19  ;;  %v414_v28 = vrot.slane %v400_v27, %v913_v5  ;;  %v451_v31 = vrot.slane %v444_v29, %v913_v5 }
  0x1b   : > { %250 = vrot.lane.b32.xlu1 %v247_v15, %s866_s18  ;;  %289 = vrot.lane.b32.xlu0 %v273_v17, %s868_s20 }
  0x1f   : > { %333 = vrot.lane.b32.xlu1 %v280_v12, %s869_s21  ;;  %293 = vrot.lane.b32.xlu0 %v288_v19, %s868_s20 }
  0x23   : > { %337 = vrot.lane.b32.xlu1 %v790_v22, %s869_s21  ;;  %335 = vrot.lane.b32.xlu0 %v325_v21, %s869_s21 }
  0x27   : > { %380 = vrot.lane.b32.xlu1 %v280_v12, %s870_s22  ;;  %378 = vrot.lane.b32.xlu0 %v273_v17, %s870_s22 }
  0x2b   : > { %422 = vrot.lane.b32.xlu1 %v407_v25, %s871_s23  ;;  %382 = vrot.lane.b32.xlu0 %v377_v26, %s870_s22 }
  0x2f   : > { %426 = vrot.lane.b32.xlu1 %v791_v30, %s871_s23  ;;  %424 = vrot.lane.b32.xlu0 %v414_v28, %s871_s23 }
  0x33   : > { %469 = vrot.lane.b32.xlu1 %v407_v25, %s872_s24  ;;  %467 = vrot.lane.b32.xlu0 %v451_v31, %s872_s24 }
  0x37   : > { %511 = vrot.lane.b32.xlu1 %v407_v25, %s873_s25  ;;  %471 = vrot.lane.b32.xlu0 %v466_v33, %s872_s24 }
  0x3b   : > { %515 = vrot.lane.b32.xlu1 %v791_v30, %s873_s25  ;;  %513 = vrot.lane.b32.xlu0 %v414_v28, %s873_s25 }
  0x3f   : > { %543 = vperm.xlu0 %833, %v540_v35  }
  0x85   : > { %v249_v36 = vpop.permute.xlu1 %248  ;;  %v216_v37 = vpop.permute.xlu0 %215 }
  0x86   : > { %v218_v39 = vrot.slane %v216_v37, 4  ;;  %v252_v48 = vrot.slane %v249_v36, 4 }
  0x88   : > { %v223_v40 = vsel %vm221_vm9, %v216_v37, %v218_v39 }
  0x89   : > { %230 = vst.msk [vmem:[#allocation2 + $0x8] sm:$0xcc] %vm952_vm10, %v223_v40  ;;  %v292_v41 = vpop.permute.xlu1 %291  ;;  %v214_v42 = vpop.permute.xlu0 %213 }
  0x8a   : > { %v217_v43 = vrot.slane %v214_v42, 4  ;;  %v296_v49 = vrot.slane %v292_v41, 4 }
  0x8c   : > { %v220_v44 = vsel %vm219_vm11, %v217_v43, %v218_v39 }
  0x8d   : > { %v222_v45 = vsel %vm221_vm9, %v214_v42, %v220_v44  ;;  %v251_v46 = vpop.permute.xlu1 %250  ;;  %v290_v47 = vpop.permute.xlu0 %289 }
  0x8e   : > { %226 = vst [vmem:[#allocation2] sm:$0xcc] %v222_v45  ;;  %v253_v50 = vrot.slane %v251_v46, 4  ;;  %v295_v51 = vrot.slane %v290_v47, 4 }
  0x90   : > { %v254_v52 = vsel %vm219_vm11, %v252_v48, %v253_v50  ;;  %v257_v53 = vsel %vm255_vm12, %v251_v46, %v253_v50  ;;  %v298_v54 = vsel %vm219_vm11, %v295_v51, %v296_v49  ;;  %v530_v22 = vld [vmem:[#allocation2 + $0x8] sm:$0xff] }
  0x91   : > { %v256_v55 = vsel %vm255_vm12, %v249_v36, %v254_v52  ;;  %261 = vst.msk [vmem:[#allocation2 + $0x18] sm:$0x33] %vm925_vm8, %v257_v53  ;;  %v300_v56 = vsel %vm299_vm13, %v290_v47, %v298_v54  ;;  %v334_v57 = vpop.permute.xlu1 %333  ;;  %v294_v58 = vpop.permute.xlu0 %293 }
  0x92   : > { %260 = vst [vmem:[#allocation2 + $0x10] sm:$0x33] %v256_v55  ;;  %305 = vst [vmem:[#allocation2 + $0x10] sm:$0xcc] %v300_v56  ;;  %v297_v59 = vrot.slane %v294_v58, 4  ;;  %v339_v0 = vrot.slane %v334_v57, 4 }
  0x94   : > { %v301_v60 = vsel %vm219_vm11, %v296_v49, %v297_v59 }
  0x95   : > { %v302_v61 = vsel %vm299_vm13, %v292_v41, %v301_v60  ;;  %v338_v62 = vpop.permute.xlu1 %337  ;;  %v336_v63 = vpop.permute.xlu0 %335  ;;  %v529_v11 = vld [vmem:[#allocation2] sm:$0xff] }
  0x96   : > { %306 = vst.msk [vmem:[#allocation2 + $0x18] sm:$0xcc] %vm952_vm10, %v302_v61  ;;  %v341_v1 = vrot.slane %v338_v62, 4  ;;  %v340_v2 = vrot.slane %v336_v63, 4 }
  0x98   : > { %v342_v3 = vsel %vm219_vm11, %v339_v0, %v340_v2  ;;  %v345_v4 = vsel %vm219_vm11, %v340_v2, %v341_v1 }
  0x99   : > { %v344_v7 = vsel %vm343_vm14, %v334_v57, %v342_v3  ;;  %v346_v8 = vsel %vm343_vm14, %v336_v63, %v345_v4  ;;  %v381_v9 = vpop.permute.xlu1 %380  ;;  %v379_v10 = vpop.permute.xlu0 %378  ;;  %v531_v12 = vld [vmem:[#allocation2 + $0x10] sm:$0xff] }
  0x9a   : > { %v843_v14 = vld [vmem:[#allocation2 + $0x4] ss:$16 sps:$4 sm:$0xff]   ;;  %349 = vst [vmem:[#allocation2 + $0x20] sm:$0x33] %v344_v7  ;;  %350 = vst.msk [vmem:[#allocation2 + $0x28] sm:$0x33] %vm925_vm8, %v346_v8  ;;  %v793_v17 = vcombine.low %v529_v11, %v531_v12 }
  0x9b   : > { %v385_v15 = vrot.slane %v381_v9, 4  ;;  %v384_v16 = vrot.slane %v379_v10, 4  ;;  %612 = vmatprep.subr.bf16.mxu0 %v843_v14  ;;  %v539_v7 = vld [vmem:[%s1009_s1] sm:$0x3] }
  0x9c   : > { %613 = vmatpush1.bf16.msra.mxu0 %v793_v17 }
  0x9d   : > { %v387_v18 = vsel %vm219_vm11, %v384_v16, %v385_v15  ;;  %v423_v20 = vpop.permute.xlu1 %422  ;;  %v383_v21 = vpop.permute.xlu0 %382  ;;  %v532_v23 = vld [vmem:[#allocation2 + $0x18] sm:$0xff] }
  0x9e   : > { %v389_v19 = vsel %vm388_vm15, %v379_v10, %v387_v18  ;;  %v845_v24 = vld [vmem:[#allocation2 + $0xc] ss:$16 sps:$4 sm:$0xff]   ;;  %v386_v25 = vrot.slane %v383_v21, 4  ;;  %v795_v26 = vcombine.low %v530_v22, %v532_v23  ;;  %v428_v31 = vrot.slane %v423_v20, 4 }
  0x9f   : > { %394 = vst [vmem:[#allocation2 + $0x20] sm:$0xcc] %v389_v19  ;;  %653 = vmatprep.subr.bf16.mxu1 %v845_v24 }
  0xa0   : > { %v390_v27 = vsel %vm219_vm11, %v385_v15, %v386_v25  ;;  %654 = vmatpush1.bf16.msra.mxu1 %v795_v26 }
  0xa1   : > { %v391_v28 = vsel %vm388_vm15, %v381_v9, %v390_v27  ;;  %v427_v29 = vpop.permute.xlu1 %426  ;;  %v425_v30 = vpop.permute.xlu0 %424 }
  0xa2   : > { %395 = vst.msk [vmem:[#allocation2 + $0x28] sm:$0xcc] %vm952_vm10, %v391_v28  ;;  %v430_v32 = vrot.slane %v427_v29, 4  ;;  %v429_v33 = vrot.slane %v425_v30, 4 }
  0xa4   : > { %v431_v34 = vsel %vm219_vm11, %v428_v31, %v429_v33  ;;  %v434_v35 = vsel %vm219_vm11, %v429_v33, %v430_v32 }
  0xa5   : > { %v433_v36 = vsel %vm432_vm0, %v423_v20, %v431_v34  ;;  %v435_v37 = vsel %vm432_vm0, %v425_v30, %v434_v35  ;;  %v470_v39 = vpop.permute.xlu1 %469  ;;  %v468_v40 = vpop.permute.xlu0 %467 }
  0xa6   : > { %438 = vst [vmem:[#allocation2 + $0x30] sm:$0x33] %v433_v36  ;;  %439 = vst.msk [vmem:[#allocation2 + $0x38] sm:$0x33] %vm925_vm8, %v435_v37  ;;  %v474_v41 = vrot.slane %v470_v39, 4  ;;  %v473_v42 = vrot.slane %v468_v40, 4 }
  0xa8   : > { %v476_v43 = vsel %vm219_vm11, %v473_v42, %v474_v41 }
  0xa9   : > { %v478_v44 = vsel %vm477_vm2, %v468_v40, %v476_v43  ;;  %v512_v45 = vpop.permute.xlu1 %511  ;;  %v472_v46 = vpop.permute.xlu0 %471 }
  0xaa   : > { %483 = vst [vmem:[#allocation2 + $0x30] sm:$0xcc] %v478_v44  ;;  %v475_v47 = vrot.slane %v472_v46, 4  ;;  %v517_v52 = vrot.slane %v512_v45, 4 }
  0xac   : > { %v479_v48 = vsel %vm219_vm11, %v474_v41, %v475_v47 }
  0xad   : > { %v480_v49 = vsel %vm477_vm2, %v470_v39, %v479_v48  ;;  %v516_v50 = vpop.permute.xlu1 %515  ;;  %v514_v51 = vpop.permute.xlu0 %513 }
  0xae   : > { %484 = vst.msk [vmem:[#allocation2 + $0x38] sm:$0xcc] %vm952_vm10, %v480_v49  ;;  %v519_v53 = vrot.slane %v516_v50, 4  ;;  %v518_v54 = vrot.slane %v514_v51, 4 }
  0xb0   : > { %v520_v55 = vsel %vm219_vm11, %v517_v52, %v518_v54  ;;  %v523_v56 = vsel %vm219_vm11, %v518_v54, %v519_v53 }
  0xb1   : > { %v522_v57 = vsel %vm521_vm3, %v512_v45, %v520_v55  ;;  %v524_v58 = vsel %vm521_vm3, %v514_v51, %v523_v56  ;;  %v847_v59 = vld [vmem:[#allocation2 + $0x24] ss:$16 sps:$4 sm:$0xff]   ;;  %v849_v60 = vld [vmem:[#allocation2 + $0x20] ss:$16 sps:$4 sm:$0xff]  }
  0xb2   : > { %527 = vst [vmem:[#allocation2 + $0x40] sm:$0x33] %v522_v57  ;;  %528 = vst.msk [vmem:[#allocation2 + $0x48] sm:$0x33] %vm925_vm8, %v524_v58  ;;  %614 = vmatprep.subr.bf16.mxu0 %v847_v59 }
  0xb3   : > { %615 = vmatpush1.bf16.msra.mxu0 %v849_v60 }
  0xb5   : > { %v850_v61 = vld [vmem:[#allocation2 + $0x2c] ss:$16 sps:$4 sm:$0xff]   ;;  %v852_v38 = vld [vmem:[#allocation2 + $0x28] ss:$16 sps:$4 sm:$0xff]  }
  0xb6   : > { %655 = vmatprep.subr.bf16.mxu1 %v850_v61 }
  0xb7   : > { %656 = vmatpush1.bf16.msra.mxu1 %v852_v38 }
  0xb9   : > { %v537_v62 = vld [vmem:[#allocation2 + $0x40] sm:$0x33]  ;;  %v538_v63 = vld [vmem:[#allocation2 + $0x48] sm:$0x33] }
  0xba   : > { %v802_v0 = vcombine.high %v537_v62, %v537_v62  ;;  %v804_v1 = vcombine.high %v538_v63, %v538_v63  ;;  %v801_v2 = vcombine.low %v537_v62, %v537_v62  ;;  %v803_v3 = vcombine.low %v538_v63, %v538_v63 }
  0xbc   : > { %805 = vmatprep.subr.msk.bf16.mxu0 %vm192_vm1, %v802_v0  ;;  %807 = vmatprep.subr.msk.bf16.mxu1 %vm192_vm1, %v804_v1  ;;  %v601_v4 = vsel %vm192_vm1, %v801_v2, 0  ;;  %v607_v13 = vsel %vm192_vm1, %v803_v3, 0 }
  0xbd   : > { %617 = vmatpush1.bf16.msra.mxu0 %v601_v4  ;;  %658 = vmatpush1.bf16.msra.mxu1 %v607_v13 }
  0xbe   : > { %v544_v8 = vpop.permute.xlu0 %543 }
  0xc0   : > { %806 = vmatmul.mubr.msk.bf16.vlgmr.msra.gmra.mrb[0].mxu0 %vm596_vm4, %v539_v7  ;;  %808 = vmatmul.mubr.msk.bf16.vlgmr.msra.gmra.mrb[0].mxu1 %vm596_vm4, %v539_v7 }
 0x193   : > { %v646_v9 = vpop.f32.mrb[0].mxu0  ;;  %v687_v10 = vpop.f32.mrb[0].mxu1 }
 0x194   : > { %v647_v11 = vadd.f32 %v646_v9, %v544_v8  ;;  %v688_v12 = vadd.f32 %v687_v10, %v544_v8  ;;  %v648_v14 = vpop.f32.mrb[1].mxu0  ;;  %v689_v15 = vpop.f32.mrb[1].mxu1 }
 0x195   : > { %v649_v16 = vadd.f32 %v648_v14, %v544_v8  ;;  %v690_v17 = vadd.f32 %v689_v15, %v544_v8  ;;  %v650_v18 = vpop.f32.mrb[2].mxu0  ;;  %v691_v19 = vpop.f32.mrb[2].mxu1 }
 0x196   : > { %v651_v20 = vpop.f32.mrb[3].mxu0  ;;  %v692_v21 = vpop.f32.mrb[3].mxu1 }
 0x197   : > { %v809_v22 = vpack.c.bf16 %v649_v16, %v647_v11  ;;  %v810_v23 = vpack.c.bf16 %v690_v17, %v688_v12 }
 0x199   : > { %v710_v24 = vrot.slane %v809_v22, %v913_v5  ;;  %v717_v25 = vrot.slane %v810_v23, %v913_v5 }
 0x19b   : > { %v718_v26 = vcombine.low %v710_v24, %v717_v25 }
 0x19d   : > { %724 = vst.msk [vmem:[%s170_s6] sm:$0xff] %vm916_vm6, %v718_v26 }
 0x19e PF: > { %s13_s12 = sadd.s32 1, %s863_s12  }
 0x19f   : > { %p10_p4 = scmp.ge.s32.totalorder %s13_s12, 4  }
 0x1a1   :  { %12 = sbr.rel (!%p10_p4) target bundleno = 1 (0x1), region = 62 }

// kernel: rfb_forward.15
= control target key start
LH: loop header
LB: loop body
LE: loop exit
PB: predicated region body
PF: predicated region fallthrough
CT: control target
= control target key end

     0   :  { %s628_s12 = smov 0   ;;  %s682_s0 = inlined_call_operand.vmem [shape: bf16[2,4,324], index: 0, kind: input, shape index: {}]   ;;  %s683_s1 = inlined_call_operand.vmem [shape: bf16[4,20], index: 1, kind: input, shape index: {}]   ;;  %s684_s2 = inlined_call_operand.vmem [shape: f32[4,1], index: 2, kind: input, shape index: {}]   ;;  %s685_s3 = inlined_call_operand.vmem [shape: bf16[2,4,320], index: 3, kind: output, shape index: {}]  }
   0x1 LB: > { %s531_s13 = sadd.s32 4294967295, %s598_s12   ;;  %p535_p0 = scmp.ge.s32.totalorder %s598_s12, 1  ;;  %s598_s12 = sphi %s628_s12, %s13_s12  }
   0x2   : > { %p137_p1 = scmp.lt.s32.totalorder %s598_s12, 3 }
   0x4   : > { %p138_p2 = pnand %p535_p0, %p137_p1 }
   0x5   : > { %p161_p3 = scmp.lt.s32.totalorder (!%p138_p2), %s531_s13, 1  ;;  %v185_v0 = vlaneseq (!%p138_p2)  ;;  %v600_v1 = vmov (!%p138_p2), 1983009808   ;;  %s601_s18 = smov (!%p138_p2), 126   ;;  %vm192_vm0 = vcmask (!%p138_p2), 517120   ;;  %v603_v20 = vmov (!%p138_p2), 0.0  }
   0x6   : > { %141 = sbr.rel (%p138_p2) target bundleno = 388 (0x184), region = 32  ;;  %v183_v2 = vunpack.c.l.s4 (!%p138_p2), %v600_v1  ;;  %s602_s19 = smov (!%p138_p2), 127   ;;  %554 = vmatprep.subr.bf16.mxu1 (!%p138_p2), %v603_v20  ;;  %vm606_vm1 = vmmov (!%p138_p2), 0   ;;  %v607_v26 = vmov (!%p138_p2), 0   ;;  %v323_v27 = vld [vmem:[%s684_s2] sm:$0xf] (!%p138_p2) }
   0x7   : > { %v186_v3 = vshrl.u32 (!%p138_p2), %v185_v0, 7  ;;  %s604_s20 = smov (!%p138_p2), 125   ;;  %s605_s21 = smov (!%p138_p2), 124   ;;  %558 = vmatprep.mubr.msk.bf16.mxu1 (!%p138_p2), %vm606_vm1, %v603_v20  ;;  %399 = vmatprep.mubr.bf16.mxu0 (!%p138_p2), %v607_v26  ;;  %vm224_vm2 = vcmask (!%p138_p2), 519170   ;;  %vm217_vm3 = vcmask (!%p138_p2), 1043456   ;;  %vm219_vm4 = vcmask (!%p138_p2), 1039360  }
   0x8   : > { %v184_v4 = vunpack.c.0.s8 (!%p138_p2), %v183_v2  ;;  %579 = vset.pattern.permute.xlu0 (!%p138_p2), %v607_v26  ;;  %vm250_vm5 = vcmask (!%p138_p2), 1031168   ;;  %vm280_vm6 = vcmask (!%p138_p2), 1022976   ;;  %vm310_vm7 = vcmask (!%p138_p2), 1014784   ;;  %v322_v58 = vld [vmem:[%s683_s1] sm:$0x3] (!%p138_p2) }
   0x9   : > { %vm357_vm8 = vcmask (!%p138_p2), 1041408   ;;  %vm353_vm9 = vcmask (!%p138_p2), 162816   ;;  %vm471_vm10 = vcmask (!%p138_p2), 1043458   ;;  %vm473_vm12 = vcmask (!%p138_p2), 521220  }
   0xa   : > { %v639_v5 = vsub.s32 (!%p138_p2), %v184_v4, %v186_v3  ;;  %vm472_vm11 = vmor (!%p138_p2), %vm471_vm10, %vm357_vm8 }
   0xb   : > { %vm474_vm13 = vmor (!%p138_p2), %vm473_vm12, %vm472_vm11 }
   0xd   : > { %s687_s13 = smov (!%p161_p3, %s531_s13), 1 }
   0xe   : > { %s562_s14 = smul.u32 6, %s687_s13 }
  0x10   : > { %s165_s17 = scalar_lea.vmem %s682_s0, %s562_s14  ;;  %s170_s28 = scalar_lea.vmem %s685_s3, %s562_s14 }
  0x11   : > { %v226_v6 = vld [vmem:[%s165_s17] sm:$0x3f] }
  0x12   : > { %v194_v7 = vld [vmem:[%s165_s17] sm:$0x3f]  ;;  %v235_v9 = vrot.slane %v226_v6, %v639_v5  ;;  %v228_v13 = vcombine.high %v226_v6, %v226_v6 }
  0x13   : > { %v256_v8 = vld [vmem:[%s165_s17] sm:$0x3f]  ;;  %v210_v10 = vrot.slane %v194_v7, %v639_v5  ;;  %v196_v11 = vcombine.low %v194_v7, %v194_v7 }
  0x14   : > { %v172_v12 = vld [vmem:[%s165_s17] sm:$0x3f]  ;;  %v272_v14 = vrot.slane %v256_v8, %v639_v5  ;;  %243 = vrot.lane.b32.xlu1 %v235_v9, %s601_s18  ;;  %v258_v16 = vcombine.low %v256_v8, %v256_v8  ;;  %v242_v21 = vrot.slane %v228_v13, %v639_v5 }
  0x15   : > { %538 = vst.sshfl [vmem:[#allocation2] sm:$0xf pattern:$0x76325410] %v172_v12  ;;  %213 = vrot.lane.b32.xlu0 %v210_v10, %s602_s19  ;;  %v203_v15 = vrot.slane %v196_v11, %v639_v5  ;;  %v174_v17 = vcombine.high %v172_v12, %v172_v12  ;;  %v286_v18 = vld [vmem:[%s165_s17] sm:$0x3f] }
  0x16   : > { %v265_v22 = vrot.slane %v258_v16, %v639_v5  ;;  %v288_v23 = vcombine.high %v286_v18, %v286_v18  ;;  %v295_v25 = vrot.slane %v286_v18, %v639_v5 }
  0x17   : > { %v188_v19 = vrot.slane %v174_v17, %v639_v5 }
  0x18   : > { %275 = vrot.lane.b32.xlu1 %v272_v14, %s604_s20  ;;  %v302_v24 = vrot.slane %v288_v23, %v639_v5 }
  0x19   : > { %211 = vrot.lane.b32.xlu0 %v203_v15, %s602_s19  ;;  %193 = vst.msk [vmem:[#allocation2 + $0x8] sm:$0x3] %vm192_vm0, %v188_v19 }
  0x1c   : > { %245 = vrot.lane.b32.xlu1 %v242_v21, %s601_s18 }
  0x1d   : > { %273 = vrot.lane.b32.xlu0 %v265_v22, %s604_s20 }
  0x20   : > { %305 = vrot.lane.b32.xlu1 %v302_v24, %s605_s21 }
  0x21   : > { %303 = vrot.lane.b32.xlu0 %v295_v25, %s605_s21 }
  0x25   : > { %326 = vperm.xlu0 %579, %v323_v27  }
  0x86   : > { %v244_v28 = vpop.permute.xlu1 %243 }
  0x87   : > { %v214_v29 = vpop.permute.xlu0 %213  ;;  %v247_v38 = vrot.slane %v244_v28, 4 }
  0x88   : > { %225 = vst.msk [vmem:[#allocation2 + $0x8] sm:$0xc] %vm224_vm2, %v214_v29  ;;  %v216_v32 = vrot.slane %v214_v29, 4 }
  0x8a   : > { %v276_v30 = vpop.permute.xlu1 %275 }
  0x8b   : > { %v212_v31 = vpop.permute.xlu0 %211  ;;  %285 = vst.msk [vmem:[#allocation2 + $0x14] sm:$0xc] %vm224_vm2, %v276_v30  ;;  %v278_v39 = vrot.slane %v276_v30, 4 }
  0x8c   : > { %v215_v33 = vrot.slane %v212_v31, 4 }
  0x8e   : > { %v218_v34 = vsel %vm217_vm3, %v215_v33, %v216_v32  ;;  %v246_v36 = vpop.permute.xlu1 %245 }
  0x8f   : > { %v220_v35 = vsel %vm219_vm4, %v212_v31, %v218_v34  ;;  %v274_v37 = vpop.permute.xlu0 %273  ;;  %v248_v40 = vrot.slane %v246_v36, 4  ;;  %255 = vst.msk [vmem:[#allocation2 + $0x14] sm:$0x3] %vm192_vm0, %v246_v36 }
  0x90   : > { %223 = vst [vmem:[#allocation2] sm:$0xcc] %v220_v35  ;;  %v277_v41 = vrot.slane %v274_v37, 4 }
  0x91   : > { %v249_v42 = vsel %vm217_vm3, %v247_v38, %v248_v40 }
  0x92   : > { %v279_v43 = vsel %vm217_vm3, %v277_v41, %v278_v39  ;;  %v251_v44 = vsel %vm250_vm5, %v244_v28, %v249_v42  ;;  %v306_v46 = vpop.permute.xlu1 %305 }
  0x93   : > { %v281_v45 = vsel %vm280_vm6, %v274_v37, %v279_v43  ;;  %v304_v47 = vpop.permute.xlu0 %303  ;;  %254 = vst [vmem:[#allocation2 + $0xc] sm:$0x33] %v251_v44  ;;  %v308_v48 = vrot.slane %v306_v46, 4  ;;  %315 = vst.msk [vmem:[#allocation2 + $0x20] sm:$0x3] %vm192_vm0, %v306_v46 }
  0x94   : > { %284 = vst [vmem:[#allocation2 + $0xc] sm:$0xcc] %v281_v45  ;;  %v307_v49 = vrot.slane %v304_v47, 4 }
  0x96   : > { %v309_v50 = vsel %vm217_vm3, %v307_v49, %v308_v48  ;;  %v585_v52 = vld [vmem:[#allocation2 + $0x8] ss:$12 sps:$4 sm:$0xff]  }
  0x97   : > { %v311_v51 = vsel %vm310_vm7, %v304_v47, %v309_v50  ;;  %555 = vmatpush3.bf16.msra.mxu1 %v585_v52 }
  0x98   : > { %314 = vst [vmem:[#allocation2 + $0x18] sm:$0x33] %v311_v51  ;;  %556 = vmatprep.subr.bf16.mxu1 %v603_v20 }
  0x9a   : > { %v589_v55 = vld [vmem:[#allocation2 + $0x20] ss:$0 sps:$4 sm:$0x33]  }
  0x9b   : > { %v586_v53 = vld [vmem:[#allocation2 + $0x4] ss:$12 sps:$4 sm:$0xff]   ;;  %v588_v54 = vld [vmem:[#allocation2] ss:$12 sps:$4 sm:$0xff]   ;;  %v365_v56 = vsel %vm357_vm8, %v589_v55, 0 }
  0x9c   : > { %367 = vmatprep.subr.bf16.mxu0 %v586_v53  ;;  %557 = vmatpush3.bf16.msra.mxu1 %v365_v56 }
  0x9d   : > { %368 = vmatpush1.bf16.msra.mxu0 %v588_v54 }
  0x9f   : > { %v320_v57 = vld [vmem:[#allocation2 + $0x18] sm:$0x33]  ;;  %559 = vmatmul.mubr.msk.bf16.vlgmr.msra.gmra.mrb[0].mxu1 %vm353_vm9, %v322_v58 }
  0xa0   : > { %v543_v59 = vcombine.high %v320_v57, %v320_v57  ;;  %v542_v60 = vcombine.low %v320_v57, %v320_v57 }
  0xa2   : > { %545 = vmatprep.subr.msk.bf16.mxu0 %vm357_vm8, %v543_v59  ;;  %v359_v61 = vsel %vm357_vm8, %v542_v60, 0 }
  0xa3   : > { %370 = vmatpush1.bf16.msra.mxu0 %v359_v61 }
  0xa4   : > { %v327_v62 = vpop.permute.xlu0 %326 }
  0xa6   : > { %546 = vmatmul.mubr.msk.bf16.vlgmr.msra.gmra.mrb[0].mxu0 %vm353_vm9, %v322_v58 }
 0x172   : > { %v442_v63 = vpop.f32.mrb[0].mxu1 }
 0x173   : > { %v560_v0 = vpop.f32.mrb[1].mxu1  ;;  %v443_v1 = vadd.f32 %v442_v63, %v327_v62 }
 0x174   : > { %v445_v2 = vpop.f32.mrb[2].mxu1 }
 0x175   : > { %v561_v3 = vpop.f32.mrb[3].mxu1  ;;  %v450_v4 = vpack.c.bf16 %v443_v1, %v443_v1 }
 0x177   : > { %v468_v12 = vrot.slane %v450_v4, %v639_v5 }
 0x179   : > { %v401_v6 = vpop.f32.mrb[0].mxu0 }
 0x17a   : > { %v402_v7 = vadd.f32 %v401_v6, %v327_v62  ;;  %v403_v8 = vpop.f32.mrb[1].mxu0 }
 0x17b   : > { %v404_v9 = vadd.f32 %v403_v8, %v327_v62  ;;  %v405_v10 = vpop.f32.mrb[2].mxu0 }
 0x17c   : > { %v406_v11 = vpop.f32.mrb[3].mxu0 }
 0x17d   : > { %v548_v13 = vpack.c.bf16 %v404_v9, %v402_v7 }
 0x17f   : > { %v461_v14 = vrot.slane %v548_v13, %v639_v5 }
 0x181   : > { %v469_v15 = vcombine.low %v461_v14, %v468_v12 }
 0x183   : > { %475 = vst.msk [vmem:[%s170_s28] sm:$0x3f] %vm474_vm13, %v469_v15 }
 0x184 PF: > { %s13_s12 = sadd.s32 1, %s598_s12  }
 0x185   : > { %p10_p4 = scmp.ge.s32.totalorder %s13_s12, 4  }
 0x187   :  { %12 = sbr.rel (!%p10_p4) target bundleno = 1 (0x1), region = 62 }

// kernel: rfb_forward.16
= control target key start
LH: loop header
LB: loop body
LE: loop exit
PB: predicated region body
PF: predicated region fallthrough
CT: control target
= control target key end

     0   :  { %s521_s12 = smov 0   ;;  %s552_s0 = inlined_call_operand.vmem [shape: bf16[2,4,320], index: 0, kind: input, shape index: {}]   ;;  %s553_s1 = inlined_call_operand.vmem [shape: bf16[4,20], index: 1, kind: input, shape index: {}]   ;;  %s554_s2 = inlined_call_operand.vmem [shape: f32[4,1], index: 2, kind: input, shape index: {}]   ;;  %s555_s3 = inlined_call_operand.vmem [shape: bf16[2,4,256], index: 3, kind: output, shape index: {}]  }
   0x1 LB: > { %s442_s13 = sadd.s32 4294967295, %s493_s12   ;;  %p446_p0 = scmp.ge.s32.totalorder %s493_s12, 1  ;;  %s493_s12 = sphi %s521_s12, %s13_s12  }
   0x2   : > { %p137_p1 = scmp.lt.s32.totalorder %s493_s12, 3 }
   0x4   : > { %p138_p2 = pnand %p446_p0, %p137_p1 }
   0x5   : > { %p161_p3 = scmp.lt.s32.totalorder (!%p138_p2), %s442_s13, 1  ;;  %v189_v0 = vlaneseq (!%p138_p2)  ;;  %v495_v1 = vmov (!%p138_p2), 1983009808   ;;  %s496_s18 = smov (!%p138_p2), 96   ;;  %v500_v23 = vmov (!%p138_p2), 0   ;;  %vm206_vm0 = vcmask (!%p138_p2), 1043456  }
   0x6   : > { %141 = sbr.rel (%p138_p2) target bundleno = 385 (0x181), region = 32  ;;  %v187_v2 = vunpack.c.l.s4 (!%p138_p2), %v495_v1  ;;  %s497_s19 = smov (!%p138_p2), 112   ;;  %364 = vmatprep.mubr.bf16.mxu0 (!%p138_p2), %v500_v23  ;;  %477 = vset.pattern.permute.xlu0 (!%p138_p2), %v500_v23  ;;  %v300_v24 = vld [vmem:[%s554_s2] sm:$0xf] (!%p138_p2)  ;;  %vm208_vm1 = vcmask (!%p138_p2), 916480   ;;  %vm236_vm2 = vcmask (!%p138_p2), 785408  }
   0x7   : > { %v190_v3 = vshrl.u32 (!%p138_p2), %v189_v0, 7  ;;  %s498_s20 = smov (!%p138_p2), 80   ;;  %s499_s21 = smov (!%p138_p2), 64   ;;  %vm264_vm3 = vcmask (!%p138_p2), 654336   ;;  %vm292_vm4 = vcmask (!%p138_p2), 523264   ;;  %vm325_vm5 = vcmask (!%p138_p2), 1041408  }
   0x8   : > { %v188_v4 = vunpack.c.0.s8 (!%p138_p2), %v187_v2  ;;  %v299_v55 = vld [vmem:[%s553_s1] sm:$0x3] (!%p138_p2)  ;;  %vm321_vm6 = vcmask (!%p138_p2), 162816  }
   0xa   : > { %v191_v5 = vsub.s32 (!%p138_p2), %v188_v4, %v190_v3 }
   0xd   : > { %s557_s13 = smov (!%p161_p3, %s442_s13), 1 }
   0xe   : > { %s462_s14 = smul.u32 6, %s557_s13  ;;  %s461_s26 = sshll.u32 %s557_s13, 2 }
   0xf   : > { %s170_s29 = scalar_lea.vmem %s555_s3, %s461_s26 }
  0x10   : > { %s165_s17 = scalar_lea.vmem %s552_s0, %s462_s14 }
  0x11   : > { %v212_v6 = vld [vmem:[%s165_s17] sm:$0x3f] }
  0x12   : > { %v450_v7 = vld.sshfl [vmem:[%s165_s17] sm:$0x33 pattern:$0x76325410]  ;;  %v221_v8 = vrot.slane %v212_v6, %v191_v5  ;;  %v214_v13 = vcombine.high %v212_v6, %v212_v6 }
  0x13   : > { %182 = vst [vmem:[#allocation2] sm:$0x33] %v450_v7  ;;  %v183_v9 = vld [vmem:[%s165_s17] sm:$0x3f] }
  0x14   : > { %v240_v10 = vld [vmem:[%s165_s17] sm:$0x3f]  ;;  %v199_v11 = vrot.slane %v183_v9, %v191_v5  ;;  %v185_v12 = vcombine.low %v183_v9, %v183_v9  ;;  %229 = vrot.lane.b32.xlu1 %v221_v8, %s496_s18  ;;  %v228_v18 = vrot.slane %v214_v13, %v191_v5 }
  0x15   : > { %v256_v14 = vrot.slane %v240_v10, %v191_v5  ;;  %v242_v16 = vcombine.low %v240_v10, %v240_v10  ;;  %v268_v17 = vld [vmem:[%s165_s17] sm:$0x3f] }
  0x16   : > { %202 = vrot.lane.b32.xlu0 %v199_v11, %s497_s19  ;;  %v192_v15 = vrot.slane %v185_v12, %v191_v5  ;;  %v270_v19 = vcombine.high %v268_v17, %v268_v17  ;;  %v277_v22 = vrot.slane %v268_v17, %v191_v5 }
  0x17   : > { %v249_v20 = vrot.slane %v242_v16, %v191_v5 }
  0x18   : > { %259 = vrot.lane.b32.xlu1 %v256_v14, %s498_s20  ;;  %v284_v21 = vrot.slane %v270_v19, %v191_v5 }
  0x1a   : > { %200 = vrot.lane.b32.xlu0 %v192_v15, %s497_s19 }
  0x1c   : > { %231 = vrot.lane.b32.xlu1 %v228_v18, %s496_s18 }
  0x1e   : > { %257 = vrot.lane.b32.xlu0 %v249_v20, %s498_s20 }
  0x20   : > { %287 = vrot.lane.b32.xlu1 %v284_v21, %s499_s21 }
  0x22   : > { %285 = vrot.lane.b32.xlu0 %v277_v22, %s499_s21 }
  0x26   : > { %303 = vperm.xlu0 %477, %v300_v24  }
  0x86   : > { %v230_v25 = vpop.permute.xlu1 %229 }
  0x87   : > { %v233_v33 = vrot.slane %v230_v25, 4 }
  0x88   : > { %v203_v26 = vpop.permute.xlu0 %202 }
  0x89   : > { %v205_v29 = vrot.slane %v203_v26, 4 }
  0x8a   : > { %v260_v27 = vpop.permute.xlu1 %259 }
  0x8b   : > { %v262_v37 = vrot.slane %v260_v27, 4 }
  0x8c   : > { %v201_v28 = vpop.permute.xlu0 %200 }
  0x8d   : > { %v204_v30 = vrot.slane %v201_v28, 4 }
  0x8e   : > { %v232_v32 = vpop.permute.xlu1 %231 }
  0x8f   : > { %v207_v31 = vsel %vm206_vm0, %v204_v30, %v205_v29  ;;  %v234_v35 = vrot.slane %v232_v32, 4 }
  0x90   : > { %v209_v34 = vsel %vm208_vm1, %v201_v28, %v207_v31  ;;  %v258_v36 = vpop.permute.xlu0 %257 }
  0x91   : > { %211 = vst [vmem:[#allocation2] sm:$0xcc] %v209_v34  ;;  %v261_v38 = vrot.slane %v258_v36, 4  ;;  %v235_v39 = vsel %vm206_vm0, %v233_v33, %v234_v35 }
  0x92   : > { %v237_v40 = vsel %vm236_vm2, %v230_v25, %v235_v39  ;;  %v288_v42 = vpop.permute.xlu1 %287 }
  0x93   : > { %v263_v41 = vsel %vm206_vm0, %v261_v38, %v262_v37  ;;  %239 = vst [vmem:[#allocation2 + $0x8] sm:$0x33] %v237_v40  ;;  %v290_v44 = vrot.slane %v288_v42, 4 }
  0x94   : > { %v265_v43 = vsel %vm264_vm3, %v258_v36, %v263_v41  ;;  %v286_v45 = vpop.permute.xlu0 %285 }
  0x95   : > { %267 = vst [vmem:[#allocation2 + $0x8] sm:$0xcc] %v265_v43  ;;  %v289_v46 = vrot.slane %v286_v45, 4 }
  0x97   : > { %v291_v47 = vsel %vm206_vm0, %v289_v46, %v290_v44 }
  0x98   : > { %v293_v48 = vsel %vm292_vm4, %v286_v45, %v291_v47 }
  0x99   : > { %295 = vst [vmem:[#allocation2 + $0x10] sm:$0x33] %v293_v48 }
  0x9c   : > { %v482_v49 = vld [vmem:[#allocation2 + $0x4] ss:$8 sps:$4 sm:$0xff]   ;;  %v484_v50 = vld [vmem:[#allocation2] ss:$8 sps:$4 sm:$0xff]  }
  0x9d   : > { %332 = vmatprep.subr.bf16.mxu0 %v482_v49 }
  0x9e   : > { %333 = vmatpush1.bf16.msra.mxu0 %v484_v50 }
  0xa0   : > { %v298_v51 = vld [vmem:[#allocation2 + $0x10] sm:$0x33] }
  0xa1   : > { %v454_v52 = vcombine.high %v298_v51, %v298_v51  ;;  %v453_v53 = vcombine.low %v298_v51, %v298_v51 }
  0xa3   : > { %455 = vmatprep.subr.msk.bf16.mxu0 %vm325_vm5, %v454_v52  ;;  %v327_v54 = vsel %vm325_vm5, %v453_v53, 0 }
  0xa4   : > { %335 = vmatpush1.bf16.msra.mxu0 %v327_v54 }
  0xa5   : > { %v304_v56 = vpop.permute.xlu0 %303 }
  0xa7   : > { %456 = vmatmul.mubr.msk.bf16.vlgmr.msra.gmra.mrb[0].mxu0 %vm321_vm6, %v299_v55 }
 0x17a   : > { %v366_v57 = vpop.f32.mrb[0].mxu0 }
 0x17b   : > { %v367_v58 = vadd.f32 %v366_v57, %v304_v56  ;;  %v368_v59 = vpop.f32.mrb[1].mxu0 }
 0x17c   : > { %v369_v60 = vadd.f32 %v368_v59, %v304_v56  ;;  %v370_v61 = vpop.f32.mrb[2].mxu0 }
 0x17d   : > { %v371_v62 = vpop.f32.mrb[3].mxu0 }
 0x17e   : > { %v457_v63 = vpack.c.bf16 %v369_v60, %v367_v58 }
 0x180   : > { %458 = vst.sshfl [vmem:[%s170_s29] sm:$0x33 pattern:$0x76325410] %v457_v63 }
 0x181 PF: > { %s13_s12 = sadd.s32 1, %s493_s12  }
 0x182   : > { %p10_p4 = scmp.ge.s32.totalorder %s13_s12, 4  }
 0x184   :  { %12 = sbr.rel (!%p10_p4) target bundleno = 1 (0x1), region = 62 }

// kernel: rfb_forward.17
= control target key start
LH: loop header
LB: loop body
LE: loop exit
PB: predicated region body
PF: predicated region fallthrough
CT: control target
= control target key end

     0   :  { %s808_s12 = smov 0   ;;  %s902_s0 = inlined_call_operand.vmem [shape: bf16[2,4,686], index: 0, kind: input, shape index: {}]   ;;  %s903_s1 = inlined_call_operand.vmem [shape: bf16[4,36], index: 1, kind: input, shape index: {}]   ;;  %s904_s2 = inlined_call_operand.vmem [shape: f32[4,1], index: 2, kind: input, shape index: {}]   ;;  %s905_s3 = inlined_call_operand.vmem [shape: bf16[2,4,416], index: 3, kind: output, shape index: {}]  }
   0x1 LB: > { %s699_s13 = sadd.s32 4294967295, %s776_s12   ;;  %p703_p0 = scmp.ge.s32.totalorder %s776_s12, 1  ;;  %s776_s12 = sphi %s808_s12, %s13_s12  }
   0x2   : > { %p137_p1 = scmp.lt.s32.totalorder %s776_s12, 3 }
   0x4   : > { %p138_p2 = pnand %p703_p0, %p137_p1 }
   0x5   : > { %p161_p3 = scmp.lt.s32.totalorder (!%p138_p2), %s699_s13, 1  ;;  %v185_v0 = vlaneseq (!%p138_p2)  ;;  %v778_v1 = vmov (!%p138_p2), 1983009808   ;;  %vm640_vm0 = vcmask (!%p138_p2), 1045508   ;;  %vm192_vm1 = vcmask (!%p138_p2), 1041408   ;;  %s779_s18 = smov (!%p138_p2), 118  }
   0x6   : > { %141 = sbr.rel (%p138_p2) target bundleno = 403 (0x193), region = 32  ;;  %v183_v2 = vunpack.c.l.s4 (!%p138_p2), %v778_v1  ;;  %vm227_vm2 = vcmask (!%p138_p2), 1043458   ;;  %vm228_vm4 = vcmask (!%p138_p2), 261126   ;;  %vm193_vm7 = vcmask (!%p138_p2), 259076   ;;  %s780_s19 = smov (!%p138_p2), 123  }
   0x7   : > { %v186_v3 = vshrl.u32 (!%p138_p2), %v185_v0, 7  ;;  %vm639_vm3 = vmor (!%p138_p2), %vm227_vm2, %vm192_vm1  ;;  %s781_s20 = smov (!%p138_p2), 126   ;;  %s782_s21 = smov (!%p138_p2), 121   ;;  %v787_v26 = vmov (!%p138_p2), 0   ;;  %v459_v27 = vld [vmem:[%s904_s2] sm:$0xf] (!%p138_p2) }
   0x8   : > { %v184_v4 = vunpack.c.0.s8 (!%p138_p2), %v183_v2  ;;  %vm641_vm5 = vmor (!%p138_p2), %vm640_vm0, %vm639_vm3  ;;  %s783_s22 = smov (!%p138_p2), 116   ;;  %s784_s23 = smov (!%p138_p2), 124   ;;  %604 = vmatprep.mubr.bf16.mxu1 (!%p138_p2), %v787_v26  ;;  %563 = vmatprep.mubr.bf16.mxu0 (!%p138_p2), %v787_v26  ;;  %vm221_vm9 = vcmask (!%p138_p2), 1006592   ;;  %vm286_vm11 = vcmask (!%p138_p2), 1031168   ;;  %vm219_vm12 = vcmask (!%p138_p2), 1043456  }
   0x9   : > { %vm824_vm6 = vmor (!%p138_p2), %vm228_vm4, %vm641_vm5  ;;  %s785_s24 = smov (!%p138_p2), 119   ;;  %s786_s25 = smov (!%p138_p2), 114   ;;  %748 = vset.pattern.permute.xlu0 (!%p138_p2), %v787_v26  ;;  %vm255_vm13 = vcmask (!%p138_p2), 965632   ;;  %vm317_vm14 = vcmask (!%p138_p2), 990208   ;;  %vm348_vm15 = vcmask (!%p138_p2), 949248   ;;  %vm379_vm0 = vcmask (!%p138_p2), 1014784  }
   0xa   : > { %v821_v5 = vsub.s32 (!%p138_p2), %v184_v4, %v186_v3  ;;  %vm833_vm8 = vmor (!%p138_p2), %vm193_vm7, %vm192_vm1  ;;  %vm441_vm3 = vcmask (!%p138_p2), 932864  }
   0xb   : > { %vm852_vm10 = vmor (!%p138_p2), %vm228_vm4, %vm227_vm2  ;;  %vm410_vm2 = vcmask (!%p138_p2), 973824   ;;  %vm515_vm4 = vcmask (!%p138_p2), 293888  }
   0xd   : > { %s913_s13 = smov (!%p161_p3, %s699_s13), 1 }
   0xe   : > { %s729_s14 = smul.u32 12, %s913_s13  ;;  %s728_s30 = sshll.u32 %s913_s13, 3 }
   0xf   : > { %s170_s6 = scalar_lea.vmem %s905_s3, %s728_s30 }
  0x10   : > { %s165_s17 = scalar_lea.vmem %s902_s0, %s729_s14 }
  0x11   : > { %v231_v7 = vld [vmem:[%s165_s17] sm:$0xff] }
  0x12   : > { %v262_v8 = vld [vmem:[%s165_s17 + $0x2] sm:$0xff]  ;;  %v240_v9 = vrot.slane %v231_v7, %v821_v5  ;;  %v233_v10 = vcombine.high %v231_v7, %v231_v7  ;;  %707 = vst.sshfl [vmem:[#allocation2] sm:$0xf pattern:$0x76325410] %v231_v7  ;;  %v198_v12 = vcombine.low %v231_v7, %v231_v7 }
  0x13   : > { %v278_v13 = vrot.slane %v262_v8, %v821_v5  ;;  %v295_v16 = vcombine.high %v262_v8, %v262_v8  ;;  %v264_v17 = vcombine.low %v262_v8, %v262_v8  ;;  %v355_v20 = vld [vmem:[%s165_s17 + $0x4] sm:$0xff] }
  0x14   : > { %248 = vrot.lane.b32.xlu1 %v240_v9, %s779_s18  ;;  %215 = vrot.lane.b32.xlu0 %v240_v9, %s780_s19  ;;  %v247_v14 = vrot.slane %v233_v10, %v821_v5  ;;  %v205_v15 = vrot.slane %v198_v12, %v821_v5  ;;  %v357_v21 = vcombine.high %v355_v20, %v355_v20 }
  0x15   : > { %v309_v18 = vrot.slane %v295_v16, %v821_v5  ;;  %v271_v19 = vrot.slane %v264_v17, %v821_v5  ;;  %v364_v23 = vrot.slane %v355_v20, %v821_v5  ;;  %v388_v24 = vcombine.low %v355_v20, %v355_v20 }
  0x16   : > { %195 = vst.msk [vmem:[#allocation2 + $0x8] sm:$0x33] %vm833_vm8, %v247_v14  ;;  %v371_v22 = vrot.slane %v357_v21, %v821_v5 }
  0x17   : > { %v395_v25 = vrot.slane %v388_v24, %v821_v5 }
  0x18   : > { %281 = vrot.lane.b32.xlu1 %v278_v13, %s781_s20  ;;  %310 = vrot.lane.b32.xlu0 %v278_v13, %s782_s21 }
  0x1c   : > { %250 = vrot.lane.b32.xlu1 %v247_v14, %s779_s18  ;;  %213 = vrot.lane.b32.xlu0 %v205_v15, %s780_s19 }
  0x20   : > { %312 = vrot.lane.b32.xlu1 %v309_v18, %s782_s21  ;;  %279 = vrot.lane.b32.xlu0 %v271_v19, %s781_s20 }
  0x24   : > { %343 = vrot.lane.b32.xlu1 %v278_v13, %s783_s22  ;;  %341 = vrot.lane.b32.xlu0 %v271_v19, %s783_s22 }
  0x28   : > { %374 = vrot.lane.b32.xlu1 %v371_v22, %s784_s23  ;;  %372 = vrot.lane.b32.xlu0 %v364_v23, %s784_s23 }
  0x2c   : > { %405 = vrot.lane.b32.xlu1 %v364_v23, %s785_s24  ;;  %403 = vrot.lane.b32.xlu0 %v395_v25, %s785_s24 }
  0x30   : > { %436 = vrot.lane.b32.xlu1 %v371_v22, %s786_s25  ;;  %434 = vrot.lane.b32.xlu0 %v364_v23, %s786_s25 }
  0x34   : > { %462 = vperm.xlu0 %748, %v459_v27  }
  0x86   : > { %v249_v28 = vpop.permute.xlu1 %248  ;;  %v216_v29 = vpop.permute.xlu0 %215 }
  0x87   : > { %v218_v31 = vrot.slane %v216_v29, 4  ;;  %v252_v39 = vrot.slane %v249_v28, 4 }
  0x89   : > { %v223_v32 = vsel %vm221_vm9, %v216_v29, %v218_v31 }
  0x8a   : > { %230 = vst.msk [vmem:[#allocation2 + $0x8] sm:$0xcc] %vm852_vm10, %v223_v32  ;;  %v282_v33 = vpop.permute.xlu1 %281  ;;  %v311_v34 = vpop.permute.xlu0 %310 }
  0x8b   : > { %v284_v35 = vrot.slane %v282_v33, 4  ;;  %v314_v49 = vrot.slane %v311_v34, 4 }
  0x8d   : > { %v288_v36 = vsel %vm286_vm11, %v282_v33, %v284_v35 }
  0x8e   : > { %292 = vst.msk [vmem:[#allocation2 + $0x18] sm:$0xcc] %vm852_vm10, %v288_v36  ;;  %v251_v37 = vpop.permute.xlu1 %250  ;;  %v214_v38 = vpop.permute.xlu0 %213 }
  0x8f   : > { %v253_v40 = vrot.slane %v251_v37, 4  ;;  %v217_v41 = vrot.slane %v214_v38, 4 }
  0x91   : > { %v254_v42 = vsel %vm219_vm12, %v252_v39, %v253_v40  ;;  %v257_v43 = vsel %vm255_vm13, %v251_v37, %v253_v40  ;;  %v220_v44 = vsel %vm219_vm12, %v217_v41, %v218_v31  ;;  %v458_v41 = vld [vmem:[%s903_s1] sm:$0x3] }
  0x92   : > { %v256_v45 = vsel %vm255_vm13, %v249_v28, %v254_v42  ;;  %261 = vst.msk [vmem:[#allocation2 + $0x18] sm:$0x33] %vm833_vm8, %v257_v43  ;;  %v222_v46 = vsel %vm221_vm9, %v214_v38, %v220_v44  ;;  %v313_v47 = vpop.permute.xlu1 %312  ;;  %v280_v48 = vpop.permute.xlu0 %279 }
  0x93   : > { %260 = vst [vmem:[#allocation2 + $0x10] sm:$0x33] %v256_v45  ;;  %226 = vst [vmem:[#allocation2] sm:$0xcc] %v222_v46  ;;  %v315_v50 = vrot.slane %v313_v47, 4  ;;  %v283_v51 = vrot.slane %v280_v48, 4 }
  0x95   : > { %v316_v52 = vsel %vm219_vm12, %v314_v49, %v315_v50  ;;  %v319_v53 = vsel %vm317_vm14, %v313_v47, %v315_v50  ;;  %v285_v54 = vsel %vm219_vm12, %v283_v51, %v284_v35 }
  0x96   : > { %v318_v55 = vsel %vm317_vm14, %v311_v34, %v316_v52  ;;  %323 = vst.msk [vmem:[#allocation2 + $0x28] sm:$0x33] %vm833_vm8, %v319_v53  ;;  %v287_v56 = vsel %vm286_vm11, %v280_v48, %v285_v54  ;;  %v344_v57 = vpop.permute.xlu1 %343  ;;  %v342_v58 = vpop.permute.xlu0 %341 }
  0x97   : > { %322 = vst [vmem:[#allocation2 + $0x20] sm:$0x33] %v318_v55  ;;  %291 = vst [vmem:[#allocation2 + $0x10] sm:$0xcc] %v287_v56  ;;  %v346_v59 = vrot.slane %v344_v57, 4  ;;  %v345_v60 = vrot.slane %v342_v58, 4 }
  0x99   : > { %v350_v61 = vsel %vm348_vm15, %v344_v57, %v346_v59  ;;  %v347_v62 = vsel %vm219_vm12, %v345_v60, %v346_v59  ;;  %v755_v63 = vld [vmem:[#allocation2 + $0xc] ss:$16 sps:$4 sm:$0xff]   ;;  %v757_v0 = vld [vmem:[#allocation2 + $0x8] ss:$16 sps:$4 sm:$0xff]  }
  0x9a   : > { %354 = vst.msk [vmem:[#allocation2 + $0x28] sm:$0xcc] %vm852_vm10, %v350_v61  ;;  %v349_v1 = vsel %vm348_vm15, %v342_v58, %v347_v62  ;;  %v375_v2 = vpop.permute.xlu1 %374  ;;  %v373_v3 = vpop.permute.xlu0 %372  ;;  %572 = vmatprep.subr.bf16.mxu1 %v755_v63  ;;  %v448_v14 = vld [vmem:[#allocation2] sm:$0xff] }
  0x9b   : > { %353 = vst [vmem:[#allocation2 + $0x20] sm:$0xcc] %v349_v1  ;;  %v377_v4 = vrot.slane %v375_v2, 4  ;;  %v376_v7 = vrot.slane %v373_v3, 4  ;;  %573 = vmatpush1.bf16.msra.mxu1 %v757_v0 }
  0x9d   : > { %v381_v8 = vsel %vm379_vm0, %v375_v2, %v377_v4  ;;  %v378_v9 = vsel %vm219_vm12, %v376_v7, %v377_v4 }
  0x9e   : > { %385 = vst.msk [vmem:[#allocation2 + $0x38] sm:$0x33] %vm833_vm8, %v381_v8  ;;  %v380_v10 = vsel %vm379_vm0, %v373_v3, %v378_v9  ;;  %v406_v12 = vpop.permute.xlu1 %405  ;;  %v404_v13 = vpop.permute.xlu0 %403  ;;  %v450_v15 = vld [vmem:[#allocation2 + $0x10] sm:$0xff] }
  0x9f   : > { %v758_v16 = vld [vmem:[#allocation2 + $0x4] ss:$16 sps:$4 sm:$0xff]   ;;  %384 = vst [vmem:[#allocation2 + $0x30] sm:$0x33] %v380_v10  ;;  %v408_v17 = vrot.slane %v406_v12, 4  ;;  %v407_v18 = vrot.slane %v404_v13, 4  ;;  %v708_v19 = vcombine.low %v448_v14, %v450_v15 }
  0xa0   : > { %531 = vmatprep.subr.bf16.mxu0 %v758_v16 }
  0xa1   : > { %v412_v20 = vsel %vm410_vm2, %v406_v12, %v408_v17  ;;  %v409_v21 = vsel %vm219_vm12, %v407_v18, %v408_v17  ;;  %532 = vmatpush1.bf16.msra.mxu0 %v708_v19 }
  0xa2   : > { %416 = vst.msk [vmem:[#allocation2 + $0x38] sm:$0xcc] %vm852_vm10, %v412_v20  ;;  %v411_v22 = vsel %vm410_vm2, %v404_v13, %v409_v21  ;;  %v437_v23 = vpop.permute.xlu1 %436  ;;  %v435_v24 = vpop.permute.xlu0 %434 }
  0xa3   : > { %415 = vst [vmem:[#allocation2 + $0x30] sm:$0xcc] %v411_v22  ;;  %v439_v25 = vrot.slane %v437_v23, 4  ;;  %v438_v26 = vrot.slane %v435_v24, 4 }
  0xa5   : > { %v443_v27 = vsel %vm441_vm3, %v437_v23, %v439_v25  ;;  %v440_v28 = vsel %vm219_vm12, %v438_v26, %v439_v25 }
  0xa6   : > { %447 = vst.msk [vmem:[#allocation2 + $0x48] sm:$0x33] %vm833_vm8, %v443_v27  ;;  %v442_v29 = vsel %vm441_vm3, %v435_v24, %v440_v28 }
  0xa7   : > { %446 = vst [vmem:[#allocation2 + $0x40] sm:$0x33] %v442_v29 }
  0xa9   : > { %v760_v31 = vld [vmem:[#allocation2 + $0x2c] ss:$16 sps:$4 sm:$0xff]   ;;  %v764_v32 = vld [vmem:[#allocation2 + $0x28] ss:$16 sps:$4 sm:$0xff]  }
  0xaa   : > { %v762_v33 = vld [vmem:[#allocation2 + $0x24] ss:$16 sps:$4 sm:$0xff]   ;;  %v765_v30 = vld [vmem:[#allocation2 + $0x20] ss:$16 sps:$4 sm:$0xff]   ;;  %574 = vmatprep.subr.bf16.mxu1 %v760_v31 }
  0xab   : > { %533 = vmatprep.subr.bf16.mxu0 %v762_v33  ;;  %575 = vmatpush1.bf16.msra.mxu1 %v764_v32 }
  0xac   : > { %534 = vmatpush1.bf16.msra.mxu0 %v765_v30 }
  0xad   : > { %v457_v34 = vld [vmem:[#allocation2 + $0x48] sm:$0x33] }
  0xae   : > { %v719_v35 = vcombine.high %v457_v34, %v457_v34  ;;  %v456_v36 = vld [vmem:[#allocation2 + $0x40] sm:$0x33]  ;;  %v718_v37 = vcombine.low %v457_v34, %v457_v34 }
  0xaf   : > { %v717_v38 = vcombine.high %v456_v36, %v456_v36  ;;  %v716_v39 = vcombine.low %v456_v36, %v456_v36 }
  0xb0   : > { %722 = vmatprep.subr.msk.bf16.mxu1 %vm192_vm1, %v719_v35  ;;  %v526_v11 = vsel %vm192_vm1, %v718_v37, 0 }
  0xb1   : > { %720 = vmatprep.subr.msk.bf16.mxu0 %vm192_vm1, %v717_v38  ;;  %577 = vmatpush1.bf16.msra.mxu1 %v526_v11  ;;  %v520_v40 = vsel %vm192_vm1, %v716_v39, 0 }
  0xb2   : > { %536 = vmatpush1.bf16.msra.mxu0 %v520_v40 }
  0xb3   : > { %v463_v42 = vpop.permute.xlu0 %462 }
  0xb4   : > { %723 = vmatmul.mubr.msk.bf16.vlgmr.msra.gmra.mrb[0].mxu1 %vm515_vm4, %v458_v41 }
  0xb5   : > { %721 = vmatmul.mubr.msk.bf16.vlgmr.msra.gmra.mrb[0].mxu0 %vm515_vm4, %v458_v41 }
 0x187   : > { %v606_v43 = vpop.f32.mrb[0].mxu1 }
 0x188   : > { %v607_v44 = vadd.f32 %v606_v43, %v463_v42  ;;  %v565_v45 = vpop.f32.mrb[0].mxu0  ;;  %v608_v46 = vpop.f32.mrb[1].mxu1 }
 0x189   : > { %v566_v47 = vadd.f32 %v565_v45, %v463_v42  ;;  %v609_v48 = vadd.f32 %v608_v46, %v463_v42  ;;  %v567_v49 = vpop.f32.mrb[1].mxu0  ;;  %v610_v50 = vpop.f32.mrb[2].mxu1 }
 0x18a   : > { %v568_v51 = vadd.f32 %v567_v49, %v463_v42  ;;  %v569_v52 = vpop.f32.mrb[2].mxu0  ;;  %v611_v53 = vpop.f32.mrb[3].mxu1 }
 0x18b   : > { %v725_v54 = vpack.c.bf16 %v609_v48, %v607_v44  ;;  %v570_v55 = vpop.f32.mrb[3].mxu0 }
 0x18c   : > { %v724_v56 = vpack.c.bf16 %v568_v51, %v566_v47 }
 0x18d   : > { %v636_v57 = vrot.slane %v725_v54, %v821_v5 }
 0x18e   : > { %v629_v58 = vrot.slane %v724_v56, %v821_v5 }
 0x190   : > { %v637_v59 = vcombine.low %v629_v58, %v636_v57 }
 0x192   : > { %643 = vst.msk [vmem:[%s170_s6] sm:$0xff] %vm824_vm6, %v637_v59 }
 0x193 PF: > { %s13_s12 = sadd.s32 1, %s776_s12  }
 0x194   : > { %p10_p4 = scmp.ge.s32.totalorder %s13_s12, 4  }
 0x196   :  { %12 = sbr.rel (!%p10_p4) target bundleno = 1 (0x1), region = 62 }

// kernel: rfb_forward.12
= control target key start
LH: loop header
LB: loop body
LE: loop exit
PB: predicated region body
PF: predicated region fallthrough
CT: control target
= control target key end

     0   :  { %s539_s12 = smov 0   ;;  %s580_s0 = inlined_call_operand.vmem [shape: bf16[2,4,290], index: 0, kind: input, shape index: {}]   ;;  %s581_s1 = inlined_call_operand.vmem [shape: bf16[4,12], index: 1, kind: input, shape index: {}]   ;;  %s582_s2 = inlined_call_operand.vmem [shape: f32[4,1], index: 2, kind: input, shape index: {}]   ;;  %s583_s3 = inlined_call_operand.vmem [shape: bf16[2,4,288], index: 3, kind: output, shape index: {}]  }
   0x1 LB: > { %s459_s13 = sadd.s32 4294967295, %s511_s12   ;;  %p463_p0 = scmp.ge.s32.totalorder %s511_s12, 1  ;;  %s511_s12 = sphi %s539_s12, %s13_s12  }
   0x2   : > { %p137_p1 = scmp.lt.s32.totalorder %s511_s12, 3 }
   0x4   : > { %p138_p2 = pnand %p463_p0, %p137_p1 }
   0x5   : > { %p161_p3 = scmp.lt.s32.totalorder (!%p138_p2), %s459_s13, 1  ;;  %v185_v0 = vlaneseq (!%p138_p2)  ;;  %v513_v1 = vmov (!%p138_p2), 1983009808   ;;  %s514_s18 = smov (!%p138_p2), 126   ;;  %vm192_vm0 = vcmask (!%p138_p2), 254976   ;;  %v515_v15 = vmov (!%p138_p2), 0.0  }
   0x6   : > { %141 = sbr.rel (%p138_p2) target bundleno = 381 (0x17d), region = 32  ;;  %v183_v2 = vunpack.c.l.s4 (!%p138_p2), %v513_v1  ;;  %478 = vmatprep.subr.bf16.mxu1 (!%p138_p2), %v515_v15  ;;  %s516_s19 = smov (!%p138_p2), 127   ;;  %vm517_vm1 = vmmov (!%p138_p2), 0   ;;  %v518_v18 = vmov (!%p138_p2), 0   ;;  %v261_v19 = vld [vmem:[%s582_s2] sm:$0xf] (!%p138_p2) }
   0x7   : > { %v186_v3 = vshrl.u32 (!%p138_p2), %v185_v0, 7  ;;  %480 = vmatprep.mubr.msk.bf16.mxu1 (!%p138_p2), %vm517_vm1, %v515_v15  ;;  %326 = vmatprep.mubr.bf16.mxu0 (!%p138_p2), %v518_v18  ;;  %vm217_vm2 = vcmask (!%p138_p2), 1043456   ;;  %vm224_vm3 = vcmask (!%p138_p2), 257026   ;;  %vm250_vm4 = vcmask (!%p138_p2), 1031168   ;;  %v260_v34 = vld [vmem:[%s581_s1] sm:$0x3] (!%p138_p2) }
   0x8   : > { %v184_v4 = vunpack.c.0.s8 (!%p138_p2), %v183_v2  ;;  %499 = vset.pattern.permute.xlu0 (!%p138_p2), %v518_v18  ;;  %vm219_vm5 = vcmask (!%p138_p2), 1039360   ;;  %vm284_vm6 = vcmask (!%p138_p2), 1045504   ;;  %vm280_vm7 = vcmask (!%p138_p2), 97280  }
   0x9   : > { %vm398_vm8 = vcmask (!%p138_p2), 1041408   ;;  %vm399_vm9 = vcmask (!%p138_p2), 1043458   ;;  %vm401_vm11 = vcmask (!%p138_p2), 259076  }
   0xa   : > { %v550_v5 = vsub.s32 (!%p138_p2), %v184_v4, %v186_v3  ;;  %vm400_vm10 = vmor (!%p138_p2), %vm399_vm9, %vm398_vm8 }
   0xb   : > { %vm402_vm12 = vmor (!%p138_p2), %vm401_vm11, %vm400_vm10 }
   0xd   : > { %s585_s13 = smov (!%p161_p3, %s459_s13), 1 }
   0xe   : > { %s484_s14 = smul.u32 6, %s585_s13 }
  0x10   : > { %s165_s17 = scalar_lea.vmem %s580_s0, %s484_s14  ;;  %s170_s26 = scalar_lea.vmem %s583_s3, %s484_s14 }
  0x11   : > { %v226_v6 = vld [vmem:[%s165_s17] sm:$0x3f] }
  0x12   : > { %v172_v7 = vld [vmem:[%s165_s17] sm:$0x3f]  ;;  %v235_v9 = vrot.slane %v226_v6, %v550_v5  ;;  %v228_v10 = vcombine.high %v226_v6, %v226_v6 }
  0x13   : > { %v194_v8 = vld [vmem:[%s165_s17] sm:$0x3f]  ;;  %466 = vst.sshfl [vmem:[#allocation2] sm:$0xf pattern:$0x76325410] %v172_v7  ;;  %v174_v12 = vcombine.high %v172_v7, %v172_v7 }
  0x14   : > { %v196_v11 = vcombine.low %v194_v8, %v194_v8  ;;  %243 = vrot.lane.b32.xlu1 %v235_v9, %s514_s18  ;;  %v242_v14 = vrot.slane %v228_v10, %v550_v5  ;;  %v210_v17 = vrot.slane %v194_v8, %v550_v5 }
  0x15   : > { %v188_v16 = vrot.slane %v174_v12, %v550_v5 }
  0x16   : > { %v203_v13 = vrot.slane %v196_v11, %v550_v5 }
  0x17   : > { %193 = vst.msk [vmem:[#allocation2 + $0x8] sm:$0x3] %vm192_vm0, %v188_v16 }
  0x18   : > { %211 = vrot.lane.b32.xlu0 %v203_v13, %s516_s19  ;;  %245 = vrot.lane.b32.xlu1 %v242_v14, %s514_s18 }
  0x1c   : > { %213 = vrot.lane.b32.xlu0 %v210_v17, %s516_s19 }
  0x20   : > { %264 = vperm.xlu0 %499, %v261_v19  }
  0x86   : > { %v244_v20 = vpop.permute.xlu1 %243 }
  0x87   : > { %v247_v23 = vrot.slane %v244_v20, 4 }
  0x8a   : > { %v212_v21 = vpop.permute.xlu0 %211  ;;  %v246_v22 = vpop.permute.xlu1 %245 }
  0x8b   : > { %v248_v24 = vrot.slane %v246_v22, 4  ;;  %255 = vst.msk [vmem:[#allocation2 + $0x14] sm:$0x3] %vm192_vm0, %v246_v22  ;;  %v215_v26 = vrot.slane %v212_v21, 4 }
  0x8d   : > { %v249_v27 = vsel %vm217_vm2, %v247_v23, %v248_v24 }
  0x8e   : > { %v214_v25 = vpop.permute.xlu0 %213  ;;  %v251_v29 = vsel %vm250_vm4, %v244_v20, %v249_v27 }
  0x8f   : > { %v216_v28 = vrot.slane %v214_v25, 4  ;;  %225 = vst.msk [vmem:[#allocation2 + $0x8] sm:$0xc] %vm224_vm3, %v214_v25  ;;  %254 = vst [vmem:[#allocation2 + $0xc] sm:$0x33] %v251_v29 }
  0x91   : > { %v218_v30 = vsel %vm217_vm2, %v215_v26, %v216_v28 }
  0x92   : > { %v220_v31 = vsel %vm219_vm5, %v212_v21, %v218_v30 }
  0x93   : > { %223 = vst [vmem:[#allocation2] sm:$0xcc] %v220_v31 }
  0x96   : > { %v501_v32 = vld [vmem:[#allocation2 + $0x8] ss:$12 sps:$4 sm:$0x3f]  }
  0x97   : > { %v292_v33 = vsel %vm284_vm6, %v501_v32, 0 }
  0x98   : > { %479 = vmatpush3.bf16.msra.mxu1 %v292_v33 }
  0x9a   : > { %v502_v35 = vld [vmem:[#allocation2 + $0x4] ss:$12 sps:$4 sm:$0x3f]   ;;  %v504_v36 = vld [vmem:[#allocation2] ss:$12 sps:$4 sm:$0x3f]  }
  0x9b   : > { %470 = vmatprep.subr.msk.bf16.mxu0 %vm284_vm6, %v502_v35  ;;  %481 = vmatmul.mubr.msk.bf16.vlgmr.msra.gmra.mrb[0].mxu1 %vm280_vm7, %v260_v34  ;;  %v286_v37 = vsel %vm284_vm6, %v504_v36, 0 }
  0x9c   : > { %295 = vmatpush1.bf16.msra.mxu0 %v286_v37 }
  0x9f   : > { %471 = vmatmul.mubr.msk.bf16.vlgmr.msra.gmra.mrb[0].mxu0 %vm280_vm7, %v260_v34  ;;  %v265_v38 = vpop.permute.xlu0 %264 }
 0x16e   : > { %v369_v39 = vpop.f32.mrb[0].mxu1 }
 0x16f   : > { %v482_v40 = vpop.f32.mrb[1].mxu1  ;;  %v370_v41 = vadd.f32 %v369_v39, %v265_v38 }
 0x170   : > { %v372_v42 = vpop.f32.mrb[2].mxu1 }
 0x171   : > { %v483_v43 = vpop.f32.mrb[3].mxu1  ;;  %v377_v44 = vpack.c.bf16 %v370_v41, %v370_v41 }
 0x172   : > { %v328_v45 = vpop.f32.mrb[0].mxu0 }
 0x173   : > { %v329_v46 = vadd.f32 %v328_v45, %v265_v38  ;;  %v330_v47 = vpop.f32.mrb[1].mxu0  ;;  %v395_v51 = vrot.slane %v377_v44, %v550_v5 }
 0x174   : > { %v331_v48 = vadd.f32 %v330_v47, %v265_v38  ;;  %v332_v49 = vpop.f32.mrb[2].mxu0 }
 0x175   : > { %v333_v50 = vpop.f32.mrb[3].mxu0 }
 0x176   : > { %v473_v52 = vpack.c.bf16 %v331_v48, %v329_v46 }
 0x178   : > { %v388_v53 = vrot.slane %v473_v52, %v550_v5 }
 0x17a   : > { %v396_v54 = vcombine.low %v388_v53, %v395_v51 }
 0x17c   : > { %403 = vst.msk [vmem:[%s170_s26] sm:$0x3f] %vm402_vm12, %v396_v54 }
 0x17d PF: > { %s13_s12 = sadd.s32 1, %s511_s12  }
 0x17e   : > { %p10_p4 = scmp.ge.s32.totalorder %s13_s12, 4  }
 0x180   :  { %12 = sbr.rel (!%p10_p4) target bundleno = 1 (0x1), region = 62 }

// kernel: rfb_forward.13
= control target key start
LH: loop header
LB: loop body
LE: loop exit
PB: predicated region body
PF: predicated region fallthrough
CT: control target
= control target key end

     0   :  { %s447_s12 = smov 0   ;;  %s474_s0 = inlined_call_operand.vmem [shape: bf16[2,4,288], index: 0, kind: input, shape index: {}]   ;;  %s475_s1 = inlined_call_operand.vmem [shape: bf16[4,12], index: 1, kind: input, shape index: {}]   ;;  %s476_s2 = inlined_call_operand.vmem [shape: f32[4,1], index: 2, kind: input, shape index: {}]   ;;  %s477_s3 = inlined_call_operand.vmem [shape: bf16[2,4,256], index: 3, kind: output, shape index: {}]  }
   0x1 LB: > { %s378_s13 = sadd.s32 4294967295, %s421_s12   ;;  %p382_p0 = scmp.ge.s32.totalorder %s421_s12, 1  ;;  %s421_s12 = sphi %s447_s12, %s13_s12  }
   0x2   : > { %p137_p1 = scmp.lt.s32.totalorder %s421_s12, 3 }
   0x4   : > { %p138_p2 = pnand %p382_p0, %p137_p1 }
   0x5   : > { %p161_p3 = scmp.lt.s32.totalorder (!%p138_p2), %s378_s13, 1  ;;  %v189_v0 = vlaneseq (!%p138_p2)  ;;  %v423_v1 = vmov (!%p138_p2), 1983009808   ;;  %s424_s18 = smov (!%p138_p2), 96   ;;  %v426_v15 = vmov (!%p138_p2), 0   ;;  %vm206_vm0 = vcmask (!%p138_p2), 1043456  }
   0x6   : > { %141 = sbr.rel (%p138_p2) target bundleno = 377 (0x179), region = 32  ;;  %v187_v2 = vunpack.c.l.s4 (!%p138_p2), %v423_v1  ;;  %s425_s19 = smov (!%p138_p2), 112   ;;  %300 = vmatprep.mubr.bf16.mxu0 (!%p138_p2), %v426_v15  ;;  %409 = vset.pattern.permute.xlu0 (!%p138_p2), %v426_v15  ;;  %v243_v16 = vld [vmem:[%s476_s2] sm:$0xf] (!%p138_p2)  ;;  %vm236_vm1 = vcmask (!%p138_p2), 785408   ;;  %vm208_vm2 = vcmask (!%p138_p2), 916480  }
   0x7   : > { %v190_v3 = vshrl.u32 (!%p138_p2), %v189_v0, 7  ;;  %vm261_vm3 = vcmask (!%p138_p2), 1045504   ;;  %v242_v32 = vld [vmem:[%s475_s1] sm:$0x3] (!%p138_p2)  ;;  %vm257_vm4 = vcmask (!%p138_p2), 97280  }
   0x8   : > { %v188_v4 = vunpack.c.0.s8 (!%p138_p2), %v187_v2 }
   0xa   : > { %v191_v5 = vsub.s32 (!%p138_p2), %v188_v4, %v190_v3 }
   0xd   : > { %s479_s13 = smov (!%p161_p3, %s378_s13), 1 }
   0xe   : > { %s396_s14 = smul.u32 6, %s479_s13  ;;  %s395_s24 = sshll.u32 %s479_s13, 2 }
   0xf   : > { %s170_s27 = scalar_lea.vmem %s477_s3, %s395_s24 }
  0x10   : > { %s165_s17 = scalar_lea.vmem %s474_s0, %s396_s14 }
  0x11   : > { %v212_v6 = vld [vmem:[%s165_s17] sm:$0x3f] }
  0x12   : > { %v386_v7 = vld.sshfl [vmem:[%s165_s17] sm:$0x33 pattern:$0x76325410]  ;;  %v221_v8 = vrot.slane %v212_v6, %v191_v5  ;;  %v214_v9 = vcombine.high %v212_v6, %v212_v6 }
  0x13   : > { %182 = vst [vmem:[#allocation2] sm:$0x33] %v386_v7  ;;  %v183_v10 = vld [vmem:[%s165_s17] sm:$0x3f] }
  0x14   : > { %v185_v11 = vcombine.low %v183_v10, %v183_v10  ;;  %229 = vrot.lane.b32.xlu1 %v221_v8, %s424_s18  ;;  %v228_v12 = vrot.slane %v214_v9, %v191_v5  ;;  %v199_v14 = vrot.slane %v183_v10, %v191_v5 }
  0x16   : > { %v192_v13 = vrot.slane %v185_v11, %v191_v5 }
  0x18   : > { %200 = vrot.lane.b32.xlu0 %v192_v13, %s425_s19  ;;  %231 = vrot.lane.b32.xlu1 %v228_v12, %s424_s18 }
  0x1c   : > { %202 = vrot.lane.b32.xlu0 %v199_v14, %s425_s19 }
  0x20   : > { %246 = vperm.xlu0 %409, %v243_v16  }
  0x86   : > { %v230_v17 = vpop.permute.xlu1 %229 }
  0x87   : > { %v233_v20 = vrot.slane %v230_v17, 4 }
  0x8a   : > { %v201_v18 = vpop.permute.xlu0 %200  ;;  %v232_v19 = vpop.permute.xlu1 %231 }
  0x8b   : > { %v234_v21 = vrot.slane %v232_v19, 4  ;;  %v204_v24 = vrot.slane %v201_v18, 4 }
  0x8d   : > { %v235_v22 = vsel %vm206_vm0, %v233_v20, %v234_v21 }
  0x8e   : > { %v203_v23 = vpop.permute.xlu0 %202  ;;  %v237_v25 = vsel %vm236_vm1, %v230_v17, %v235_v22 }
  0x8f   : > { %v205_v26 = vrot.slane %v203_v23, 4  ;;  %239 = vst [vmem:[#allocation2 + $0x8] sm:$0x33] %v237_v25 }
  0x91   : > { %v207_v27 = vsel %vm206_vm0, %v204_v24, %v205_v26 }
  0x92   : > { %v209_v28 = vsel %vm208_vm2, %v201_v18, %v207_v27 }
  0x93   : > { %211 = vst [vmem:[#allocation2] sm:$0xcc] %v209_v28 }
  0x9a   : > { %v412_v29 = vld [vmem:[#allocation2 + $0x4] ss:$8 sps:$4 sm:$0x3f]   ;;  %v414_v30 = vld [vmem:[#allocation2] ss:$8 sps:$4 sm:$0x3f]  }
  0x9b   : > { %389 = vmatprep.subr.msk.bf16.mxu0 %vm261_vm3, %v412_v29  ;;  %v263_v31 = vsel %vm261_vm3, %v414_v30, 0 }
  0x9c   : > { %269 = vmatpush1.bf16.msra.mxu0 %v263_v31 }
  0x9f   : > { %390 = vmatmul.mubr.msk.bf16.vlgmr.msra.gmra.mrb[0].mxu0 %vm257_vm4, %v242_v32  ;;  %v247_v33 = vpop.permute.xlu0 %246 }
 0x172   : > { %v302_v34 = vpop.f32.mrb[0].mxu0 }
 0x173   : > { %v303_v35 = vadd.f32 %v302_v34, %v247_v33  ;;  %v304_v36 = vpop.f32.mrb[1].mxu0 }
 0x174   : > { %v305_v37 = vadd.f32 %v304_v36, %v247_v33  ;;  %v306_v38 = vpop.f32.mrb[2].mxu0 }
 0x175   : > { %v307_v39 = vpop.f32.mrb[3].mxu0 }
 0x176   : > { %v391_v40 = vpack.c.bf16 %v305_v37, %v303_v35 }
 0x178   : > { %392 = vst.sshfl [vmem:[%s170_s27] sm:$0x33 pattern:$0x76325410] %v391_v40 }
 0x179 PF: > { %s13_s12 = sadd.s32 1, %s421_s12  }
 0x17a   : > { %p10_p4 = scmp.ge.s32.totalorder %s13_s12, 4  }
 0x17c   :  { %12 = sbr.rel (!%p10_p4) target bundleno = 1 (0x1), region = 62 }

// kernel: rfb_forward.14
= control target key start
LH: loop header
LB: loop body
LE: loop exit
PB: predicated region body
PF: predicated region fallthrough
CT: control target
= control target key end

     0   :  { %s793_s12 = smov 0   ;;  %s874_s0 = inlined_call_operand.vmem [shape: bf16[2,4,490], index: 0, kind: input, shape index: {}]   ;;  %s875_s1 = inlined_call_operand.vmem [shape: bf16[4,36], index: 1, kind: input, shape index: {}]   ;;  %s876_s2 = inlined_call_operand.vmem [shape: f32[4,1], index: 2, kind: input, shape index: {}]   ;;  %s877_s3 = inlined_call_operand.vmem [shape: bf16[2,4,352], index: 3, kind: output, shape index: {}]  }
   0x1 LB: > { %s674_s13 = sadd.s32 4294967295, %s759_s12   ;;  %p678_p0 = scmp.ge.s32.totalorder %s759_s12, 1  ;;  %s759_s12 = sphi %s793_s12, %s13_s12  }
   0x2   : > { %p137_p1 = scmp.lt.s32.totalorder %s759_s12, 3 }
   0x4   : > { %p138_p2 = pnand %p678_p0, %p137_p1 }
   0x5   : > { %p161_p3 = scmp.lt.s32.totalorder (!%p138_p2), %s674_s13, 1  ;;  %v185_v0 = vlaneseq (!%p138_p2)  ;;  %v761_v1 = vmov (!%p138_p2), 1983009808   ;;  %s762_s18 = smov (!%p138_p2), 122   ;;  %vm192_vm0 = vcmask (!%p138_p2), 779264   ;;  %v765_v22 = vmov (!%p138_p2), 0.0  }
   0x6   : > { %141 = sbr.rel (%p138_p2) target bundleno = 403 (0x193), region = 32  ;;  %v183_v2 = vunpack.c.l.s4 (!%p138_p2), %v761_v1  ;;  %s763_s19 = smov (!%p138_p2), 125   ;;  %703 = vmatprep.subr.bf16.mxu1 (!%p138_p2), %v765_v22  ;;  %vm771_vm1 = vmmov (!%p138_p2), 0   ;;  %v772_v36 = vmov (!%p138_p2), 0   ;;  %v450_v37 = vld [vmem:[%s876_s2] sm:$0xf] (!%p138_p2) }
   0x7   : > { %v186_v3 = vshrl.u32 (!%p138_p2), %v185_v0, 7  ;;  %s764_s20 = smov (!%p138_p2), 62   ;;  %s766_s21 = smov (!%p138_p2), 59   ;;  %709 = vmatprep.mubr.msk.bf16.mxu1 (!%p138_p2), %vm771_vm1, %v765_v22  ;;  %542 = vmatprep.mubr.bf16.mxu0 (!%p138_p2), %v772_v36  ;;  %vm224_vm2 = vcmask (!%p138_p2), 781314   ;;  %vm280_vm3 = vcmask (!%p138_p2), 506880   ;;  %vm217_vm4 = vcmask (!%p138_p2), 1043456  }
   0x8   : > { %v184_v4 = vunpack.c.0.s8 (!%p138_p2), %v183_v2  ;;  %s767_s22 = smov (!%p138_p2), 56   ;;  %s768_s23 = smov (!%p138_p2), 124   ;;  %734 = vset.pattern.permute.xlu0 (!%p138_p2), %v772_v36  ;;  %vm219_vm5 = vcmask (!%p138_p2), 1022976   ;;  %vm250_vm6 = vcmask (!%p138_p2), 998400   ;;  %vm311_vm7 = vcmask (!%p138_p2), 482304  }
   0x9   : > { %s769_s24 = smov (!%p138_p2), 121   ;;  %s770_s25 = smov (!%p138_p2), 118   ;;  %vm342_vm8 = vcmask (!%p138_p2), 457728   ;;  %vm373_vm9 = vcmask (!%p138_p2), 1014784   ;;  %vm403_vm10 = vcmask (!%p138_p2), 990208   ;;  %vm433_vm11 = vcmask (!%p138_p2), 965632  }
   0xa   : > { %v809_v5 = vsub.s32 (!%p138_p2), %v184_v4, %v186_v3  ;;  %vm500_vm12 = vcmask (!%p138_p2), 1041408   ;;  %vm496_vm13 = vcmask (!%p138_p2), 293888   ;;  %vm614_vm14 = vcmask (!%p138_p2), 1043458  }
   0xb   : > { %vm615_vm15 = vmor (!%p138_p2), %vm614_vm14, %vm500_vm12 }
   0xd   : > { %s879_s13 = smov (!%p161_p3, %s674_s13), 1 }
   0xe   : > { %s698_s14 = sshll.u32 %s879_s13, 3  ;;  %s713_s30 = smul.u32 6, %s879_s13 }
   0xf   : > { %s807_s17 = scalar_lea.vmem %s874_s0, %s698_s14 }
  0x10   : > { %v226_v6 = vld [vmem:[%s807_s17] sm:$0x3f]  ;;  %s170_s6 = scalar_lea.vmem %s877_s3, %s713_s30 }
  0x11   : > { %v194_v7 = vld [vmem:[%s807_s17] sm:$0x3f]  ;;  %v235_v9 = vrot.slane %v226_v6, %v809_v5  ;;  %v228_v12 = vcombine.high %v226_v6, %v226_v6 }
  0x12   : > { %v256_v8 = vld [vmem:[%s807_s17] sm:$0xff]  ;;  %v210_v10 = vrot.slane %v194_v7, %v809_v5  ;;  %v196_v11 = vcombine.low %v194_v7, %v194_v7 }
  0x13   : > { %v172_v13 = vld [vmem:[%s807_s17] sm:$0x3f]  ;;  %243 = vrot.lane.b32.xlu1 %v235_v9, %s762_s18  ;;  %v272_v14 = vrot.slane %v256_v8, %v809_v5  ;;  %v258_v16 = vcombine.low %v256_v8, %v256_v8  ;;  %v289_v18 = vcombine.high %v256_v8, %v256_v8  ;;  %v242_v19 = vrot.slane %v228_v12, %v809_v5 }
  0x14   : > { %213 = vrot.lane.b32.xlu0 %v210_v10, %s763_s19  ;;  %v203_v15 = vrot.slane %v196_v11, %v809_v5  ;;  %682 = vst.sshfl [vmem:[#allocation2] sm:$0xf pattern:$0x76325410] %v172_v13  ;;  %v174_v17 = vcombine.high %v172_v13, %v172_v13  ;;  %v349_v24 = vld [vmem:[%s807_s17 + $0x2] sm:$0x3f] }
  0x15   : > { %v265_v20 = vrot.slane %v258_v16, %v809_v5  ;;  %v303_v23 = vrot.slane %v289_v18, %v809_v5  ;;  %v351_v25 = vcombine.high %v349_v24, %v349_v24  ;;  %v379_v26 = vld [vmem:[%s807_s17 + $0x2] sm:$0x3f]  ;;  %v358_v28 = vrot.slane %v349_v24, %v809_v5 }
  0x16   : > { %v188_v21 = vrot.slane %v174_v17, %v809_v5  ;;  %v381_v29 = vcombine.low %v379_v26, %v379_v26  ;;  %v409_v30 = vld [vmem:[%s807_s17 + $0x2] sm:$0x3f]  ;;  %v395_v31 = vrot.slane %v379_v26, %v809_v5 }
  0x17   : > { %275 = vrot.lane.b32.xlu1 %v272_v14, %s764_s20  ;;  %v365_v27 = vrot.slane %v351_v25, %v809_v5  ;;  %v411_v33 = vcombine.high %v409_v30, %v409_v30  ;;  %v418_v35 = vrot.slane %v409_v30, %v809_v5 }
  0x18   : > { %211 = vrot.lane.b32.xlu0 %v203_v15, %s763_s19  ;;  %193 = vst.msk [vmem:[#allocation2 + $0x8] sm:$0x3] %vm192_vm0, %v188_v21  ;;  %v388_v32 = vrot.slane %v381_v29, %v809_v5 }
  0x19   : > { %v425_v34 = vrot.slane %v411_v33, %v809_v5 }
  0x1b   : > { %245 = vrot.lane.b32.xlu1 %v242_v19, %s762_s18 }
  0x1c   : > { %273 = vrot.lane.b32.xlu0 %v265_v20, %s764_s20 }
  0x1f   : > { %306 = vrot.lane.b32.xlu1 %v303_v23, %s766_s21 }
  0x20   : > { %304 = vrot.lane.b32.xlu0 %v272_v14, %s766_s21 }
  0x23   : > { %337 = vrot.lane.b32.xlu1 %v272_v14, %s767_s22 }
  0x24   : > { %335 = vrot.lane.b32.xlu0 %v265_v20, %s767_s22 }
  0x27   : > { %368 = vrot.lane.b32.xlu1 %v365_v27, %s768_s23 }
  0x28   : > { %366 = vrot.lane.b32.xlu0 %v358_v28, %s768_s23 }
  0x2b   : > { %398 = vrot.lane.b32.xlu1 %v395_v31, %s769_s24 }
  0x2c   : > { %396 = vrot.lane.b32.xlu0 %v388_v32, %s769_s24 }
  0x2f   : > { %428 = vrot.lane.b32.xlu1 %v425_v34, %s770_s25 }
  0x30   : > { %426 = vrot.lane.b32.xlu0 %v418_v35, %s770_s25 }
  0x34   : > { %453 = vperm.xlu0 %734, %v450_v37  }
  0x85   : > { %v244_v38 = vpop.permute.xlu1 %243 }
  0x86   : > { %v214_v39 = vpop.permute.xlu0 %213  ;;  %v247_v50 = vrot.slane %v244_v38, 4 }
  0x87   : > { %225 = vst.msk [vmem:[#allocation2 + $0x8] sm:$0xc] %vm224_vm2, %v214_v39  ;;  %v216_v42 = vrot.slane %v214_v39, 4 }
  0x89   : > { %v276_v40 = vpop.permute.xlu1 %275 }
  0x8a   : > { %v212_v41 = vpop.permute.xlu0 %211  ;;  %v278_v43 = vrot.slane %v276_v40, 4 }
  0x8b   : > { %v215_v44 = vrot.slane %v212_v41, 4 }
  0x8c   : > { %v282_v45 = vsel %vm280_vm3, %v276_v40, %v278_v43 }
  0x8d   : > { %v218_v46 = vsel %vm217_vm4, %v215_v44, %v216_v42  ;;  %286 = vst.msk [vmem:[#allocation2 + $0x14] sm:$0xc] %vm224_vm2, %v282_v45  ;;  %v246_v48 = vpop.permute.xlu1 %245 }
  0x8e   : > { %v220_v47 = vsel %vm219_vm5, %v212_v41, %v218_v46  ;;  %v274_v49 = vpop.permute.xlu0 %273  ;;  %v248_v51 = vrot.slane %v246_v48, 4  ;;  %255 = vst.msk [vmem:[#allocation2 + $0x14] sm:$0x3] %vm192_vm0, %v246_v48 }
  0x8f   : > { %223 = vst [vmem:[#allocation2] sm:$0xcc] %v220_v47  ;;  %v277_v52 = vrot.slane %v274_v49, 4 }
  0x90   : > { %v249_v53 = vsel %vm217_vm4, %v247_v50, %v248_v51 }
  0x91   : > { %v279_v54 = vsel %vm217_vm4, %v277_v52, %v278_v43  ;;  %v251_v55 = vsel %vm250_vm6, %v244_v38, %v249_v53  ;;  %v307_v57 = vpop.permute.xlu1 %306  ;;  %v449_v38 = vld [vmem:[%s875_s1] sm:$0x3] }
  0x92   : > { %v281_v56 = vsel %vm280_vm3, %v274_v49, %v279_v54  ;;  %v305_v58 = vpop.permute.xlu0 %304  ;;  %254 = vst [vmem:[#allocation2 + $0xc] sm:$0x33] %v251_v55  ;;  %v309_v59 = vrot.slane %v307_v57, 4 }
  0x93   : > { %285 = vst [vmem:[#allocation2 + $0xc] sm:$0xcc] %v281_v56  ;;  %v308_v60 = vrot.slane %v305_v58, 4 }
  0x94   : > { %v313_v61 = vsel %vm311_vm7, %v307_v57, %v309_v59 }
  0x95   : > { %v310_v62 = vsel %vm217_vm4, %v308_v60, %v309_v59  ;;  %317 = vst.msk [vmem:[#allocation2 + $0x20] sm:$0x3] %vm192_vm0, %v313_v61  ;;  %v338_v0 = vpop.permute.xlu1 %337  ;;  %v743_v2 = vld [vmem:[#allocation2 + $0x8] ss:$12 sps:$4 sm:$0xff]  }
  0x96   : > { %v312_v63 = vsel %vm311_vm7, %v305_v58, %v310_v62  ;;  %v336_v1 = vpop.permute.xlu0 %335  ;;  %v340_v3 = vrot.slane %v338_v0, 4  ;;  %704 = vmatpush3.bf16.msra.mxu1 %v743_v2  ;;  %v439_v11 = vld [vmem:[#allocation2] sm:$0xff] }
  0x97   : > { %316 = vst [vmem:[#allocation2 + $0x18] sm:$0x33] %v312_v63  ;;  %v339_v4 = vrot.slane %v336_v1, 4  ;;  %705 = vmatprep.subr.bf16.mxu1 %v765_v22 }
  0x98   : > { %v344_v6 = vsel %vm342_vm8, %v338_v0, %v340_v3 }
  0x99   : > { %v341_v7 = vsel %vm217_vm4, %v339_v4, %v340_v3  ;;  %348 = vst.msk [vmem:[#allocation2 + $0x20] sm:$0xc] %vm224_vm2, %v344_v6  ;;  %v369_v9 = vpop.permute.xlu1 %368 }
  0x9a   : > { %v343_v8 = vsel %vm342_vm8, %v336_v1, %v341_v7  ;;  %v367_v10 = vpop.permute.xlu0 %366  ;;  %v441_v12 = vld [vmem:[#allocation2 + $0xc] sm:$0xff]  ;;  %v371_v14 = vrot.slane %v369_v9, 4  ;;  %378 = vst.msk [vmem:[#allocation2 + $0x2c] sm:$0x3] %vm192_vm0, %v369_v9 }
  0x9b   : > { %v744_v13 = vld [vmem:[#allocation2 + $0x4] ss:$12 sps:$4 sm:$0xff]   ;;  %347 = vst [vmem:[#allocation2 + $0x18] sm:$0xcc] %v343_v8  ;;  %v370_v15 = vrot.slane %v367_v10, 4  ;;  %v683_v16 = vcombine.low %v439_v11, %v441_v12 }
  0x9c   : > { %510 = vmatprep.subr.bf16.mxu0 %v744_v13 }
  0x9d   : > { %v372_v17 = vsel %vm217_vm4, %v370_v15, %v371_v14  ;;  %511 = vmatpush1.bf16.msra.mxu0 %v683_v16  ;;  %v399_v19 = vpop.permute.xlu1 %398 }
  0x9e   : > { %v374_v18 = vsel %vm373_vm9, %v367_v10, %v372_v17  ;;  %v397_v20 = vpop.permute.xlu0 %396  ;;  %v401_v21 = vrot.slane %v399_v19, 4  ;;  %408 = vst.msk [vmem:[#allocation2 + $0x2c] sm:$0xc] %vm224_vm2, %v399_v19 }
  0x9f   : > { %377 = vst [vmem:[#allocation2 + $0x24] sm:$0x33] %v374_v18  ;;  %v400_v23 = vrot.slane %v397_v20, 4 }
  0xa1   : > { %v402_v24 = vsel %vm217_vm4, %v400_v23, %v401_v21  ;;  %v429_v26 = vpop.permute.xlu1 %428 }
  0xa2   : > { %v404_v25 = vsel %vm403_vm10, %v397_v20, %v402_v24  ;;  %v427_v27 = vpop.permute.xlu0 %426  ;;  %v431_v28 = vrot.slane %v429_v26, 4  ;;  %438 = vst.msk [vmem:[#allocation2 + $0x38] sm:$0x3] %vm192_vm0, %v429_v26  ;;  %vm616_vm0 = vcmask 783364  }
  0xa3   : > { %407 = vst [vmem:[#allocation2 + $0x24] sm:$0xcc] %v404_v25  ;;  %v430_v29 = vrot.slane %v427_v27, 4  ;;  %vm617_vm1 = vmor %vm616_vm0, %vm615_vm15 }
  0xa5   : > { %v432_v30 = vsel %vm217_vm4, %v430_v29, %v431_v28  ;;  %v746_v32 = vld [vmem:[#allocation2 + $0x20] ss:$12 sps:$4 sm:$0xff]  }
  0xa6   : > { %v434_v31 = vsel %vm433_vm11, %v427_v27, %v432_v30  ;;  %706 = vmatpush3.bf16.msra.mxu1 %v746_v32 }
  0xa7   : > { %437 = vst [vmem:[#allocation2 + $0x30] sm:$0x33] %v434_v31  ;;  %707 = vmatprep.subr.bf16.mxu1 %v765_v22 }
  0xa9   : > { %v750_v35 = vld [vmem:[#allocation2 + $0x38] ss:$0 sps:$4 sm:$0x33]  }
  0xaa   : > { %v747_v33 = vld [vmem:[#allocation2 + $0x1c] ss:$12 sps:$4 sm:$0xff]   ;;  %v749_v34 = vld [vmem:[#allocation2 + $0x18] ss:$12 sps:$4 sm:$0xff]   ;;  %v508_v36 = vsel %vm500_vm12, %v750_v35, 0 }
  0xab   : > { %512 = vmatprep.subr.bf16.mxu0 %v747_v33  ;;  %708 = vmatpush3.bf16.msra.mxu1 %v508_v36 }
  0xac   : > { %513 = vmatpush1.bf16.msra.mxu0 %v749_v34 }
  0xae   : > { %v447_v37 = vld [vmem:[#allocation2 + $0x30] sm:$0x33]  ;;  %710 = vmatmul.mubr.msk.bf16.vlgmr.msra.gmra.mrb[0].mxu1 %vm496_vm13, %v449_v38 }
  0xaf   : > { %v690_v39 = vcombine.high %v447_v37, %v447_v37  ;;  %v689_v40 = vcombine.low %v447_v37, %v447_v37 }
  0xb1   : > { %692 = vmatprep.subr.msk.bf16.mxu0 %vm500_vm12, %v690_v39  ;;  %v502_v22 = vsel %vm500_vm12, %v689_v40, 0 }
  0xb2   : > { %515 = vmatpush1.bf16.msra.mxu0 %v502_v22 }
  0xb3   : > { %v454_v41 = vpop.permute.xlu0 %453 }
  0xb5   : > { %693 = vmatmul.mubr.msk.bf16.vlgmr.msra.gmra.mrb[0].mxu0 %vm496_vm13, %v449_v38 }
 0x181   : > { %v585_v42 = vpop.f32.mrb[0].mxu1 }
 0x182   : > { %v711_v43 = vpop.f32.mrb[1].mxu1  ;;  %v586_v44 = vadd.f32 %v585_v42, %v454_v41 }
 0x183   : > { %v588_v45 = vpop.f32.mrb[2].mxu1 }
 0x184   : > { %v712_v46 = vpop.f32.mrb[3].mxu1  ;;  %v593_v47 = vpack.c.bf16 %v586_v44, %v586_v44 }
 0x186   : > { %v611_v54 = vrot.slane %v593_v47, %v809_v5 }
 0x188   : > { %v544_v48 = vpop.f32.mrb[0].mxu0 }
 0x189   : > { %v545_v49 = vadd.f32 %v544_v48, %v454_v41  ;;  %v546_v50 = vpop.f32.mrb[1].mxu0 }
 0x18a   : > { %v547_v51 = vadd.f32 %v546_v50, %v454_v41  ;;  %v548_v52 = vpop.f32.mrb[2].mxu0 }
 0x18b   : > { %v549_v53 = vpop.f32.mrb[3].mxu0 }
 0x18c   : > { %v695_v55 = vpack.c.bf16 %v547_v51, %v545_v49 }
 0x18e   : > { %v604_v56 = vrot.slane %v695_v55, %v809_v5 }
 0x190   : > { %v612_v57 = vcombine.low %v604_v56, %v611_v54 }
 0x192   : > { %618 = vst.msk [vmem:[%s170_s6] sm:$0x3f] %vm617_vm1, %v612_v57 }
 0x193 PF: > { %s13_s12 = sadd.s32 1, %s759_s12  }
 0x194   : > { %p10_p4 = scmp.ge.s32.totalorder %s13_s12, 4  }
 0x196   :  { %12 = sbr.rel (!%p10_p4) target bundleno = 1 (0x1), region = 62 }

// kernel: rfb_forward.21
= control target key start
LH: loop header
LB: loop body
LE: loop exit
PB: predicated region body
PF: predicated region fallthrough
CT: control target
= control target key end

     0   :  { %s1894_s24 = smov 0   ;;  %s2466_s0 = inlined_call_operand.vmem [shape: bf16[2,4,326], index: 0, kind: input, shape index: {}]   ;;  %s2467_s1 = inlined_call_operand.vmem [shape: bf16[2,4,326], index: 1, kind: input, shape index: {}]   ;;  %s2468_s2 = inlined_call_operand.vmem [shape: bf16[2,4,326], index: 2, kind: input, shape index: {}]   ;;  %s2469_s3 = inlined_call_operand.vmem [shape: bf16[2,4,326], index: 3, kind: input, shape index: {}]   ;;  %s2470_s4 = inlined_call_operand.vmem [shape: bf16[2,4,288], index: 4, kind: input, shape index: {}]   ;;  %s2471_s5 = inlined_call_operand.vmem [shape: bf16[4,144], index: 5, kind: input, shape index: {}]   ;;  %s2472_s6 = inlined_call_operand.vmem [shape: f32[4,1], index: 6, kind: input, shape index: {}]   ;;  %s2473_s7 = inlined_call_operand.vmem [shape: f32[2,4,288], index: 7, kind: output, shape index: {}]  }
   0x1 LB: > { %s1761_s25 = sadd.s32 4294967295, %s1842_s24   ;;  %p1765_p0 = scmp.ge.s32.totalorder %s1842_s24, 1  ;;  %s1842_s24 = sphi %s1894_s24, %s17_s24  }
   0x2   : > { %p277_p1 = scmp.lt.s32.totalorder %s1842_s24, 3 }
   0x4   : > { %p278_p2 = pnand %p1765_p0, %p277_p1 }
   0x5   : > { %p329_p3 = scmp.lt.s32.totalorder (!%p278_p2), %s1761_s25, 1  ;;  %v366_v0 = vlaneseq (!%p278_p2)  ;;  %v1844_v1 = vmov (!%p278_p2), 1983009808   ;;  %s1845_s16 = smov (!%p278_p2), 127   ;;  %v1846_v20 = vmov (!%p278_p2), 0   ;;  %vm408_vm0 = vcmask (!%p278_p2), 257026  }
   0x6   : > { %281 = sbr.rel (%p278_p2) target bundleno = 558 (0x22e), region = 48  ;;  %v364_v2 = vunpack.c.l.s4 (!%p278_p2), %v1844_v1  ;;  %1599 = vmatprep.subr.bf16.mxu1 (!%p278_p2), %v1846_v20  ;;  %1801 = vset.pattern.permute.xlu0 (!%p278_p2), %v1846_v20  ;;  %vm460_vm1 = vcmask (!%p278_p2), 261126   ;;  %s1847_s17 = smov (!%p278_p2), 126   ;;  %vm383_vm2 = vcmask (!%p278_p2), 254976   ;;  %vm434_vm3 = vcmask (!%p278_p2), 259076  }
   0x7   : > { %v367_v3 = vshrl.u32 (!%p278_p2), %v366_v0, 7  ;;  %s1848_s18 = smov (!%p278_p2), 110   ;;  %s1849_s19 = smov (!%p278_p2), 109   ;;  %vm486_vm4 = vcmask (!%p278_p2), 1039360   ;;  %vm617_vm5 = vcmask (!%p278_p2), 1031168   ;;  %vm748_vm6 = vcmask (!%p278_p2), 900096  }
   0x8   : > { %v365_v4 = vunpack.c.0.s8 (!%p278_p2), %v364_v2  ;;  %s1850_s20 = smov (!%p278_p2), 108   ;;  %s1851_s21 = smov (!%p278_p2), 92   ;;  %vm879_vm7 = vcmask (!%p278_p2), 891904   ;;  %vm1554_vm8 = vcmask (!%p278_p2), 130048   ;;  %vm1010_vm9 = vcmask (!%p278_p2), 883712  }
   0x9   : > { %s1852_s22 = smov (!%p278_p2), 91   ;;  %s1853_s23 = smov (!%p278_p2), 90   ;;  %vm1141_vm10 = vcmask (!%p278_p2), 752640   ;;  %vm1272_vm11 = vcmask (!%p278_p2), 744448   ;;  %vm1403_vm12 = vcmask (!%p278_p2), 736256   ;;  %vm1656_vm13 = vcmask (!%p278_p2), 257024  }
   0xa   : > { %v1907_v5 = vsub.s32 (!%p278_p2), %v365_v4, %v367_v3 }
   0xd   : > { %s2475_s25 = smov (!%p329_p3, %s1761_s25), 1 }
   0xe   : > { %s1905_s26 = smul.u32 6, %s2475_s25 }
   0xf   : > { %s1782_s11 = smul.u32 12, %s2475_s25 }
  0x10   : > { %s1913_s29 = scalar_lea.vmem %s2468_s2, %s1905_s26  ;;  %s1919_s9 = scalar_lea.vmem %s2467_s1, %s1905_s26 }
  0x11   : > { %v527_v6 = vld [vmem:[%s1913_s29] sm:$0x3f]  ;;  %s1927_s12 = scalar_lea.vmem %s2469_s3, %s1905_s26  ;;  %s1933_s15 = scalar_lea.vmem %s2466_s0, %s1905_s26 }
  0x12   : > { %v495_v7 = vld [vmem:[%s1919_s9] sm:$0x3f]  ;;  %v1936_v8 = vrot.slane %v527_v6, %v1907_v5  ;;  %v529_v15 = vcombine.high %v527_v6, %v527_v6  ;;  %s353_s10 = scalar_lea.vmem %s2470_s4, %s1905_s26  ;;  %s358_s14 = scalar_lea.vmem %s2473_s7, %s1782_s11 }
  0x13   : > { %v511_v9 = vrot.slane %v495_v7, %v1907_v5  ;;  %v497_v10 = vcombine.low %v495_v7, %v495_v7  ;;  %v560_v11 = vld [vmem:[%s1927_s12] sm:$0x3f] }
  0x14   : > { %v462_v12 = vld [vmem:[%s1933_s15] sm:$0x3f]  ;;  %v576_v13 = vrot.slane %v560_v11, %v1907_v5  ;;  %548 = vrot.lane.b32.xlu0 %v1936_v8, %s1845_s16  ;;  %v562_v21 = vcombine.low %v560_v11, %v560_v11  ;;  %v543_v24 = vrot.slane %v529_v15, %v1907_v5  ;;  %v544_v40 = vcombine.low %v1936_v8, %v1936_v8 }
  0x15   : > { %v471_v14 = vrot.slane %v462_v12, %v1907_v5  ;;  %517 = vrot.lane.b32.xlu1 %v511_v9, %s1845_s16  ;;  %v504_v16 = vrot.slane %v497_v10, %v1907_v5  ;;  %v464_v17 = vcombine.high %v462_v12, %v462_v12  ;;  %v1954_v25 = vld [vmem:[%s1933_s15] sm:$0x3f] }
  0x16   : > { %v578_v18 = vcombine.low %v576_v13, %v576_v13  ;;  %v1957_v26 = vld [vmem:[%s1913_s29] sm:$0x3f]  ;;  %1772 = vst.sshfl [vmem:[#allocation2] sm:$0x3 pattern:$0x76325410] %v1954_v25  ;;  %v545_v28 = vcombine.low %v543_v24, %v543_v24  ;;  %v569_v29 = vrot.slane %v562_v21, %v1907_v5 }
  0x17   : > { %v479_v19 = vcombine.high %v471_v14, %v471_v14  ;;  %v512_v22 = vcombine.high %v504_v16, %v504_v16  ;;  %v478_v23 = vrot.slane %v464_v17, %v1907_v5  ;;  %v855_v27 = vld [vmem:[%s1933_s15] sm:$0x3f]  ;;  %1774 = vst.sshfl [vmem:[#allocation2 + $0x8] sm:$0xc pattern:$0x76325410] %v1957_v26 }
  0x18   : > { %v1966_v30 = vld [vmem:[%s1919_s9] sm:$0x3f]  ;;  %v857_v31 = vcombine.high %v855_v27, %v855_v27  ;;  %v1969_v32 = vrot.slane %v855_v27, %v1907_v5  ;;  %v577_v54 = vcombine.low %v569_v29, %v569_v29 }
  0x19   : > { %583 = vrot.lane.b32.xlu1 %v578_v18, %s1845_s16  ;;  %482 = vrot.lane.b32.xlu0 %v479_v19, %s1845_s16  ;;  %v593_v33 = vld [vmem:[%s1933_s15] sm:$0x3f]  ;;  %v890_v34 = vcombine.low %v1966_v30, %v1966_v30  ;;  %v904_v41 = vrot.slane %v1966_v30, %v1907_v5 }
  0x1a   : > { %v920_v35 = vld [vmem:[%s1913_s29] sm:$0x3f]  ;;  %v1982_v38 = vrot.slane %v857_v31, %v1907_v5  ;;  %v595_v43 = vcombine.high %v593_v33, %v593_v33  ;;  %v2011_v55 = vrot.slane %v593_v33, %v1907_v5 }
  0x1b   : > { %v953_v36 = vld [vmem:[%s1927_s12] sm:$0x3f]  ;;  %v1990_v42 = vrot.slane %v890_v34, %v1907_v5  ;;  %v922_v45 = vcombine.high %v920_v35, %v920_v35  ;;  %v1994_v46 = vrot.slane %v920_v35, %v1907_v5  ;;  %v362_v34 = vcombine.high %v1954_v25, %v1954_v25 }
  0x1c   : > { %v1979_v37 = vld [vmem:[%s1919_s9] sm:$0x3f]  ;;  %v1997_v47 = vrot.slane %v953_v36, %v1907_v5  ;;  %v955_v50 = vcombine.low %v953_v36, %v953_v36  ;;  %v609_v63 = vrot.slane %v595_v43, %v1907_v5  ;;  %v610_v9 = vcombine.high %v2011_v55, %v2011_v55 }
  0x1d   : > { %515 = vrot.lane.b32.xlu1 %v512_v22, %s1845_s16  ;;  %484 = vrot.lane.b32.xlu0 %v478_v23, %s1845_s16  ;;  %v986_v39 = vld [vmem:[%s1933_s15] sm:$0x3f]  ;;  %v628_v49 = vcombine.low %v1979_v37, %v1979_v37  ;;  %v2014_v56 = vrot.slane %v922_v45, %v1907_v5  ;;  %v642_v13 = vrot.slane %v1979_v37, %v1907_v5 }
  0x1e   : > { %v658_v44 = vld [vmem:[%s1913_s29] sm:$0x3f]  ;;  %v988_v51 = vcombine.high %v986_v39, %v986_v39  ;;  %v2005_v52 = vrot.slane %v986_v39, %v1907_v5  ;;  %v2018_v59 = vrot.slane %v955_v50, %v1907_v5  ;;  %v412_v37 = vcombine.high %v1957_v26, %v1957_v26 }
  0x1f   : > { %v2000_v48 = vld [vmem:[%s1919_s9] sm:$0x3f]  ;;  %v660_v58 = vcombine.high %v658_v44, %v658_v44  ;;  %v2033_v3 = vrot.slane %v628_v49, %v1907_v5  ;;  %v2062_v17 = vrot.slane %v658_v44, %v1907_v5  ;;  %v376_v44 = vrot.slane %v362_v34, %v1907_v5 }
  0x20   : > { %v1051_v53 = vld [vmem:[%s1913_s29] sm:$0x3f]  ;;  %v2021_v60 = vrot.slane %v988_v51, %v1907_v5  ;;  %v1021_v61 = vcombine.low %v2000_v48, %v2000_v48  ;;  %v1035_v0 = vrot.slane %v2000_v48, %v1907_v5  ;;  %v369_v49 = vrot.slane %v1954_v25, %v1907_v5 }
  0x21   : > { %550 = vrot.lane.b32.xlu1 %v545_v28, %s1845_s16  ;;  %581 = vrot.lane.b32.xlu0 %v569_v29, %s1845_s16  ;;  %v1084_v57 = vld [vmem:[%s1927_s12] sm:$0x3f]  ;;  %v1053_v1 = vcombine.high %v1051_v53, %v1051_v53  ;;  %v2030_v2 = vrot.slane %v1051_v53, %v1907_v5  ;;  %v643_v24 = vcombine.high %v2033_v3, %v2033_v3 }
  0x22   : > { %v1117_v62 = vld [vmem:[%s1933_s15] sm:$0x3f]  ;;  %v2036_v4 = vrot.slane %v1021_v61, %v1907_v5  ;;  %v2039_v6 = vrot.slane %v1084_v57, %v1907_v5  ;;  %v1086_v7 = vcombine.low %v1084_v57, %v1084_v57  ;;  %v674_v27 = vrot.slane %v660_v58, %v1907_v5  ;;  %384 = vst.msk [vmem:[#allocation2 + $0x10] sm:$0x3] %vm383_vm2, %v376_v44 }
  0x23   : > { %v2042_v8 = vld [vmem:[%s1919_s9] sm:$0x3f]  ;;  %v2049_v10 = vrot.slane %v1053_v1, %v1907_v5  ;;  %v1119_v11 = vcombine.high %v1117_v62, %v1117_v62  ;;  %v2058_v15 = vrot.slane %v1117_v62, %v1907_v5  ;;  %v426_v53 = vrot.slane %v412_v37, %v1907_v5 }
  0x24   : > { %v1182_v12 = vld [vmem:[%s1913_s29] sm:$0x3f]  ;;  %v1152_v19 = vcombine.low %v2042_v8, %v2042_v8  ;;  %v1166_v21 = vrot.slane %v2042_v8, %v1907_v5  ;;  %v676_v50 = vcombine.low %v674_v27, %v674_v27  ;;  %v377_v61 = vcombine.high %v369_v49, %v369_v49 }
  0x25   : > { %513 = vrot.lane.b32.xlu1 %v504_v16, %s1845_s16  ;;  %480 = vrot.lane.b32.xlu0 %v471_v14, %s1845_s16  ;;  %v2055_v14 = vrot.slane %v1086_v7, %v1907_v5  ;;  %v385_v16 = vld [vmem:[%s1919_s9] sm:$0x3f]  ;;  %v2065_v18 = vrot.slane %v1119_v11, %v1907_v5  ;;  %v1184_v29 = vcombine.high %v1182_v12, %v1182_v12 }
  0x26   : > { %v436_v22 = vld [vmem:[%s1927_s12] sm:$0x3f]  ;;  %v2078_v31 = vrot.slane %v1182_v12, %v1907_v5  ;;  %v2083_v33 = vrot.slane %v1152_v19, %v1907_v5  ;;  %v401_v35 = vrot.slane %v385_v16, %v1907_v5  ;;  %v387_v62 = vcombine.low %v385_v16, %v385_v16  ;;  %382 = vst [vmem:[#allocation2 + $0x8] sm:$0x3] %v377_v61 }
  0x27   : > { %v1215_v23 = vld [vmem:[%s1927_s12] sm:$0x3f]  ;;  %v2089_v36 = vrot.slane %v1184_v29, %v1907_v5  ;;  %v452_v39 = vrot.slane %v436_v22, %v1907_v5  ;;  %v438_v1 = vcombine.low %v436_v22, %v436_v22  ;;  %v419_v7 = vrot.slane %v1957_v26, %v1907_v5 }
  0x28   : > { %v691_v28 = vld [vmem:[%s1927_s12] sm:$0x3f]  ;;  %409 = vst.msk [vmem:[#allocation2 + $0x10] sm:$0xc] %vm408_vm0, %v401_v35  ;;  %v1217_v45 = vcombine.low %v1215_v23, %v1215_v23  ;;  %v394_v11 = vrot.slane %v387_v62, %v1907_v5  ;;  %v970_v30 = vcombine.low %v2018_v59, %v2018_v59  ;;  %v1068_v48 = vcombine.low %v2030_v2, %v2030_v2 }
  0x29   : > { %579 = vrot.lane.b32.xlu1 %v577_v54, %s1845_s16  ;;  %546 = vrot.lane.b32.xlu0 %v544_v40, %s1845_s16  ;;  %v2095_v40 = vrot.slane %v1215_v23, %v1907_v5  ;;  %v707_v43 = vrot.slane %v691_v28, %v1907_v5  ;;  %v693_v51 = vcombine.low %v691_v28, %v691_v28  ;;  %v1248_v57 = vld [vmem:[%s1933_s15] sm:$0x3f] }
  0x2a   : > { %v454_v54 = vcombine.low %v452_v39, %v452_v39  ;;  %v2108_v58 = vrot.slane %v1217_v45, %v1907_v5  ;;  %v2111_v25 = vld [vmem:[%s1919_s9] sm:$0x3f]  ;;  %1773 = vst.sshfl [vmem:[#allocation2] sm:$0x30 pattern:$0x76325410] %v387_v62  ;;  %v1250_v12 = vcombine.high %v1248_v57, %v1248_v57  ;;  %v427_v19 = vcombine.low %v419_v7, %v419_v7 }
  0x2b   : > { %v1313_v16 = vld [vmem:[%s1913_s29] sm:$0x3f]  ;;  %1775 = vst.sshfl [vmem:[#allocation2 + $0x8] sm:$0xc0 pattern:$0x76325410] %v438_v1  ;;  %v445_v23 = vrot.slane %v438_v1, %v1907_v5  ;;  %v1283_v22 = vcombine.low %v2111_v25, %v2111_v25  ;;  %v1297_v26 = vrot.slane %v2111_v25, %v1907_v5  ;;  %v700_v27 = vrot.slane %v693_v51, %v1907_v5 }
  0x2c   : > { %461 = vst.msk [vmem:[#allocation2 + $0x10] sm:$0xc0] %vm460_vm1, %v454_v54  ;;  %v402_v28 = vcombine.high %v394_v11, %v394_v11  ;;  %v2133_v29 = vrot.slane %v1250_v12, %v1907_v5  ;;  %432 = vst [vmem:[#allocation2] sm:$0x30] %v427_v19  ;;  %v1315_v37 = vcombine.high %v1313_v16, %v1313_v16  ;;  %v724_v49 = vld [vmem:[%s1933_s15] sm:$0x3f] }
  0x2d   : > { %615 = vrot.lane.b32.xlu1 %v609_v63, %s1847_s17  ;;  %613 = vrot.lane.b32.xlu0 %v610_v9, %s1847_s17  ;;  %v428_v63 = vcombine.low %v426_v53, %v426_v53  ;;  %v709_v9 = vcombine.low %v707_v43, %v707_v43  ;;  %v453_v34 = vcombine.low %v445_v23, %v445_v23  ;;  %v1379_v51 = vld [vmem:[%s1933_s15] sm:$0x3f] }
  0x2e   : > { %v2136_v35 = vrot.slane %v1283_v22, %v1907_v5  ;;  %v2139_v39 = vrot.slane %v1313_v16, %v1907_v5  ;;  %407 = vst [vmem:[#allocation2 + $0x8] sm:$0xc] %v402_v28  ;;  %v2145_v45 = vrot.slane %v1315_v37, %v1907_v5  ;;  %v757_v53 = vld [vmem:[%s1919_s9] sm:$0x3f]  ;;  %v1381_v54 = vcombine.high %v1379_v51, %v1379_v51 }
  0x2f   : > { %435 = vst.msk [vmem:[#allocation2 + $0x10] sm:$0x30] %vm434_vm3, %v428_v63  ;;  %458 = vst [vmem:[#allocation2] sm:$0xc0] %v453_v34  ;;  %v2159_v62 = vld [vmem:[%s1919_s9] sm:$0x3f]  ;;  %v675_v63 = vcombine.low %v2062_v17, %v2062_v17  ;;  %v726_v1 = vcombine.high %v724_v49, %v724_v49  ;;  %v708_v11 = vcombine.low %v700_v27, %v700_v27 }
  0x30   : > { %v2164_v7 = vrot.slane %v1381_v54, %v1907_v5  ;;  %v733_v12 = vrot.slane %v724_v49, %v1907_v5  ;;  %v759_v16 = vcombine.low %v757_v53, %v757_v53  ;;  %v1233_v8 = vcombine.low %v2095_v40, %v2095_v40 }
  0x31   : > { %648 = vrot.lane.b32.xlu1 %v642_v13, %s1847_s17  ;;  %646 = vrot.lane.b32.xlu0 %v643_v24, %s1847_s17  ;;  %v2118_v13 = vrot.slane %v1248_v57, %v1907_v5  ;;  %v1346_v24 = vld [vmem:[%s1927_s12] sm:$0x3f]  ;;  %v2156_v57 = vrot.slane %v1379_v51, %v1907_v5  ;;  %v740_v28 = vrot.slane %v726_v1, %v1907_v5 }
  0x32   : > { %v2142_v43 = vrot.slane %v1346_v24, %v1907_v5  ;;  %v1348_v44 = vcombine.low %v1346_v24, %v1346_v24  ;;  %v1444_v24 = vld [vmem:[%s1913_s29] sm:$0x3f]  ;;  %v766_v34 = vrot.slane %v759_v16, %v1907_v5  ;;  %v773_v51 = vrot.slane %v757_v53, %v1907_v5 }
  0x33   : > { %v2189_v49 = vrot.slane %v1444_v24, %v1907_v5  ;;  %v1477_v1 = vld [vmem:[%s1927_s12] sm:$0x3f] }
  0x34   : > { %v774_v54 = vcombine.high %v766_v34, %v766_v34  ;;  %v1364_v25 = vcombine.low %v2142_v43, %v2142_v43 }
  0x35   : > { %681 = vrot.lane.b32.xlu1 %v676_v50, %s1847_s17  ;;  %679 = vrot.lane.b32.xlu0 %v2062_v17, %s1847_s17  ;;  %v2151_v50 = vrot.slane %v1348_v44, %v1907_v5  ;;  %v789_v17 = vld [vmem:[%s1913_s29] sm:$0x3f]  ;;  %v1512_v19 = vld [vmem:[#allocation2 + $0x8] sm:$0xff] }
  0x36   : > { %v1513_v61 = vld [vmem:[#allocation2 + $0x10] sm:$0xff]  ;;  %1558 = vmatprep.subr.bf16.mxu0 %v1512_v19  ;;  %v1511_v22 = vld [vmem:[#allocation2] sm:$0xff]  ;;  %v791_v37 = vcombine.high %v789_v17, %v789_v17  ;;  %v798_v16 = vrot.slane %v789_v17, %v1907_v5 }
  0x37   : > { %1600 = vmatpush1.bf16.msra.mxu1 %v1513_v61  ;;  %1559 = vmatpush1.bf16.msra.mxu0 %v1511_v22 }
  0x38   : > { %1601 = vmatprep.subr.bf16.mxu1 %v1846_v20  ;;  %v805_v61 = vrot.slane %v791_v37, %v1907_v5  ;;  %v806_v17 = vcombine.low %v798_v16, %v798_v16  ;;  %v872_v37 = vcombine.high %v1969_v32, %v1969_v32 }
  0x39   : > { %714 = vrot.lane.b32.xlu1 %v709_v9, %s1847_s17  ;;  %712 = vrot.lane.b32.xlu0 %v700_v27, %s1847_s17  ;;  %v1414_v9 = vcombine.low %v2159_v62, %v2159_v62  ;;  %v741_v27 = vcombine.high %v733_v12, %v733_v12 }
  0x3a   : > { %v807_v22 = vcombine.low %v805_v61, %v805_v61 }
  0x3b   : > { %v2176_v23 = vrot.slane %v1414_v9, %v1907_v5  ;;  %v2196_v9 = vrot.slane %v1477_v1, %v1907_v5 }
  0x3d   : > { %644 = vrot.lane.b32.xlu1 %v2033_v3, %s1847_s17  ;;  %611 = vrot.lane.b32.xlu0 %v2011_v55, %s1847_s17  ;;  %v1428_v55 = vrot.slane %v2159_v62, %v1907_v5  ;;  %v1446_v3 = vcombine.high %v1444_v24, %v1444_v24 }
  0x3f   : > { %v2186_v44 = vrot.slane %v1446_v3, %v1907_v5 }
  0x41   : > { %710 = vrot.lane.b32.xlu1 %v708_v11, %s1847_s17  ;;  %677 = vrot.lane.b32.xlu0 %v675_v63, %s1847_s17  ;;  %v822_v63 = vld [vmem:[%s1927_s12] sm:$0x3f]  ;;  %v1479_v11 = vcombine.low %v1477_v1, %v1477_v1 }
  0x42   : > { %v838_v24 = vrot.slane %v822_v63, %v1907_v5  ;;  %v824_v53 = vcombine.low %v822_v63, %v822_v63 }
  0x43   : > { %v2200_v19 = vrot.slane %v1479_v11, %v1907_v5 }
  0x44   : > { %v831_v3 = vrot.slane %v824_v53, %v1907_v5  ;;  %v1495_v5 = vcombine.low %v2196_v9, %v2196_v9 }
  0x45   : > { %746 = vrot.lane.b32.xlu1 %v740_v28, %s1848_s18  ;;  %744 = vrot.lane.b32.xlu0 %v741_v27, %s1848_s18  ;;  %v840_v28 = vcombine.low %v838_v24, %v838_v24 }
  0x46   : > { %v839_v27 = vcombine.low %v831_v3, %v831_v3 }
  0x49   : > { %779 = vrot.lane.b32.xlu1 %v773_v51, %s1848_s18  ;;  %777 = vrot.lane.b32.xlu0 %v774_v54, %s1848_s18  ;;  %v905_v51 = vcombine.high %v1990_v42, %v1990_v42 }
  0x4d   : > { %812 = vrot.lane.b32.xlu1 %v807_v22, %s1848_s18  ;;  %810 = vrot.lane.b32.xlu0 %v798_v16, %s1848_s18 }
  0x51   : > { %845 = vrot.lane.b32.xlu1 %v840_v28, %s1848_s18  ;;  %843 = vrot.lane.b32.xlu0 %v831_v3, %s1848_s18 }
  0x55   : > { %775 = vrot.lane.b32.xlu1 %v766_v34, %s1848_s18  ;;  %742 = vrot.lane.b32.xlu0 %v733_v12, %s1848_s18  ;;  %v938_v12 = vcombine.low %v2014_v56, %v2014_v56  ;;  %v971_v34 = vcombine.low %v1997_v47, %v1997_v47  ;;  %v1101_v47 = vcombine.low %v2055_v14, %v2055_v14 }
  0x59   : > { %841 = vrot.lane.b32.xlu1 %v839_v27, %s1848_s18  ;;  %808 = vrot.lane.b32.xlu0 %v806_v17, %s1848_s18  ;;  %v1232_v27 = vcombine.low %v2108_v58, %v2108_v58  ;;  %v1199_v17 = vcombine.low %v2078_v31, %v2078_v31 }
  0x5d   : > { %877 = vrot.lane.b32.xlu1 %v1982_v38, %s1849_s19  ;;  %875 = vrot.lane.b32.xlu0 %v872_v37, %s1849_s19  ;;  %v937_v38 = vcombine.low %v1994_v46, %v1994_v46 }
  0x61   : > { %910 = vrot.lane.b32.xlu1 %v904_v41, %s1849_s19  ;;  %908 = vrot.lane.b32.xlu0 %v905_v51, %s1849_s19  ;;  %v1003_v41 = vcombine.high %v2005_v52, %v2005_v52 }
  0x65   : > { %943 = vrot.lane.b32.xlu1 %v938_v12, %s1849_s19  ;;  %941 = vrot.lane.b32.xlu0 %v1994_v46, %s1849_s19  ;;  %v1102_v46 = vcombine.low %v2039_v6, %v2039_v6 }
  0x69   : > { %976 = vrot.lane.b32.xlu1 %v971_v34, %s1849_s19  ;;  %974 = vrot.lane.b32.xlu0 %v2018_v59, %s1849_s19 }
  0x6d   : > { %906 = vrot.lane.b32.xlu1 %v1990_v42, %s1849_s19  ;;  %873 = vrot.lane.b32.xlu0 %v1969_v32, %s1849_s19  ;;  %v1036_v42 = vcombine.high %v2036_v4, %v2036_v4  ;;  %v1069_v32 = vcombine.low %v2049_v10, %v2049_v10 }
  0x71   : > { %972 = vrot.lane.b32.xlu1 %v970_v30, %s1849_s19  ;;  %939 = vrot.lane.b32.xlu0 %v937_v38, %s1849_s19  ;;  %v1298_v30 = vcombine.high %v2136_v35, %v2136_v35 }
  0x75   : > { %1008 = vrot.lane.b32.xlu1 %v2021_v60, %s1850_s20  ;;  %1006 = vrot.lane.b32.xlu0 %v1003_v41, %s1850_s20  ;;  %v1134_v60 = vcombine.high %v2058_v15, %v2058_v15 }
  0x79   : > { %1041 = vrot.lane.b32.xlu1 %v1035_v0, %s1850_s20  ;;  %1039 = vrot.lane.b32.xlu0 %v1036_v42, %s1850_s20 }
  0x7d   : > { %1074 = vrot.lane.b32.xlu1 %v1069_v32, %s1850_s20  ;;  %1072 = vrot.lane.b32.xlu0 %v2030_v2, %s1850_s20 }
  0x81   : > { %1107 = vrot.lane.b32.xlu1 %v1102_v46, %s1850_s20  ;;  %1105 = vrot.lane.b32.xlu0 %v2055_v14, %s1850_s20 }
  0x85   : > { %1037 = vrot.lane.b32.xlu1 %v2036_v4, %s1850_s20  ;;  %1004 = vrot.lane.b32.xlu0 %v2005_v52, %s1850_s20  ;;  %v1167_v52 = vcombine.high %v2083_v33, %v2083_v33 }
  0x86   : > { %v549_v56 = vpop.permute.xlu0 %548 }
  0x87   : > { %v518_v59 = vpop.permute.xlu1 %517 }
  0x88   : > { %526 = vst.msk [vmem:[#allocation2 + $0x28] sm:$0xc] %vm408_vm0, %v518_v59 }
  0x89   : > { %1103 = vrot.lane.b32.xlu1 %v1101_v47, %s1850_s20  ;;  %1070 = vrot.lane.b32.xlu0 %v1068_v48, %s1850_s20 }
  0x8b   : > { %v584_v0 = vpop.permute.xlu1 %583  ;;  %v483_v6 = vpop.permute.xlu0 %482 }
  0x8c   : > { %592 = vst.msk [vmem:[#allocation2 + $0x28] sm:$0xc0] %vm460_vm1, %v584_v0 }
  0x8d   : > { %1139 = vrot.lane.b32.xlu1 %v2065_v18, %s1851_s21  ;;  %1137 = vrot.lane.b32.xlu0 %v1134_v60, %s1851_s21  ;;  %v1200_v18 = vcombine.low %v2089_v36, %v2089_v36 }
  0x8f   : > { %v516_v2 = vpop.permute.xlu1 %515  ;;  %v485_v4 = vpop.permute.xlu0 %484 }
  0x90   : > { %v520_v10 = vsel %vm486_vm4, %v516_v2, %v518_v59  ;;  %v488_v14 = vsel %vm486_vm4, %v483_v6, %v485_v4  ;;  %494 = vst.msk [vmem:[#allocation2 + $0x28] sm:$0x3] %vm383_vm2, %v485_v4  ;;  %v1330_v4 = vcombine.low %v2139_v39, %v2139_v39 }
  0x91   : > { %525 = vst [vmem:[#allocation2 + $0x20] sm:$0xc] %v520_v10  ;;  %493 = vst [vmem:[#allocation2 + $0x20] sm:$0x3] %v488_v14  ;;  %1172 = vrot.lane.b32.xlu1 %v1166_v21, %s1851_s21  ;;  %1170 = vrot.lane.b32.xlu0 %v1167_v52, %s1851_s21 }
  0x93   : > { %v551_v54 = vpop.permute.xlu1 %550  ;;  %v582_v61 = vpop.permute.xlu0 %581 }
  0x94   : > { %v553_v1 = vsel %vm486_vm4, %v549_v56, %v551_v54  ;;  %559 = vst.msk [vmem:[#allocation2 + $0x28] sm:$0x30] %vm434_vm3, %v551_v54  ;;  %v586_v63 = vsel %vm486_vm4, %v582_v61, %v584_v0 }
  0x95   : > { %558 = vst [vmem:[#allocation2 + $0x20] sm:$0x30] %v553_v1  ;;  %591 = vst [vmem:[#allocation2 + $0x20] sm:$0xc0] %v586_v63  ;;  %1205 = vrot.lane.b32.xlu1 %v1200_v18, %s1851_s21  ;;  %1203 = vrot.lane.b32.xlu0 %v2078_v31, %s1851_s21 }
  0x97   : > { %v514_v21 = vpop.permute.xlu1 %513  ;;  %v481_v36 = vpop.permute.xlu0 %480 }
  0x98   : > { %v519_v11 = vsel %vm486_vm4, %v514_v21, %v516_v2  ;;  %v487_v16 = vsel %vm486_vm4, %v481_v36, %v483_v6  ;;  %v1363_v2 = vcombine.low %v2151_v50, %v2151_v50 }
  0x99   : > { %524 = vst [vmem:[#allocation2 + $0x18] sm:$0xc] %v519_v11  ;;  %492 = vst [vmem:[#allocation2 + $0x18] sm:$0x3] %v487_v16  ;;  %1238 = vrot.lane.b32.xlu1 %v1233_v8, %s1851_s21  ;;  %1236 = vrot.lane.b32.xlu0 %v2108_v58, %s1851_s21 }
  0x9b   : > { %v580_v22 = vpop.permute.xlu1 %579  ;;  %v547_v24 = vpop.permute.xlu0 %546  ;;  %v1516_v53 = vld [vmem:[#allocation2 + $0x28] sm:$0xff] }
  0x9c   : > { %v585_v28 = vsel %vm486_vm4, %v580_v22, %v582_v61  ;;  %v552_v40 = vsel %vm486_vm4, %v547_v24, %v549_v56  ;;  %1602 = vmatpush1.bf16.msra.mxu1 %v1516_v53  ;;  %v1515_v3 = vld [vmem:[#allocation2 + $0x20] sm:$0xff]  ;;  %v1429_v61 = vcombine.high %v2176_v23, %v2176_v23 }
  0x9d   : > { %590 = vst [vmem:[#allocation2 + $0x18] sm:$0xc0] %v585_v28  ;;  %557 = vst [vmem:[#allocation2 + $0x18] sm:$0x30] %v552_v40  ;;  %1168 = vrot.lane.b32.xlu1 %v2083_v33, %s1851_s21  ;;  %1135 = vrot.lane.b32.xlu0 %v2058_v15, %s1851_s21  ;;  %v1265_v15 = vcombine.high %v2118_v13, %v2118_v13 }
  0x9e   : > { %1560 = vmatprep.subr.bf16.mxu0 %v1515_v3  ;;  %1603 = vmatprep.subr.bf16.mxu1 %v1846_v20  ;;  %v1494_v3 = vcombine.low %v2200_v19, %v2200_v19 }
  0x9f   : > { %v616_v37 = vpop.permute.xlu1 %615  ;;  %v614_v51 = vpop.permute.xlu0 %613 }
  0xa0   : > { %625 = vst.msk [vmem:[#allocation2 + $0x40] sm:$0x3] %vm383_vm2, %v616_v37  ;;  %v619_v12 = vsel %vm617_vm5, %v614_v51, %v616_v37 }
  0xa1   : > { %624 = vst [vmem:[#allocation2 + $0x38] sm:$0x3] %v619_v12  ;;  %1234 = vrot.lane.b32.xlu1 %v1232_v27, %s1851_s21  ;;  %1201 = vrot.lane.b32.xlu0 %v1199_v17, %s1851_s21  ;;  %v1461_v27 = vcombine.low %v2189_v49, %v2189_v49  ;;  %v2379_v17 = vld.sshfl [vmem:[%s2471_s5] sm:$0x33 pattern:$0x76325410] }
  0xa3   : > { %v649_v33 = vpop.permute.xlu1 %648  ;;  %v647_v58 = vpop.permute.xlu0 %646 }
  0xa4   : > { %657 = vst.msk [vmem:[#allocation2 + $0x40] sm:$0xc] %vm408_vm0, %v649_v33  ;;  %v651_v31 = vsel %vm617_vm5, %v647_v58, %v649_v33  ;;  %v1514_v34 = vld [vmem:[#allocation2 + $0x18] sm:$0xff] }
  0xa5   : > { %656 = vst [vmem:[#allocation2 + $0x38] sm:$0xc] %v651_v31  ;;  %1270 = vrot.lane.b32.xlu1 %v2133_v29, %s1852_s22  ;;  %1268 = vrot.lane.b32.xlu0 %v1265_v15, %s1852_s22  ;;  %v1331_v29 = vcombine.low %v2145_v45, %v2145_v45 }
  0xa6   : > { %1561 = vmatpush1.bf16.msra.mxu0 %v1514_v34 }
  0xa7   : > { %v682_v38 = vpop.permute.xlu1 %681  ;;  %v680_v41 = vpop.permute.xlu0 %679 }
  0xa8   : > { %690 = vst.msk [vmem:[#allocation2 + $0x40] sm:$0x30] %vm434_vm3, %v682_v38  ;;  %v684_v42 = vsel %vm617_vm5, %v680_v41, %v682_v38 }
  0xa9   : > { %689 = vst [vmem:[#allocation2 + $0x38] sm:$0x30] %v684_v42  ;;  %1303 = vrot.lane.b32.xlu1 %v1297_v26, %s1852_s22  ;;  %1301 = vrot.lane.b32.xlu0 %v1298_v30, %s1852_s22 }
  0xab   : > { %v715_v32 = vpop.permute.xlu1 %714  ;;  %v713_v46 = vpop.permute.xlu0 %712 }
  0xac   : > { %723 = vst.msk [vmem:[#allocation2 + $0x40] sm:$0xc0] %vm460_vm1, %v715_v32  ;;  %v717_v47 = vsel %vm617_vm5, %v713_v46, %v715_v32 }
  0xad   : > { %722 = vst [vmem:[#allocation2 + $0x38] sm:$0xc0] %v717_v47  ;;  %1336 = vrot.lane.b32.xlu1 %v1331_v29, %s1852_s22  ;;  %1334 = vrot.lane.b32.xlu0 %v2139_v39, %s1852_s22 }
  0xaf   : > { %v645_v26 = vpop.permute.xlu1 %644  ;;  %v612_v48 = vpop.permute.xlu0 %611 }
  0xb0   : > { %v650_v56 = vsel %vm617_vm5, %v645_v26, %v647_v58  ;;  %v618_v45 = vsel %vm617_vm5, %v612_v48, %v614_v51 }
  0xb1   : > { %655 = vst [vmem:[#allocation2 + $0x30] sm:$0xc] %v650_v56  ;;  %623 = vst [vmem:[#allocation2 + $0x30] sm:$0x3] %v618_v45  ;;  %1369 = vrot.lane.b32.xlu1 %v1364_v25, %s1852_s22  ;;  %1367 = vrot.lane.b32.xlu0 %v2151_v50, %s1852_s22 }
  0xb3   : > { %v711_v59 = vpop.permute.xlu1 %710  ;;  %v678_v60 = vpop.permute.xlu0 %677  ;;  %v1519_v0 = vld [vmem:[#allocation2 + $0x40] sm:$0xff] }
  0xb4   : > { %v716_v6 = vsel %vm617_vm5, %v711_v59, %v713_v46  ;;  %v683_v43 = vsel %vm617_vm5, %v678_v60, %v680_v41  ;;  %1604 = vmatpush1.bf16.msra.mxu1 %v1519_v0  ;;  %v1518_v52 = vld [vmem:[#allocation2 + $0x38] sm:$0xff] }
  0xb5   : > { %721 = vst [vmem:[#allocation2 + $0x30] sm:$0xc0] %v716_v6  ;;  %688 = vst [vmem:[#allocation2 + $0x30] sm:$0x30] %v683_v43  ;;  %1299 = vrot.lane.b32.xlu1 %v2136_v35, %s1852_s22  ;;  %1266 = vrot.lane.b32.xlu0 %v2118_v13, %s1852_s22  ;;  %v1396_v13 = vcombine.high %v2156_v57, %v2156_v57 }
  0xb6   : > { %1562 = vmatprep.subr.bf16.mxu0 %v1518_v52  ;;  %1605 = vmatprep.subr.bf16.mxu1 %v1846_v20 }
  0xb7   : > { %v747_v10 = vpop.permute.xlu1 %746  ;;  %v745_v14 = vpop.permute.xlu0 %744 }
  0xb8   : > { %756 = vst.msk [vmem:[#allocation2 + $0x58] sm:$0x3] %vm383_vm2, %v747_v10  ;;  %v750_v18 = vsel %vm748_vm6, %v745_v14, %v747_v10 }
  0xb9   : > { %755 = vst [vmem:[#allocation2 + $0x50] sm:$0x3] %v750_v18  ;;  %1365 = vrot.lane.b32.xlu1 %v1363_v2, %s1852_s22  ;;  %1332 = vrot.lane.b32.xlu0 %v1330_v4, %s1852_s22 }
  0xbb   : > { %v780_v35 = vpop.permute.xlu1 %779  ;;  %v778_v50 = vpop.permute.xlu0 %777 }
  0xbc   : > { %788 = vst.msk [vmem:[#allocation2 + $0x58] sm:$0xc] %vm408_vm0, %v780_v35  ;;  %v782_v39 = vsel %vm748_vm6, %v778_v50, %v780_v35  ;;  %v1517_v54 = vld [vmem:[#allocation2 + $0x30] sm:$0xff] }
  0xbd   : > { %787 = vst [vmem:[#allocation2 + $0x50] sm:$0xc] %v782_v39  ;;  %1401 = vrot.lane.b32.xlu1 %v2164_v7, %s1853_s23  ;;  %1399 = vrot.lane.b32.xlu0 %v1396_v13, %s1853_s23  ;;  %v1462_v7 = vcombine.low %v2186_v44, %v2186_v44 }
  0xbe   : > { %1563 = vmatpush1.bf16.msra.mxu0 %v1517_v54 }
  0xbf   : > { %v813_v1 = vpop.permute.xlu1 %812  ;;  %v811_v63 = vpop.permute.xlu0 %810 }
  0xc0   : > { %821 = vst.msk [vmem:[#allocation2 + $0x58] sm:$0x30] %vm434_vm3, %v813_v1  ;;  %v815_v8 = vsel %vm748_vm6, %v811_v63, %v813_v1 }
  0xc1   : > { %820 = vst [vmem:[#allocation2 + $0x50] sm:$0x30] %v815_v8  ;;  %1434 = vrot.lane.b32.xlu1 %v1428_v55, %s1853_s23  ;;  %1432 = vrot.lane.b32.xlu0 %v1429_v61, %s1853_s23 }
  0xc3   : > { %v846_v21 = vpop.permute.xlu1 %845  ;;  %v844_v36 = vpop.permute.xlu0 %843 }
  0xc4   : > { %854 = vst.msk [vmem:[#allocation2 + $0x58] sm:$0xc0] %vm460_vm1, %v846_v21  ;;  %v848_v11 = vsel %vm748_vm6, %v844_v36, %v846_v21 }
  0xc5   : > { %853 = vst [vmem:[#allocation2 + $0x50] sm:$0xc0] %v848_v11  ;;  %1467 = vrot.lane.b32.xlu1 %v1462_v7, %s1853_s23  ;;  %1465 = vrot.lane.b32.xlu0 %v2189_v49, %s1853_s23  ;;  %v1538_v49 = vld [vmem:[%s2472_s6] sm:$0xf] }
  0xc7   : > { %v776_v62 = vpop.permute.xlu1 %775  ;;  %v743_v55 = vpop.permute.xlu0 %742 }
  0xc8   : > { %v781_v16 = vsel %vm748_vm6, %v776_v62, %v778_v50  ;;  %v749_v44 = vsel %vm748_vm6, %v743_v55, %v745_v14 }
  0xc9   : > { %786 = vst [vmem:[#allocation2 + $0x48] sm:$0xc] %v781_v16  ;;  %754 = vst [vmem:[#allocation2 + $0x48] sm:$0x3] %v749_v44  ;;  %1500 = vrot.lane.b32.xlu1 %v1495_v5, %s1853_s23  ;;  %1498 = vrot.lane.b32.xlu0 %v2200_v19, %s1853_s23 }
  0xcb   : > { %v842_v22 = vpop.permute.xlu1 %841  ;;  %v809_v24 = vpop.permute.xlu0 %808  ;;  %v1522_v53 = vld [vmem:[#allocation2 + $0x58] sm:$0xff] }
  0xcc   : > { %v847_v28 = vsel %vm748_vm6, %v842_v22, %v844_v36  ;;  %v814_v9 = vsel %vm748_vm6, %v809_v24, %v811_v63  ;;  %1606 = vmatpush1.bf16.msra.mxu1 %v1522_v53  ;;  %v1521_v40 = vld [vmem:[#allocation2 + $0x50] sm:$0xff] }
  0xcd   : > { %852 = vst [vmem:[#allocation2 + $0x48] sm:$0xc0] %v847_v28  ;;  %819 = vst [vmem:[#allocation2 + $0x48] sm:$0x30] %v814_v9  ;;  %1430 = vrot.lane.b32.xlu1 %v2176_v23, %s1853_s23  ;;  %1397 = vrot.lane.b32.xlu0 %v2156_v57, %s1853_s23  ;;  %v1552_v23 = vcombine.high %v2379_v17, %v2379_v17 }
  0xce   : > { %1564 = vmatprep.subr.bf16.mxu0 %v1521_v40  ;;  %1607 = vmatprep.subr.bf16.mxu1 %v1846_v20 }
  0xcf   : > { %v878_v57 = vpop.permute.xlu1 %877  ;;  %v876_v37 = vpop.permute.xlu0 %875  ;;  %1777 = vmatprep.mubr.msk.bf16.mxu0 %vm1554_vm8, %v1552_v23  ;;  %1778 = vmatprep.mubr.msk.bf16.mxu1 %vm1554_vm8, %v1552_v23 }
  0xd0   : > { %887 = vst.msk [vmem:[#allocation2 + $0x70] sm:$0x3] %vm383_vm2, %v878_v57  ;;  %v881_v19 = vsel %vm879_vm7, %v876_v37, %v878_v57 }
  0xd1   : > { %886 = vst [vmem:[#allocation2 + $0x68] sm:$0x3] %v881_v19  ;;  %1496 = vrot.lane.b32.xlu1 %v1494_v3, %s1853_s23  ;;  %1463 = vrot.lane.b32.xlu0 %v1461_v27, %s1853_s23 }
  0xd3   : > { %v911_v51 = vpop.permute.xlu1 %910  ;;  %v909_v12 = vpop.permute.xlu0 %908 }
  0xd4   : > { %919 = vst.msk [vmem:[#allocation2 + $0x70] sm:$0xc] %vm408_vm0, %v911_v51  ;;  %v913_v15 = vsel %vm879_vm7, %v909_v12, %v911_v51  ;;  %v1520_v33 = vld [vmem:[#allocation2 + $0x48] sm:$0xff] }
  0xd5   : > { %918 = vst [vmem:[#allocation2 + $0x68] sm:$0xc] %v913_v15  ;;  %1565 = vmatpush1.bf16.msra.mxu0 %v1520_v33  ;;  %1541 = vperm.xlu0 %1801, %v1538_v49  }
  0xd7   : > { %v944_v58 = vpop.permute.xlu1 %943  ;;  %v942_v31 = vpop.permute.xlu0 %941 }
  0xd8   : > { %952 = vst.msk [vmem:[#allocation2 + $0x70] sm:$0x30] %vm434_vm3, %v944_v58  ;;  %v946_v34 = vsel %vm879_vm7, %v942_v31, %v944_v58 }
  0xd9   : > { %951 = vst [vmem:[#allocation2 + $0x68] sm:$0x30] %v946_v34 }
  0xdb   : > { %v977_v30 = vpop.permute.xlu1 %976  ;;  %v975_v38 = vpop.permute.xlu0 %974 }
  0xdc   : > { %985 = vst.msk [vmem:[#allocation2 + $0x70] sm:$0xc0] %vm460_vm1, %v977_v30  ;;  %v979_v41 = vsel %vm879_vm7, %v975_v38, %v977_v30 }
  0xdd   : > { %984 = vst [vmem:[#allocation2 + $0x68] sm:$0xc0] %v979_v41 }
  0xdf   : > { %v907_v42 = vpop.permute.xlu1 %906  ;;  %v874_v29 = vpop.permute.xlu0 %873 }
  0xe0   : > { %v912_v32 = vsel %vm879_vm7, %v907_v42, %v909_v12  ;;  %v880_v46 = vsel %vm879_vm7, %v874_v29, %v876_v37 }
  0xe1   : > { %917 = vst [vmem:[#allocation2 + $0x60] sm:$0xc] %v912_v32  ;;  %885 = vst [vmem:[#allocation2 + $0x60] sm:$0x3] %v880_v46 }
  0xe3   : > { %v973_v47 = vpop.permute.xlu1 %972  ;;  %v940_v25 = vpop.permute.xlu0 %939  ;;  %v1525_v26 = vld [vmem:[#allocation2 + $0x70] sm:$0xff] }
  0xe4   : > { %v978_v48 = vsel %vm879_vm7, %v973_v47, %v975_v38  ;;  %v945_v56 = vsel %vm879_vm7, %v940_v25, %v942_v31  ;;  %1608 = vmatpush1.bf16.msra.mxu1 %v1525_v26  ;;  %v1524_v45 = vld [vmem:[#allocation2 + $0x68] sm:$0xff] }
  0xe5   : > { %983 = vst [vmem:[#allocation2 + $0x60] sm:$0xc0] %v978_v48  ;;  %950 = vst [vmem:[#allocation2 + $0x60] sm:$0x30] %v945_v56  ;;  %1566 = vmatprep.subr.bf16.mxu0 %v1524_v45  ;;  %1609 = vmatprep.subr.bf16.mxu1 %v1846_v20 }
  0xe7   : > { %v1009_v59 = vpop.permute.xlu1 %1008  ;;  %v1007_v60 = vpop.permute.xlu0 %1006 }
  0xe8   : > { %1018 = vst.msk [vmem:[#allocation2 + $0x88] sm:$0x3] %vm383_vm2, %v1009_v59  ;;  %v1012_v0 = vsel %vm1010_vm9, %v1007_v60, %v1009_v59 }
  0xe9   : > { %1017 = vst [vmem:[#allocation2 + $0x80] sm:$0x3] %v1012_v0 }
  0xeb   : > { %v1042_v6 = vpop.permute.xlu1 %1041  ;;  %v1040_v43 = vpop.permute.xlu0 %1039 }
  0xec   : > { %1050 = vst.msk [vmem:[#allocation2 + $0x88] sm:$0xc] %vm408_vm0, %v1042_v6  ;;  %v1044_v52 = vsel %vm1010_vm9, %v1040_v43, %v1042_v6  ;;  %v1523_v2 = vld [vmem:[#allocation2 + $0x60] sm:$0xff] }
  0xed   : > { %1049 = vst [vmem:[#allocation2 + $0x80] sm:$0xc] %v1044_v52  ;;  %1567 = vmatpush1.bf16.msra.mxu0 %v1523_v2 }
  0xef   : > { %v1075_v4 = vpop.permute.xlu1 %1074  ;;  %v1073_v10 = vpop.permute.xlu0 %1072 }
  0xf0   : > { %1083 = vst.msk [vmem:[#allocation2 + $0x88] sm:$0x30] %vm434_vm3, %v1075_v4  ;;  %v1077_v14 = vsel %vm1010_vm9, %v1073_v10, %v1075_v4 }
  0xf1   : > { %1082 = vst [vmem:[#allocation2 + $0x80] sm:$0x30] %v1077_v14 }
  0xf3   : > { %v1108_v18 = vpop.permute.xlu1 %1107  ;;  %v1106_v13 = vpop.permute.xlu0 %1105 }
  0xf4   : > { %1116 = vst.msk [vmem:[#allocation2 + $0x88] sm:$0xc0] %vm460_vm1, %v1108_v18  ;;  %v1110_v35 = vsel %vm1010_vm9, %v1106_v13, %v1108_v18 }
  0xf5   : > { %1115 = vst [vmem:[#allocation2 + $0x80] sm:$0xc0] %v1110_v35 }
  0xf7   : > { %v1038_v50 = vpop.permute.xlu1 %1037  ;;  %v1005_v39 = vpop.permute.xlu0 %1004 }
  0xf8   : > { %v1043_v54 = vsel %vm1010_vm9, %v1038_v50, %v1040_v43  ;;  %v1011_v61 = vsel %vm1010_vm9, %v1005_v39, %v1007_v60 }
  0xf9   : > { %1048 = vst [vmem:[#allocation2 + $0x78] sm:$0xc] %v1043_v54  ;;  %1016 = vst [vmem:[#allocation2 + $0x78] sm:$0x3] %v1011_v61 }
  0xfb   : > { %v1104_v1 = vpop.permute.xlu1 %1103  ;;  %v1071_v63 = vpop.permute.xlu0 %1070  ;;  %v1528_v8 = vld [vmem:[#allocation2 + $0x88] sm:$0xff] }
  0xfc   : > { %v1109_v7 = vsel %vm1010_vm9, %v1104_v1, %v1106_v13  ;;  %v1076_v21 = vsel %vm1010_vm9, %v1071_v63, %v1073_v10  ;;  %1610 = vmatpush1.bf16.msra.mxu1 %v1528_v8  ;;  %v1527_v36 = vld [vmem:[#allocation2 + $0x80] sm:$0xff] }
  0xfd   : > { %1114 = vst [vmem:[#allocation2 + $0x78] sm:$0xc0] %v1109_v7  ;;  %1081 = vst [vmem:[#allocation2 + $0x78] sm:$0x30] %v1076_v21  ;;  %1568 = vmatprep.subr.bf16.mxu0 %v1527_v36  ;;  %1611 = vmatprep.subr.bf16.mxu1 %v1846_v20 }
  0xff   : > { %v1140_v11 = vpop.permute.xlu1 %1139  ;;  %v1138_v5 = vpop.permute.xlu0 %1137 }
 0x100   : > { %1149 = vst.msk [vmem:[#allocation2 + $0xa0] sm:$0x3] %vm383_vm2, %v1140_v11  ;;  %v1143_v62 = vsel %vm1141_vm10, %v1138_v5, %v1140_v11 }
 0x101   : > { %1148 = vst [vmem:[#allocation2 + $0x98] sm:$0x3] %v1143_v62 }
 0x103   : > { %v1173_v55 = vpop.permute.xlu1 %1172  ;;  %v1171_v16 = vpop.permute.xlu0 %1170 }
 0x104   : > { %1181 = vst.msk [vmem:[#allocation2 + $0xa0] sm:$0xc] %vm408_vm0, %v1173_v55  ;;  %v1175_v44 = vsel %vm1141_vm10, %v1171_v16, %v1173_v55  ;;  %v1526_v22 = vld [vmem:[#allocation2 + $0x78] sm:$0xff] }
 0x105   : > { %1180 = vst [vmem:[#allocation2 + $0x98] sm:$0xc] %v1175_v44  ;;  %1569 = vmatpush1.bf16.msra.mxu0 %v1526_v22 }
 0x107   : > { %v1206_v24 = vpop.permute.xlu1 %1205  ;;  %v1204_v53 = vpop.permute.xlu0 %1203 }
 0x108   : > { %1214 = vst.msk [vmem:[#allocation2 + $0xa0] sm:$0x30] %vm434_vm3, %v1206_v24  ;;  %v1208_v28 = vsel %vm1141_vm10, %v1204_v53, %v1206_v24 }
 0x109   : > { %1213 = vst [vmem:[#allocation2 + $0x98] sm:$0x30] %v1208_v28 }
 0x10b   : > { %v1239_v9 = vpop.permute.xlu1 %1238  ;;  %v1237_v40 = vpop.permute.xlu0 %1236 }
 0x10c   : > { %1247 = vst.msk [vmem:[#allocation2 + $0xa0] sm:$0xc0] %vm460_vm1, %v1239_v9  ;;  %v1241_v3 = vsel %vm1141_vm10, %v1237_v40, %v1239_v9 }
 0x10d   : > { %1246 = vst [vmem:[#allocation2 + $0x98] sm:$0xc0] %v1241_v3 }
 0x10f   : > { %v1169_v27 = vpop.permute.xlu1 %1168  ;;  %v1136_v23 = vpop.permute.xlu0 %1135 }
 0x110   : > { %v1174_v57 = vsel %vm1141_vm10, %v1169_v27, %v1171_v16  ;;  %v1142_v37 = vsel %vm1141_vm10, %v1136_v23, %v1138_v5 }
 0x111   : > { %1179 = vst [vmem:[#allocation2 + $0x90] sm:$0xc] %v1174_v57  ;;  %1147 = vst [vmem:[#allocation2 + $0x90] sm:$0x3] %v1142_v37 }
 0x113   : > { %v1235_v19 = vpop.permute.xlu1 %1234  ;;  %v1202_v49 = vpop.permute.xlu0 %1201  ;;  %v1531_v51 = vld [vmem:[#allocation2 + $0xa0] sm:$0xff] }
 0x114   : > { %v1240_v12 = vsel %vm1141_vm10, %v1235_v19, %v1237_v40  ;;  %v1207_v15 = vsel %vm1141_vm10, %v1202_v49, %v1204_v53  ;;  %1612 = vmatpush1.bf16.msra.mxu1 %v1531_v51  ;;  %v1530_v33 = vld [vmem:[#allocation2 + $0x98] sm:$0xff]  ;;  %v1639_v53 = vld [vmem:[%s353_s10] sm:$0x3f] }
 0x115   : > { %1245 = vst [vmem:[#allocation2 + $0x90] sm:$0xc0] %v1240_v12  ;;  %1212 = vst [vmem:[#allocation2 + $0x90] sm:$0x30] %v1207_v15  ;;  %1570 = vmatprep.subr.bf16.mxu0 %v1530_v33  ;;  %1613 = vmatprep.subr.bf16.mxu1 %v1846_v20  ;;  %v1641_v28 = vunpack.c.h.bf16 %v1639_v53 }
 0x117   : > { %v1271_v58 = vpop.permute.xlu1 %1270  ;;  %v1269_v31 = vpop.permute.xlu0 %1268 }
 0x118   : > { %1280 = vst.msk [vmem:[#allocation2 + $0xb8] sm:$0x3] %vm383_vm2, %v1271_v58  ;;  %v1274_v34 = vsel %vm1272_vm11, %v1269_v31, %v1271_v58 }
 0x119   : > { %1279 = vst [vmem:[#allocation2 + $0xb0] sm:$0x3] %v1274_v34 }
 0x11b   : > { %v1304_v30 = vpop.permute.xlu1 %1303  ;;  %v1302_v38 = vpop.permute.xlu0 %1301 }
 0x11c   : > { %1312 = vst.msk [vmem:[#allocation2 + $0xb8] sm:$0xc] %vm408_vm0, %v1304_v30  ;;  %v1306_v41 = vsel %vm1272_vm11, %v1302_v38, %v1304_v30  ;;  %v1529_v42 = vld [vmem:[#allocation2 + $0x90] sm:$0xff] }
 0x11d   : > { %1311 = vst [vmem:[#allocation2 + $0xb0] sm:$0xc] %v1306_v41  ;;  %1571 = vmatpush1.bf16.msra.mxu0 %v1529_v42 }
 0x11f   : > { %v1337_v29 = vpop.permute.xlu1 %1336  ;;  %v1335_v32 = vpop.permute.xlu0 %1334 }
 0x120   : > { %1345 = vst.msk [vmem:[#allocation2 + $0xb8] sm:$0x30] %vm434_vm3, %v1337_v29  ;;  %v1339_v46 = vsel %vm1272_vm11, %v1335_v32, %v1337_v29 }
 0x121   : > { %1344 = vst [vmem:[#allocation2 + $0xb0] sm:$0x30] %v1339_v46 }
 0x123   : > { %v1370_v47 = vpop.permute.xlu1 %1369  ;;  %v1368_v25 = vpop.permute.xlu0 %1367 }
 0x124   : > { %1378 = vst.msk [vmem:[#allocation2 + $0xb8] sm:$0xc0] %vm460_vm1, %v1370_v47  ;;  %v1372_v26 = vsel %vm1272_vm11, %v1368_v25, %v1370_v47 }
 0x125   : > { %1377 = vst [vmem:[#allocation2 + $0xb0] sm:$0xc0] %v1372_v26 }
 0x127   : > { %v1300_v48 = vpop.permute.xlu1 %1299  ;;  %v1267_v56 = vpop.permute.xlu0 %1266 }
 0x128   : > { %v1305_v45 = vsel %vm1272_vm11, %v1300_v48, %v1302_v38  ;;  %v1273_v59 = vsel %vm1272_vm11, %v1267_v56, %v1269_v31 }
 0x129   : > { %1310 = vst [vmem:[#allocation2 + $0xa8] sm:$0xc] %v1305_v45  ;;  %1278 = vst [vmem:[#allocation2 + $0xa8] sm:$0x3] %v1273_v59 }
 0x12b   : > { %v1366_v60 = vpop.permute.xlu1 %1365  ;;  %v1333_v0 = vpop.permute.xlu0 %1332  ;;  %v1534_v6 = vld [vmem:[#allocation2 + $0xb8] sm:$0xff] }
 0x12c   : > { %v1371_v43 = vsel %vm1272_vm11, %v1366_v60, %v1368_v25  ;;  %v1338_v52 = vsel %vm1272_vm11, %v1333_v0, %v1335_v32  ;;  %1614 = vmatpush1.bf16.msra.mxu1 %v1534_v6  ;;  %v1533_v2 = vld [vmem:[#allocation2 + $0xb0] sm:$0xff] }
 0x12d   : > { %1376 = vst [vmem:[#allocation2 + $0xa8] sm:$0xc0] %v1371_v43  ;;  %1343 = vst [vmem:[#allocation2 + $0xa8] sm:$0x30] %v1338_v52  ;;  %1572 = vmatprep.subr.bf16.mxu0 %v1533_v2  ;;  %1615 = vmatprep.subr.bf16.mxu1 %v1846_v20 }
 0x12f   : > { %v1402_v4 = vpop.permute.xlu1 %1401  ;;  %v1400_v10 = vpop.permute.xlu0 %1399 }
 0x130   : > { %1411 = vst.msk [vmem:[#allocation2 + $0xd0] sm:$0x3] %vm383_vm2, %v1402_v4  ;;  %v1405_v14 = vsel %vm1403_vm12, %v1400_v10, %v1402_v4 }
 0x131   : > { %1410 = vst [vmem:[#allocation2 + $0xc8] sm:$0x3] %v1405_v14 }
 0x133   : > { %v1435_v18 = vpop.permute.xlu1 %1434  ;;  %v1433_v13 = vpop.permute.xlu0 %1432 }
 0x134   : > { %1443 = vst.msk [vmem:[#allocation2 + $0xd0] sm:$0xc] %vm408_vm0, %v1435_v18  ;;  %v1437_v35 = vsel %vm1403_vm12, %v1433_v13, %v1435_v18  ;;  %v1532_v50 = vld [vmem:[#allocation2 + $0xa8] sm:$0xff] }
 0x135   : > { %1442 = vst [vmem:[#allocation2 + $0xc8] sm:$0xc] %v1437_v35  ;;  %1573 = vmatpush1.bf16.msra.mxu0 %v1532_v50 }
 0x137   : > { %v1468_v39 = vpop.permute.xlu1 %1467  ;;  %v1466_v54 = vpop.permute.xlu0 %1465 }
 0x138   : > { %1476 = vst.msk [vmem:[#allocation2 + $0xd0] sm:$0x30] %vm434_vm3, %v1468_v39  ;;  %v1470_v20 = vsel %vm1403_vm12, %v1466_v54, %v1468_v39 }
 0x139   : > { %1475 = vst [vmem:[#allocation2 + $0xc8] sm:$0x30] %v1470_v20 }
 0x13b   : > { %v1501_v61 = vpop.permute.xlu1 %1500  ;;  %v1499_v1 = vpop.permute.xlu0 %1498 }
 0x13c   : > { %1509 = vst.msk [vmem:[#allocation2 + $0xd0] sm:$0xc0] %vm460_vm1, %v1501_v61  ;;  %v1503_v63 = vsel %vm1403_vm12, %v1499_v1, %v1501_v61 }
 0x13d   : > { %1508 = vst [vmem:[#allocation2 + $0xc8] sm:$0xc0] %v1503_v63 }
 0x13f   : > { %v1431_v8 = vpop.permute.xlu1 %1430  ;;  %v1398_v7 = vpop.permute.xlu0 %1397 }
 0x140   : > { %v1436_v21 = vsel %vm1403_vm12, %v1431_v8, %v1433_v13  ;;  %v1404_v36 = vsel %vm1403_vm12, %v1398_v7, %v1400_v10 }
 0x141   : > { %1441 = vst [vmem:[#allocation2 + $0xc0] sm:$0xc] %v1436_v21  ;;  %1409 = vst [vmem:[#allocation2 + $0xc0] sm:$0x3] %v1404_v36 }
 0x143   : > { %v1497_v11 = vpop.permute.xlu1 %1496  ;;  %v1464_v5 = vpop.permute.xlu0 %1463  ;;  %v1537_v62 = vld [vmem:[#allocation2 + $0xd0] sm:$0xff] }
 0x144   : > { %v1502_v55 = vsel %vm1403_vm12, %v1497_v11, %v1499_v1  ;;  %v1469_v16 = vsel %vm1403_vm12, %v1464_v5, %v1466_v54  ;;  %1616 = vmatpush1.bf16.msra.mxu1 %v1537_v62  ;;  %v1536_v44 = vld [vmem:[#allocation2 + $0xc8] sm:$0xff] }
 0x145   : > { %1507 = vst [vmem:[#allocation2 + $0xc0] sm:$0xc0] %v1502_v55  ;;  %1474 = vst [vmem:[#allocation2 + $0xc0] sm:$0x30] %v1469_v16  ;;  %1574 = vmatprep.subr.bf16.mxu0 %v1536_v44 }
 0x147   : > { %1632 = vmatmul.mubr.bf16.vlgmr.msra.gmra.mrb[0].mxu1 %v2379_v17 }
 0x14c   : > { %v1535_v22 = vld [vmem:[#allocation2 + $0xc0] sm:$0xff] }
 0x14d   : > { %1575 = vmatpush1.bf16.msra.mxu0 %v1535_v22 }
 0x150   : > { %1591 = vmatmul.mubr.bf16.vlgmr.msra.gmra.mrb[0].mxu0 %v2379_v17  ;;  %v1640_v17 = vunpack.c.l.bf16 %v1639_v53 }
 0x152   : > { %v1643_v49 = vcombine.high %v1640_v17, %v1640_v17 }
 0x154   : > { %v1542_v24 = vpop.permute.xlu0 %1541 }
 0x21a   : > { %v1633_v9 = vpop.f32.mrb[0].mxu1 }
 0x21b   : > { %v1634_v40 = vadd.f32 %v1633_v9, %v1542_v24  ;;  %v1635_v3 = vpop.f32.mrb[1].mxu1 }
 0x21c   : > { %v1636_v27 = vpop.f32.mrb[2].mxu1 }
 0x21d   : > { %v1647_v23 = vadd.f32 %v1641_v28, %v1634_v40  ;;  %v1637_v57 = vpop.f32.mrb[3].mxu1 }
 0x21f   : > { %v1650_v37 = vmax.f32 %v1647_v23, 0.0 }
 0x221   : > { %1657 = vst.msk [vmem:[%s358_s14 + $0x8] sm:$0xf] %vm1656_vm13, %v1650_v37 }
 0x223   : > { %v1592_v19 = vpop.f32.mrb[0].mxu0 }
 0x224   : > { %v1593_v51 = vadd.f32 %v1592_v19, %v1542_v24  ;;  %v1594_v12 = vpop.f32.mrb[1].mxu0 }
 0x225   : > { %v1595_v15 = vadd.f32 %v1594_v12, %v1542_v24  ;;  %v1596_v33 = vpop.f32.mrb[2].mxu0 }
 0x226   : > { %v1645_v58 = vadd.f32 %v1640_v17, %v1593_v51  ;;  %v1597_v31 = vpop.f32.mrb[3].mxu0 }
 0x227   : > { %v1646_v34 = vadd.f32 %v1643_v49, %v1595_v15 }
 0x228   : > { %v1648_v30 = vmax.f32 %v1645_v58, 0.0 }
 0x229   : > { %v1649_v38 = vmax.f32 %v1646_v34, 0.0 }
 0x22b   : > { %v1653_v41 = vcombine.low %v1648_v30, %v1649_v38 }
 0x22d   : > { %1655 = vst [vmem:[%s358_s14] sm:$0xff] %v1653_v41 }
 0x22e PF: > { %s17_s24 = sadd.s32 1, %s1842_s24  }
 0x22f   : > { %p14_p4 = scmp.ge.s32.totalorder %s17_s24, 4  }
 0x231   :  { %16 = sbr.rel (!%p14_p4) target bundleno = 1 (0x1), region = 90 }

</bundles_post_ra>
